<compile_context>
chip_gen: v5e
topology: v5e:2x2
jax: 0.10.0
libtpu: 0.0.40
codegen_flags: <defaults>
</compile_context>

<pallas_src>
import math
import jax
import jax.numpy as jnp
from jax.experimental import pallas as pl
from jax.experimental.pallas import tpu as pltpu

# ----- small synthetic BERT config (BertModel.from_pretrained is replaced by
#       deterministic random weights of the same structure, just smaller) -----
VOCAB = 100
VOCAB_PAD = 128       # word-embedding table padded to a lane-friendly 128 rows
TYPE_VOCAB = 2
MAX_POS = 16
HIDDEN = 128          # stands in for 768
HEADS = 4
HEAD_DIM = HIDDEN // HEADS
INTERMEDIATE = 256    # stands in for 3072
LAYERS = 2            # stands in for 12
NUM_LABELS = 4
CLS_PAD = 128         # lane-dense classifier weight width (kernel slices [:, :4])
LN_EPS = 1e-12


# ---------------- in-kernel helpers ----------------
def _gelu(x):
    # tanh-approx GELU (EUP-friendly); BERT's erf-GELU differs by <1e-3.
    c = math.sqrt(2.0 / math.pi)
    return 0.5 * x * (1.0 + jnp.tanh(c * (x + 0.044715 * x * x * x)))


def _layernorm(x, g, b):
    mu = jnp.mean(x, axis=-1, keepdims=True)
    var = jnp.mean((x - mu) ** 2, axis=-1, keepdims=True)
    return (x - mu) * jax.lax.rsqrt(var + LN_EPS) * g + b


# ---------------- single fused Pallas kernel ----------------
def bert_fused_kernel(ids_ref, tt_ref, mask_ref,
                      wemb_ref, temb_ref, pemb_ref,
                      eg_ref, eb_ref,
                      wqkv_ref, bqkv_ref, wo_ref, bo_ref,
                      ln1g_ref, ln1b_ref,
                      w1_ref, b1_ref, w2_ref, b2_ref,
                      ln2g_ref, ln2b_ref,
                      clsw_ref, clsb_ref,
                      out_ref):
    B = mask_ref.shape[0]
    S = mask_ref.shape[2]
    H = HIDDEN
    BS = B * S

    # ---- fused embeddings: word (one-hot gather-as-matmul, exact), type (2-row
    #      lerp, token_type in {0,1}), position (broadcast) -> embedding LayerNorm.
    ids = ids_ref[...]                                            # (BS, 1) int32
    vocab_iota = jax.lax.broadcasted_iota(jnp.int32, (BS, VOCAB_PAD), 1)
    word_oh = jnp.where(vocab_iota == ids, 1.0, 0.0)              # (BS, VOCAB_PAD) f32
    word = jnp.dot(word_oh, wemb_ref[...],
                   preferred_element_type=jnp.float32)            # (BS, H)

    temb = temb_ref[...]                                          # (2, H)
    tt = tt_ref[...].astype(jnp.float32)                          # (BS, 1) in {0,1}
    typ = temb[0:1, :] + tt * (temb[1:2, :] - temb[0:1, :])       # (BS, H)

    pos = jnp.broadcast_to(pemb_ref[...][:S, :][None, :, :],
                           (B, S, H)).reshape(BS, H)              # (BS, H)

    x = _layernorm(word + typ + pos, eg_ref[...], eb_ref[...])    # (BS, H) f32

    # ---- additive attention mask, hoisted & pre-broadcast for all layers/heads ----
    add_mask = (1.0 - mask_ref[...]) * -1e9                       # (B, 1, S)
    big_mask = jnp.broadcast_to(
        jnp.broadcast_to(add_mask, (B, S, S))[None, :, :, :],
        (HEADS, B, S, S)).reshape(HEADS * B, S, S)                # (HEADS*B, S, S)

    scale = 1.0 / math.sqrt(HEAD_DIM)

    def split_heads(t):   # (BS, H) f32 -> (HEADS*B, S, HEAD_DIM) bf16, head-major
        hs = jnp.stack([t[:, h * HEAD_DIM:(h + 1) * HEAD_DIM] for h in range(HEADS)],
                       axis=0)                                    # (HEADS, BS, HD)
        return hs.reshape(HEADS * B, S, HEAD_DIM).astype(jnp.bfloat16)

    for l in range(LAYERS):                        # static loop over encoder layers
        # fused QKV projection over all B*S rows (bf16 operands, f32 accumulate)
        qkv = (jnp.dot(x.astype(jnp.bfloat16), wqkv_ref[l],
                       preferred_element_type=jnp.float32) + bqkv_ref[l])  # (BS, 3H)

        # 128-lane-aligned q/k/v split, then heads stacked on a new leading axis:
        # one batched attention over HEADS*B instead of a per-head loop.
        q_hb = split_heads(qkv[:, 0 * H:1 * H])
        k_hb = split_heads(qkv[:, 1 * H:2 * H])
        v_hb = split_heads(qkv[:, 2 * H:3 * H])

        scores = (jnp.einsum('bqd,bkd->bqk', q_hb, k_hb,
                             preferred_element_type=jnp.float32) * scale + big_mask)
        scores = scores - jnp.max(scores, axis=-1, keepdims=True)
        p = jnp.exp(scores)
        p = p * pl.reciprocal(jnp.sum(p, axis=-1, keepdims=True), approx=True)
        ctx = jnp.einsum('bqk,bkd->bqd', p.astype(jnp.bfloat16), v_hb,
                         preferred_element_type=jnp.float32)      # (HEADS*B, S, HD)

        # output projection accumulated over heads (no lane-dim concat):
        # wo is stored per-head as (LAYERS, HEADS, HEAD_DIM, H).
        ctx_h = ctx.reshape(HEADS, BS, HEAD_DIM).astype(jnp.bfloat16)
        proj = jnp.einsum('hmd,hdk->hmk', ctx_h, wo_ref[l],
                          preferred_element_type=jnp.float32)     # (HEADS, BS, H)
        attn = jnp.sum(proj, axis=0) + bo_ref[l]                  # (BS, H)

        h1 = _layernorm(x + attn, ln1g_ref[l], ln1b_ref[l])
        ff = _gelu(jnp.dot(h1.astype(jnp.bfloat16), w1_ref[l],
                           preferred_element_type=jnp.float32) + b1_ref[l])
        ff = (jnp.dot(ff.astype(jnp.bfloat16), w2_ref[l],
                      preferred_element_type=jnp.float32) + b2_ref[l])
        x = _layernorm(h1 + ff, ln2g_ref[l], ln2b_ref[l])

    # ---- classifier on the CLS token of every sequence.
    # Dropout(p=0.3) is identity in eval/inference mode -> apply Linear directly.
    cls = x.reshape(B, S, H)[:, 0, :]                             # (B, H)
    logits = (jnp.dot(cls.astype(jnp.bfloat16), clsw_ref[...],
                      preferred_element_type=jnp.float32) + clsb_ref[...])  # (B, 128)
    out_ref[...] = logits[:, :NUM_LABELS]                         # (B, 4) stored directly


# ---------------- full forward (matches BERTClass.forward) ----------------
def bert_class_forward(params, ids, mask, token_type_ids):
    B, S = ids.shape
    # Only remaining host-side glue: tiny reshapes/casts of the int inputs so the
    # kernel sees B*S on the sublane axis (cheap; no gathers / HBM roundtrips left).
    ids_col = ids.reshape(B * S, 1).astype(jnp.int32)
    tt_col = token_type_ids.reshape(B * S, 1).astype(jnp.int32)
    mask_f = mask.astype(jnp.float32)[:, None, :]                 # (B, 1, S), 1 = attend

    ins = (ids_col, tt_col, mask_f,
           params["word_emb"], params["type_emb"], params["pos_emb"],
           params["emb_ln_g"], params["emb_ln_b"],
           params["wqkv"], params["bqkv"], params["wo"], params["bo"],
           params["ln1g"], params["ln1b"],
           params["w1"], params["b1"], params["w2"], params["b2"],
           params["ln2g"], params["ln2b"],
           params["cls_w"], params["cls_b"])

    return pl.pallas_call(
        bert_fused_kernel,
        out_shape=jax.ShapeDtypeStruct((B, NUM_LABELS), jnp.float32),
        in_specs=[pl.BlockSpec(memory_space=pltpu.MemorySpace.VMEM)] * len(ins),
        out_specs=pl.BlockSpec(memory_space=pltpu.MemorySpace.VMEM),
    )(*ins)                                                        # (B, 4)


# ---------------- deterministic parameter init ----------------
def init_params(key):
    def nrm(k, shape, dtype=jnp.float32):
        return (0.02 * jax.random.normal(k, shape)).astype(dtype)

    keys = jax.random.split(key, 8)
    word = (jnp.zeros((VOCAB_PAD, HIDDEN), jnp.float32)
            .at[:VOCAB].set(nrm(keys[0], (VOCAB, HIDDEN))))
    p = {
        "word_emb": word,
        "pos_emb": nrm(keys[1], (MAX_POS, HIDDEN)),
        "type_emb": nrm(keys[2], (TYPE_VOCAB, HIDDEN)),
        "emb_ln_g": jnp.ones((1, HIDDEN), jnp.float32),
        "emb_ln_b": jnp.zeros((1, HIDDEN), jnp.float32),
        # per-layer weights stacked along a leading LAYERS axis; matmul weights bf16
        "wqkv": nrm(keys[3], (LAYERS, HIDDEN, 3 * HIDDEN), jnp.bfloat16),
        "bqkv": jnp.zeros((LAYERS, 1, 3 * HIDDEN), jnp.float32),
        # wo stored per-head so the kernel accumulates head projections without a concat
        "wo":   nrm(keys[4], (LAYERS, HIDDEN, HIDDEN), jnp.bfloat16)
                .reshape(LAYERS, HEADS, HEAD_DIM, HIDDEN),
        "bo":   jnp.zeros((LAYERS, 1, HIDDEN), jnp.float32),
        "ln1g": jnp.ones((LAYERS, 1, HIDDEN), jnp.float32),
        "ln1b": jnp.zeros((LAYERS, 1, HIDDEN), jnp.float32),
        "w1":   nrm(keys[5], (LAYERS, HIDDEN, INTERMEDIATE), jnp.bfloat16),
        "b1":   jnp.zeros((LAYERS, 1, INTERMEDIATE), jnp.float32),
        "w2":   nrm(keys[6], (LAYERS, INTERMEDIATE, HIDDEN), jnp.bfloat16),
        "b2":   jnp.zeros((LAYERS, 1, HIDDEN), jnp.float32),
        "ln2g": jnp.ones((LAYERS, 1, HIDDEN), jnp.float32),
        "ln2b": jnp.zeros((LAYERS, 1, HIDDEN), jnp.float32),
    }
    # lane-dense classifier weight: real weights in columns [:NUM_LABELS], rest zero
    cls_w = nrm(keys[7], (HIDDEN, NUM_LABELS))
    p["cls_w"] = (jnp.zeros((HIDDEN, CLS_PAD), jnp.float32)
                  .at[:, :NUM_LABELS].set(cls_w)).astype(jnp.bfloat16)
    p["cls_b"] = jnp.zeros((1, CLS_PAD), jnp.float32)
    return p


if __name__ == "__main__":
    B, S = 2, 8
    key = jax.random.PRNGKey(0)
    k_ids, k_params = jax.random.split(key)

    ids = jax.random.randint(k_ids, (B, S), 0, VOCAB, dtype=jnp.int32)
    mask = jnp.array([[1, 1, 1, 1, 1, 1, 1, 1],
                      [1, 1, 1, 1, 1, 1, 0, 0]], dtype=jnp.int32)
    token_type_ids = jnp.zeros((B, S), dtype=jnp.int32)

    params = init_params(k_params)
    fwd = jax.jit(bert_class_forward)
    logits = jax.block_until_ready(fwd(params, ids, mask, token_type_ids))
    assert logits.shape == (B, NUM_LABELS) and logits.dtype == jnp.float32
    assert bool(jnp.all(jnp.isfinite(logits)))
    print("KERNEL_OK")
</pallas_src>

<mosaic_0001>
module attributes {stable_mosaic.version = 11 : i64} {
  func.func @bert_fused_kernel(%arg0: memref<16x1xi32, #tpu.memory_space<vmem>>, %arg1: memref<16x1xi32, #tpu.memory_space<vmem>>, %arg2: memref<2x1x8xf32, #tpu.memory_space<vmem>>, %arg3: memref<128x128xf32, #tpu.memory_space<vmem>>, %arg4: memref<2x128xf32, #tpu.memory_space<vmem>>, %arg5: memref<16x128xf32, #tpu.memory_space<vmem>>, %arg6: memref<1x128xf32, #tpu.memory_space<vmem>>, %arg7: memref<1x128xf32, #tpu.memory_space<vmem>>, %arg8: memref<2x128x384xbf16, #tpu.memory_space<vmem>>, %arg9: memref<2x1x384xf32, #tpu.memory_space<vmem>>, %arg10: memref<2x4x32x128xbf16, #tpu.memory_space<vmem>>, %arg11: memref<2x1x128xf32, #tpu.memory_space<vmem>>, %arg12: memref<2x1x128xf32, #tpu.memory_space<vmem>>, %arg13: memref<2x1x128xf32, #tpu.memory_space<vmem>>, %arg14: memref<2x128x256xbf16, #tpu.memory_space<vmem>>, %arg15: memref<2x1x256xf32, #tpu.memory_space<vmem>>, %arg16: memref<2x256x128xbf16, #tpu.memory_space<vmem>>, %arg17: memref<2x1x128xf32, #tpu.memory_space<vmem>>, %arg18: memref<2x1x128xf32, #tpu.memory_space<vmem>>, %arg19: memref<2x1x128xf32, #tpu.memory_space<vmem>>, %arg20: memref<128x128xbf16, #tpu.memory_space<vmem>>, %arg21: memref<1x128xf32, #tpu.memory_space<vmem>>, %arg22: memref<2x4xf32, #tpu.memory_space<vmem>>) attributes {dimension_semantics = [], scalar_prefetch = 0 : i64, scratch_operands = 0 : i64, tpu.core_type = #tpu.core_type<tc>} {
    %c0 = arith.constant 0 : index
    %c0_0 = arith.constant 0 : index
    %0 = vector.load %arg0[%c0, %c0_0] : memref<16x1xi32, #tpu.memory_space<vmem>>, vector<16x1xi32>
    %1 = tpu.iota {dimensions = array<i32: 1>} : vector<16x128xi32>
    %2 = vector.broadcast %0 : vector<16x1xi32> to vector<16x128xi32>
    %3 = arith.cmpi eq, %1, %2 : vector<16x128xi32>
    %cst = arith.constant 1.000000e+00 : f32
    %cst_1 = arith.constant 0.000000e+00 : f32
    %4 = vector.broadcast %cst : f32 to vector<16x128xf32>
    %5 = vector.broadcast %cst_1 : f32 to vector<16x128xf32>
    %6 = arith.select %3, %4, %5 : vector<16x128xi1>, vector<16x128xf32>
    %c0_2 = arith.constant 0 : index
    %c0_3 = arith.constant 0 : index
    %7 = vector.load %arg3[%c0_2, %c0_3] : memref<128x128xf32, #tpu.memory_space<vmem>>, vector<128x128xf32>
    %cst_4 = arith.constant dense<0.000000e+00> : vector<16x128xf32>
    %8 = tpu.matmul %6, %7, %cst_4 {dimension_numbers = #tpu.dot_dimension_numbers<[1], [0], [0], [1], [0, 0, 1, 1], [], []>} : vector<16x128xf32>, vector<128x128xf32>, vector<16x128xf32> -> vector<16x128xf32>
    %c0_5 = arith.constant 0 : index
    %c0_6 = arith.constant 0 : index
    %9 = vector.load %arg4[%c0_5, %c0_6] : memref<2x128xf32, #tpu.memory_space<vmem>>, vector<2x128xf32>
    %c0_7 = arith.constant 0 : index
    %c0_8 = arith.constant 0 : index
    %10 = vector.load %arg1[%c0_7, %c0_8] : memref<16x1xi32, #tpu.memory_space<vmem>>, vector<16x1xi32>
    %11 = arith.sitofp %10 : vector<16x1xi32> to vector<16x1xf32>
    %12 = vector.extract_strided_slice %9 {offsets = [0, 0], sizes = [1, 128], strides = [1, 1]} : vector<2x128xf32> to vector<1x128xf32>
    %13 = vector.extract_strided_slice %9 {offsets = [1, 0], sizes = [1, 128], strides = [1, 1]} : vector<2x128xf32> to vector<1x128xf32>
    %14 = vector.extract_strided_slice %9 {offsets = [0, 0], sizes = [1, 128], strides = [1, 1]} : vector<2x128xf32> to vector<1x128xf32>
    %15 = arith.subf %13, %14 : vector<1x128xf32>
    %16 = vector.broadcast %11 : vector<16x1xf32> to vector<16x128xf32>
    %17 = vector.broadcast %15 : vector<1x128xf32> to vector<16x128xf32>
    %18 = arith.mulf %16, %17 : vector<16x128xf32>
    %19 = vector.broadcast %12 : vector<1x128xf32> to vector<16x128xf32>
    %20 = arith.addf %19, %18 : vector<16x128xf32>
    %c0_9 = arith.constant 0 : index
    %c0_10 = arith.constant 0 : index
    %21 = vector.load %arg5[%c0_9, %c0_10] : memref<16x128xf32, #tpu.memory_space<vmem>>, vector<16x128xf32>
    %22 = vector.extract_strided_slice %21 {offsets = [0, 0], sizes = [8, 128], strides = [1, 1]} : vector<16x128xf32> to vector<8x128xf32>
    %23 = vector.shape_cast %22 : vector<8x128xf32> to vector<1x8x128xf32>
    %24 = vector.shape_cast %23 : vector<1x8x128xf32> to vector<1x8x128xf32>
    %25 = vector.broadcast %24 : vector<1x8x128xf32> to vector<2x8x128xf32>
    %26 = vector.shape_cast %25 : vector<2x8x128xf32> to vector<16x128xf32>
    %27 = arith.addf %8, %20 : vector<16x128xf32>
    %28 = arith.addf %27, %26 : vector<16x128xf32>
    %c0_11 = arith.constant 0 : index
    %c0_12 = arith.constant 0 : index
    %29 = vector.load %arg6[%c0_11, %c0_12] : memref<1x128xf32, #tpu.memory_space<vmem>>, vector<1x128xf32>
    %c0_13 = arith.constant 0 : index
    %c0_14 = arith.constant 0 : index
    %30 = vector.load %arg7[%c0_13, %c0_14] : memref<1x128xf32, #tpu.memory_space<vmem>>, vector<1x128xf32>
    %cst_15 = arith.constant dense<0.000000e+00> : vector<16xf32>
    %31 = vector.multi_reduction <add>, %28, %cst_15 [1] : vector<16x128xf32> to vector<16xf32>
    %32 = vector.shape_cast %31 : vector<16xf32> to vector<16x1xf32>
    %cst_16 = arith.constant 1.280000e+02 : f32
    %33 = vector.broadcast %cst_16 : f32 to vector<16x1xf32>
    %34 = arith.divf %32, %33 : vector<16x1xf32>
    %35 = vector.broadcast %34 : vector<16x1xf32> to vector<16x128xf32>
    %36 = arith.subf %28, %35 : vector<16x128xf32>
    %37 = arith.mulf %36, %36 : vector<16x128xf32>
    %cst_17 = arith.constant dense<0.000000e+00> : vector<16xf32>
    %38 = vector.multi_reduction <add>, %37, %cst_17 [1] : vector<16x128xf32> to vector<16xf32>
    %39 = vector.shape_cast %38 : vector<16xf32> to vector<16x1xf32>
    %cst_18 = arith.constant 1.280000e+02 : f32
    %40 = vector.broadcast %cst_18 : f32 to vector<16x1xf32>
    %41 = arith.divf %39, %40 : vector<16x1xf32>
    %42 = vector.broadcast %34 : vector<16x1xf32> to vector<16x128xf32>
    %43 = arith.subf %28, %42 : vector<16x128xf32>
    %cst_19 = arith.constant 9.99999996E-13 : f32
    %44 = vector.broadcast %cst_19 : f32 to vector<16x1xf32>
    %45 = arith.addf %41, %44 : vector<16x1xf32>
    %46 = math.rsqrt %45 : vector<16x1xf32>
    %47 = vector.broadcast %46 : vector<16x1xf32> to vector<16x128xf32>
    %48 = arith.mulf %43, %47 : vector<16x128xf32>
    %49 = vector.broadcast %29 : vector<1x128xf32> to vector<16x128xf32>
    %50 = arith.mulf %48, %49 : vector<16x128xf32>
    %51 = vector.broadcast %30 : vector<1x128xf32> to vector<16x128xf32>
    %52 = arith.addf %50, %51 : vector<16x128xf32>
    %c0_20 = arith.constant 0 : index
    %c0_21 = arith.constant 0 : index
    %c0_22 = arith.constant 0 : index
    %53 = vector.load %arg2[%c0_20, %c0_21, %c0_22] : memref<2x1x8xf32, #tpu.memory_space<vmem>>, vector<2x1x8xf32>
    %cst_23 = arith.constant 1.000000e+00 : f32
    %54 = vector.broadcast %cst_23 : f32 to vector<2x1x8xf32>
    %55 = arith.subf %54, %53 : vector<2x1x8xf32>
    %cst_24 = arith.constant -1.000000e+09 : f32
    %56 = vector.broadcast %cst_24 : f32 to vector<2x1x8xf32>
    %57 = arith.mulf %55, %56 : vector<2x1x8xf32>
    %58 = vector.shape_cast %57 : vector<2x1x8xf32> to vector<2x1x8xf32>
    %59 = vector.broadcast %58 : vector<2x1x8xf32> to vector<2x8x8xf32>
    %60 = vector.shape_cast %59 : vector<2x8x8xf32> to vector<1x2x8x8xf32>
    %61 = vector.shape_cast %60 : vector<1x2x8x8xf32> to vector<1x2x8x8xf32>
    %62 = vector.broadcast %61 : vector<1x2x8x8xf32> to vector<4x2x8x8xf32>
    %63 = vector.shape_cast %62 : vector<4x2x8x8xf32> to vector<8x8x8xf32>
    %64 = arith.truncf %52 : vector<16x128xf32> to vector<16x128xbf16>
    %c0_25 = arith.constant 0 : index
    %c0_26 = arith.constant 0 : index
    %c0_27 = arith.constant 0 : index
    %65 = vector.load %arg8[%c0_25, %c0_26, %c0_27] : memref<2x128x384xbf16, #tpu.memory_space<vmem>>, vector<1x128x384xbf16>
    %66 = vector.shape_cast %65 : vector<1x128x384xbf16> to vector<128x384xbf16>
    %cst_28 = arith.constant dense<0.000000e+00> : vector<16x384xf32>
    %67 = tpu.matmul %64, %66, %cst_28 {dimension_numbers = #tpu.dot_dimension_numbers<[1], [0], [0], [1], [0, 0, 1, 1], [], []>} : vector<16x128xbf16>, vector<128x384xbf16>, vector<16x384xf32> -> vector<16x384xf32>
    %c0_29 = arith.constant 0 : index
    %c0_30 = arith.constant 0 : index
    %c0_31 = arith.constant 0 : index
    %68 = vector.load %arg9[%c0_29, %c0_30, %c0_31] : memref<2x1x384xf32, #tpu.memory_space<vmem>>, vector<1x1x384xf32>
    %69 = vector.shape_cast %68 : vector<1x1x384xf32> to vector<1x384xf32>
    %70 = vector.broadcast %69 : vector<1x384xf32> to vector<16x384xf32>
    %71 = arith.addf %67, %70 : vector<16x384xf32>
    %72 = vector.extract_strided_slice %71 {offsets = [0, 0], sizes = [16, 128], strides = [1, 1]} : vector<16x384xf32> to vector<16x128xf32>
    %73 = vector.extract_strided_slice %72 {offsets = [0, 0], sizes = [16, 32], strides = [1, 1]} : vector<16x128xf32> to vector<16x32xf32>
    %74 = vector.extract_strided_slice %72 {offsets = [0, 32], sizes = [16, 32], strides = [1, 1]} : vector<16x128xf32> to vector<16x32xf32>
    %75 = vector.extract_strided_slice %72 {offsets = [0, 64], sizes = [16, 32], strides = [1, 1]} : vector<16x128xf32> to vector<16x32xf32>
    %76 = vector.extract_strided_slice %72 {offsets = [0, 96], sizes = [16, 32], strides = [1, 1]} : vector<16x128xf32> to vector<16x32xf32>
    %77 = vector.shape_cast %73 : vector<16x32xf32> to vector<1x16x32xf32>
    %78 = vector.shape_cast %74 : vector<16x32xf32> to vector<1x16x32xf32>
    %79 = vector.shape_cast %75 : vector<16x32xf32> to vector<1x16x32xf32>
    %80 = vector.shape_cast %76 : vector<16x32xf32> to vector<1x16x32xf32>
    %81 = tpu.concatenate %77, %78, %79, %80 in 0 : vector<1x16x32xf32>, vector<1x16x32xf32>, vector<1x16x32xf32>, vector<1x16x32xf32> -> vector<4x16x32xf32>
    %82 = vector.shape_cast %81 : vector<4x16x32xf32> to vector<8x8x32xf32>
    %83 = arith.truncf %82 : vector<8x8x32xf32> to vector<8x8x32xbf16>
    %84 = vector.extract_strided_slice %71 {offsets = [0, 128], sizes = [16, 128], strides = [1, 1]} : vector<16x384xf32> to vector<16x128xf32>
    %85 = vector.extract_strided_slice %84 {offsets = [0, 0], sizes = [16, 32], strides = [1, 1]} : vector<16x128xf32> to vector<16x32xf32>
    %86 = vector.extract_strided_slice %84 {offsets = [0, 32], sizes = [16, 32], strides = [1, 1]} : vector<16x128xf32> to vector<16x32xf32>
    %87 = vector.extract_strided_slice %84 {offsets = [0, 64], sizes = [16, 32], strides = [1, 1]} : vector<16x128xf32> to vector<16x32xf32>
    %88 = vector.extract_strided_slice %84 {offsets = [0, 96], sizes = [16, 32], strides = [1, 1]} : vector<16x128xf32> to vector<16x32xf32>
    %89 = vector.shape_cast %85 : vector<16x32xf32> to vector<1x16x32xf32>
    %90 = vector.shape_cast %86 : vector<16x32xf32> to vector<1x16x32xf32>
    %91 = vector.shape_cast %87 : vector<16x32xf32> to vector<1x16x32xf32>
    %92 = vector.shape_cast %88 : vector<16x32xf32> to vector<1x16x32xf32>
    %93 = tpu.concatenate %89, %90, %91, %92 in 0 : vector<1x16x32xf32>, vector<1x16x32xf32>, vector<1x16x32xf32>, vector<1x16x32xf32> -> vector<4x16x32xf32>
    %94 = vector.shape_cast %93 : vector<4x16x32xf32> to vector<8x8x32xf32>
    %95 = arith.truncf %94 : vector<8x8x32xf32> to vector<8x8x32xbf16>
    %96 = vector.extract_strided_slice %71 {offsets = [0, 256], sizes = [16, 128], strides = [1, 1]} : vector<16x384xf32> to vector<16x128xf32>
    %97 = vector.extract_strided_slice %96 {offsets = [0, 0], sizes = [16, 32], strides = [1, 1]} : vector<16x128xf32> to vector<16x32xf32>
    %98 = vector.extract_strided_slice %96 {offsets = [0, 32], sizes = [16, 32], strides = [1, 1]} : vector<16x128xf32> to vector<16x32xf32>
    %99 = vector.extract_strided_slice %96 {offsets = [0, 64], sizes = [16, 32], strides = [1, 1]} : vector<16x128xf32> to vector<16x32xf32>
    %100 = vector.extract_strided_slice %96 {offsets = [0, 96], sizes = [16, 32], strides = [1, 1]} : vector<16x128xf32> to vector<16x32xf32>
    %101 = vector.shape_cast %97 : vector<16x32xf32> to vector<1x16x32xf32>
    %102 = vector.shape_cast %98 : vector<16x32xf32> to vector<1x16x32xf32>
    %103 = vector.shape_cast %99 : vector<16x32xf32> to vector<1x16x32xf32>
    %104 = vector.shape_cast %100 : vector<16x32xf32> to vector<1x16x32xf32>
    %105 = tpu.concatenate %101, %102, %103, %104 in 0 : vector<1x16x32xf32>, vector<1x16x32xf32>, vector<1x16x32xf32>, vector<1x16x32xf32> -> vector<4x16x32xf32>
    %106 = vector.shape_cast %105 : vector<4x16x32xf32> to vector<8x8x32xf32>
    %107 = arith.truncf %106 : vector<8x8x32xf32> to vector<8x8x32xbf16>
    "tpu.trace_start"() <{level = 10 : i32, message = "bqd,bkd->bqk"}> : () -> ()
    %cst_32 = arith.constant dense<0.000000e+00> : vector<8x8x8xf32>
    %108 = tpu.matmul %83, %95, %cst_32 {dimension_numbers = #tpu.dot_dimension_numbers<[2], [2], [1], [1], [0, 0, 0, 1, 1, 1], [0], [0]>} : vector<8x8x32xbf16>, vector<8x8x32xbf16>, vector<8x8x8xf32> -> vector<8x8x8xf32>
    "tpu.trace_stop"() : () -> ()
    %cst_33 = arith.constant 0.176776692 : f32
    %109 = vector.broadcast %cst_33 : f32 to vector<8x8x8xf32>
    %110 = arith.mulf %108, %109 : vector<8x8x8xf32>
    %111 = arith.addf %110, %63 : vector<8x8x8xf32>
    %cst_34 = arith.constant dense<0xFF800000> : vector<8x8xf32>
    %112 = vector.multi_reduction <maximumf>, %111, %cst_34 [2] : vector<8x8x8xf32> to vector<8x8xf32>
    %113 = vector.shape_cast %112 : vector<8x8xf32> to vector<8x8x1xf32>
    %114 = vector.broadcast %113 : vector<8x8x1xf32> to vector<8x8x8xf32>
    %115 = arith.subf %111, %114 : vector<8x8x8xf32>
    %116 = math.exp %115 : vector<8x8x8xf32>
    %cst_35 = arith.constant dense<0.000000e+00> : vector<8x8xf32>
    %117 = vector.multi_reduction <add>, %116, %cst_35 [2] : vector<8x8x8xf32> to vector<8x8xf32>
    %118 = vector.shape_cast %117 : vector<8x8xf32> to vector<8x8x1xf32>
    %119 = tpu.reciprocal %118 {approx = true} : vector<8x8x1xf32> -> vector<8x8x1xf32>
    %120 = vector.broadcast %119 : vector<8x8x1xf32> to vector<8x8x8xf32>
    %121 = arith.mulf %116, %120 : vector<8x8x8xf32>
    %122 = arith.truncf %121 : vector<8x8x8xf32> to vector<8x8x8xbf16>
    "tpu.trace_start"() <{level = 10 : i32, message = "bqk,bkd->bqd"}> : () -> ()
    %cst_36 = arith.constant dense<0.000000e+00> : vector<8x8x32xf32>
    %123 = tpu.matmul %122, %107, %cst_36 {dimension_numbers = #tpu.dot_dimension_numbers<[2], [1], [1], [2], [0, 0, 0, 1, 1, 2], [0], [0]>} : vector<8x8x8xbf16>, vector<8x8x32xbf16>, vector<8x8x32xf32> -> vector<8x8x32xf32>
    "tpu.trace_stop"() : () -> ()
    %124 = vector.shape_cast %123 : vector<8x8x32xf32> to vector<4x16x32xf32>
    %125 = arith.truncf %124 : vector<4x16x32xf32> to vector<4x16x32xbf16>
    %c0_37 = arith.constant 0 : index
    %c0_38 = arith.constant 0 : index
    %c0_39 = arith.constant 0 : index
    %c0_40 = arith.constant 0 : index
    %126 = vector.load %arg10[%c0_37, %c0_38, %c0_39, %c0_40] : memref<2x4x32x128xbf16, #tpu.memory_space<vmem>>, vector<1x4x32x128xbf16>
    %127 = vector.shape_cast %126 : vector<1x4x32x128xbf16> to vector<4x32x128xbf16>
    "tpu.trace_start"() <{level = 10 : i32, message = "hmd,hdk->hmk"}> : () -> ()
    %cst_41 = arith.constant dense<0.000000e+00> : vector<4x16x128xf32>
    %128 = tpu.matmul %125, %127, %cst_41 {dimension_numbers = #tpu.dot_dimension_numbers<[2], [1], [1], [2], [0, 0, 0, 1, 1, 2], [0], [0]>} : vector<4x16x32xbf16>, vector<4x32x128xbf16>, vector<4x16x128xf32> -> vector<4x16x128xf32>
    "tpu.trace_stop"() : () -> ()
    %cst_42 = arith.constant dense<0.000000e+00> : vector<16x128xf32>
    %129 = vector.multi_reduction <add>, %128, %cst_42 [0] : vector<4x16x128xf32> to vector<16x128xf32>
    %c0_43 = arith.constant 0 : index
    %c0_44 = arith.constant 0 : index
    %c0_45 = arith.constant 0 : index
    %130 = vector.load %arg11[%c0_43, %c0_44, %c0_45] : memref<2x1x128xf32, #tpu.memory_space<vmem>>, vector<1x1x128xf32>
    %131 = vector.shape_cast %130 : vector<1x1x128xf32> to vector<1x128xf32>
    %132 = vector.broadcast %131 : vector<1x128xf32> to vector<16x128xf32>
    %133 = arith.addf %129, %132 : vector<16x128xf32>
    %134 = arith.addf %52, %133 : vector<16x128xf32>
    %c0_46 = arith.constant 0 : index
    %c0_47 = arith.constant 0 : index
    %c0_48 = arith.constant 0 : index
    %135 = vector.load %arg12[%c0_46, %c0_47, %c0_48] : memref<2x1x128xf32, #tpu.memory_space<vmem>>, vector<1x1x128xf32>
    %136 = vector.shape_cast %135 : vector<1x1x128xf32> to vector<1x128xf32>
    %c0_49 = arith.constant 0 : index
    %c0_50 = arith.constant 0 : index
    %c0_51 = arith.constant 0 : index
    %137 = vector.load %arg13[%c0_49, %c0_50, %c0_51] : memref<2x1x128xf32, #tpu.memory_space<vmem>>, vector<1x1x128xf32>
    %138 = vector.shape_cast %137 : vector<1x1x128xf32> to vector<1x128xf32>
    %cst_52 = arith.constant dense<0.000000e+00> : vector<16xf32>
    %139 = vector.multi_reduction <add>, %134, %cst_52 [1] : vector<16x128xf32> to vector<16xf32>
    %140 = vector.shape_cast %139 : vector<16xf32> to vector<16x1xf32>
    %cst_53 = arith.constant 1.280000e+02 : f32
    %141 = vector.broadcast %cst_53 : f32 to vector<16x1xf32>
    %142 = arith.divf %140, %141 : vector<16x1xf32>
    %143 = vector.broadcast %142 : vector<16x1xf32> to vector<16x128xf32>
    %144 = arith.subf %134, %143 : vector<16x128xf32>
    %145 = arith.mulf %144, %144 : vector<16x128xf32>
    %cst_54 = arith.constant dense<0.000000e+00> : vector<16xf32>
    %146 = vector.multi_reduction <add>, %145, %cst_54 [1] : vector<16x128xf32> to vector<16xf32>
    %147 = vector.shape_cast %146 : vector<16xf32> to vector<16x1xf32>
    %cst_55 = arith.constant 1.280000e+02 : f32
    %148 = vector.broadcast %cst_55 : f32 to vector<16x1xf32>
    %149 = arith.divf %147, %148 : vector<16x1xf32>
    %150 = vector.broadcast %142 : vector<16x1xf32> to vector<16x128xf32>
    %151 = arith.subf %134, %150 : vector<16x128xf32>
    %cst_56 = arith.constant 9.99999996E-13 : f32
    %152 = vector.broadcast %cst_56 : f32 to vector<16x1xf32>
    %153 = arith.addf %149, %152 : vector<16x1xf32>
    %154 = math.rsqrt %153 : vector<16x1xf32>
    %155 = vector.broadcast %154 : vector<16x1xf32> to vector<16x128xf32>
    %156 = arith.mulf %151, %155 : vector<16x128xf32>
    %157 = vector.broadcast %136 : vector<1x128xf32> to vector<16x128xf32>
    %158 = arith.mulf %156, %157 : vector<16x128xf32>
    %159 = vector.broadcast %138 : vector<1x128xf32> to vector<16x128xf32>
    %160 = arith.addf %158, %159 : vector<16x128xf32>
    %161 = arith.truncf %160 : vector<16x128xf32> to vector<16x128xbf16>
    %c0_57 = arith.constant 0 : index
    %c0_58 = arith.constant 0 : index
    %c0_59 = arith.constant 0 : index
    %162 = vector.load %arg14[%c0_57, %c0_58, %c0_59] : memref<2x128x256xbf16, #tpu.memory_space<vmem>>, vector<1x128x256xbf16>
    %163 = vector.shape_cast %162 : vector<1x128x256xbf16> to vector<128x256xbf16>
    %cst_60 = arith.constant dense<0.000000e+00> : vector<16x256xf32>
    %164 = tpu.matmul %161, %163, %cst_60 {dimension_numbers = #tpu.dot_dimension_numbers<[1], [0], [0], [1], [0, 0, 1, 1], [], []>} : vector<16x128xbf16>, vector<128x256xbf16>, vector<16x256xf32> -> vector<16x256xf32>
    %c0_61 = arith.constant 0 : index
    %c0_62 = arith.constant 0 : index
    %c0_63 = arith.constant 0 : index
    %165 = vector.load %arg15[%c0_61, %c0_62, %c0_63] : memref<2x1x256xf32, #tpu.memory_space<vmem>>, vector<1x1x256xf32>
    %166 = vector.shape_cast %165 : vector<1x1x256xf32> to vector<1x256xf32>
    %167 = vector.broadcast %166 : vector<1x256xf32> to vector<16x256xf32>
    %168 = arith.addf %164, %167 : vector<16x256xf32>
    %cst_64 = arith.constant 5.000000e-01 : f32
    %169 = vector.broadcast %cst_64 : f32 to vector<16x256xf32>
    %170 = arith.mulf %169, %168 : vector<16x256xf32>
    %cst_65 = arith.constant 4.471500e-02 : f32
    %171 = vector.broadcast %cst_65 : f32 to vector<16x256xf32>
    %172 = arith.mulf %171, %168 : vector<16x256xf32>
    %173 = arith.mulf %172, %168 : vector<16x256xf32>
    %174 = arith.mulf %173, %168 : vector<16x256xf32>
    %175 = arith.addf %168, %174 : vector<16x256xf32>
    %cst_66 = arith.constant 0.797884583 : f32
    %176 = vector.broadcast %cst_66 : f32 to vector<16x256xf32>
    %177 = arith.mulf %176, %175 : vector<16x256xf32>
    %178 = math.tanh %177 : vector<16x256xf32>
    %cst_67 = arith.constant 1.000000e+00 : f32
    %179 = vector.broadcast %cst_67 : f32 to vector<16x256xf32>
    %180 = arith.addf %179, %178 : vector<16x256xf32>
    %181 = arith.mulf %170, %180 : vector<16x256xf32>
    %182 = arith.truncf %181 : vector<16x256xf32> to vector<16x256xbf16>
    %c0_68 = arith.constant 0 : index
    %c0_69 = arith.constant 0 : index
    %c0_70 = arith.constant 0 : index
    %183 = vector.load %arg16[%c0_68, %c0_69, %c0_70] : memref<2x256x128xbf16, #tpu.memory_space<vmem>>, vector<1x256x128xbf16>
    %184 = vector.shape_cast %183 : vector<1x256x128xbf16> to vector<256x128xbf16>
    %cst_71 = arith.constant dense<0.000000e+00> : vector<16x128xf32>
    %185 = tpu.matmul %182, %184, %cst_71 {dimension_numbers = #tpu.dot_dimension_numbers<[1], [0], [0], [1], [0, 0, 1, 1], [], []>} : vector<16x256xbf16>, vector<256x128xbf16>, vector<16x128xf32> -> vector<16x128xf32>
    %c0_72 = arith.constant 0 : index
    %c0_73 = arith.constant 0 : index
    %c0_74 = arith.constant 0 : index
    %186 = vector.load %arg17[%c0_72, %c0_73, %c0_74] : memref<2x1x128xf32, #tpu.memory_space<vmem>>, vector<1x1x128xf32>
    %187 = vector.shape_cast %186 : vector<1x1x128xf32> to vector<1x128xf32>
    %188 = vector.broadcast %187 : vector<1x128xf32> to vector<16x128xf32>
    %189 = arith.addf %185, %188 : vector<16x128xf32>
    %190 = arith.addf %160, %189 : vector<16x128xf32>
    %c0_75 = arith.constant 0 : index
    %c0_76 = arith.constant 0 : index
    %c0_77 = arith.constant 0 : index
    %191 = vector.load %arg18[%c0_75, %c0_76, %c0_77] : memref<2x1x128xf32, #tpu.memory_space<vmem>>, vector<1x1x128xf32>
    %192 = vector.shape_cast %191 : vector<1x1x128xf32> to vector<1x128xf32>
    %c0_78 = arith.constant 0 : index
    %c0_79 = arith.constant 0 : index
    %c0_80 = arith.constant 0 : index
    %193 = vector.load %arg19[%c0_78, %c0_79, %c0_80] : memref<2x1x128xf32, #tpu.memory_space<vmem>>, vector<1x1x128xf32>
    %194 = vector.shape_cast %193 : vector<1x1x128xf32> to vector<1x128xf32>
    %cst_81 = arith.constant dense<0.000000e+00> : vector<16xf32>
    %195 = vector.multi_reduction <add>, %190, %cst_81 [1] : vector<16x128xf32> to vector<16xf32>
    %196 = vector.shape_cast %195 : vector<16xf32> to vector<16x1xf32>
    %cst_82 = arith.constant 1.280000e+02 : f32
    %197 = vector.broadcast %cst_82 : f32 to vector<16x1xf32>
    %198 = arith.divf %196, %197 : vector<16x1xf32>
    %199 = vector.broadcast %198 : vector<16x1xf32> to vector<16x128xf32>
    %200 = arith.subf %190, %199 : vector<16x128xf32>
    %201 = arith.mulf %200, %200 : vector<16x128xf32>
    %cst_83 = arith.constant dense<0.000000e+00> : vector<16xf32>
    %202 = vector.multi_reduction <add>, %201, %cst_83 [1] : vector<16x128xf32> to vector<16xf32>
    %203 = vector.shape_cast %202 : vector<16xf32> to vector<16x1xf32>
    %cst_84 = arith.constant 1.280000e+02 : f32
    %204 = vector.broadcast %cst_84 : f32 to vector<16x1xf32>
    %205 = arith.divf %203, %204 : vector<16x1xf32>
    %206 = vector.broadcast %198 : vector<16x1xf32> to vector<16x128xf32>
    %207 = arith.subf %190, %206 : vector<16x128xf32>
    %cst_85 = arith.constant 9.99999996E-13 : f32
    %208 = vector.broadcast %cst_85 : f32 to vector<16x1xf32>
    %209 = arith.addf %205, %208 : vector<16x1xf32>
    %210 = math.rsqrt %209 : vector<16x1xf32>
    %211 = vector.broadcast %210 : vector<16x1xf32> to vector<16x128xf32>
    %212 = arith.mulf %207, %211 : vector<16x128xf32>
    %213 = vector.broadcast %192 : vector<1x128xf32> to vector<16x128xf32>
    %214 = arith.mulf %212, %213 : vector<16x128xf32>
    %215 = vector.broadcast %194 : vector<1x128xf32> to vector<16x128xf32>
    %216 = arith.addf %214, %215 : vector<16x128xf32>
    %217 = arith.truncf %216 : vector<16x128xf32> to vector<16x128xbf16>
    %c1 = arith.constant 1 : index
    %c0_86 = arith.constant 0 : index
    %c0_87 = arith.constant 0 : index
    %218 = vector.load %arg8[%c1, %c0_86, %c0_87] : memref<2x128x384xbf16, #tpu.memory_space<vmem>>, vector<1x128x384xbf16>
    %219 = vector.shape_cast %218 : vector<1x128x384xbf16> to vector<128x384xbf16>
    %cst_88 = arith.constant dense<0.000000e+00> : vector<16x384xf32>
    %220 = tpu.matmul %217, %219, %cst_88 {dimension_numbers = #tpu.dot_dimension_numbers<[1], [0], [0], [1], [0, 0, 1, 1], [], []>} : vector<16x128xbf16>, vector<128x384xbf16>, vector<16x384xf32> -> vector<16x384xf32>
    %c1_89 = arith.constant 1 : index
    %c0_90 = arith.constant 0 : index
    %c0_91 = arith.constant 0 : index
    %221 = vector.load %arg9[%c1_89, %c0_90, %c0_91] : memref<2x1x384xf32, #tpu.memory_space<vmem>>, vector<1x1x384xf32>
    %222 = vector.shape_cast %221 : vector<1x1x384xf32> to vector<1x384xf32>
    %223 = vector.broadcast %222 : vector<1x384xf32> to vector<16x384xf32>
    %224 = arith.addf %220, %223 : vector<16x384xf32>
    %225 = vector.extract_strided_slice %224 {offsets = [0, 0], sizes = [16, 128], strides = [1, 1]} : vector<16x384xf32> to vector<16x128xf32>
    %226 = vector.extract_strided_slice %225 {offsets = [0, 0], sizes = [16, 32], strides = [1, 1]} : vector<16x128xf32> to vector<16x32xf32>
    %227 = vector.extract_strided_slice %225 {offsets = [0, 32], sizes = [16, 32], strides = [1, 1]} : vector<16x128xf32> to vector<16x32xf32>
    %228 = vector.extract_strided_slice %225 {offsets = [0, 64], sizes = [16, 32], strides = [1, 1]} : vector<16x128xf32> to vector<16x32xf32>
    %229 = vector.extract_strided_slice %225 {offsets = [0, 96], sizes = [16, 32], strides = [1, 1]} : vector<16x128xf32> to vector<16x32xf32>
    %230 = vector.shape_cast %226 : vector<16x32xf32> to vector<1x16x32xf32>
    %231 = vector.shape_cast %227 : vector<16x32xf32> to vector<1x16x32xf32>
    %232 = vector.shape_cast %228 : vector<16x32xf32> to vector<1x16x32xf32>
    %233 = vector.shape_cast %229 : vector<16x32xf32> to vector<1x16x32xf32>
    %234 = tpu.concatenate %230, %231, %232, %233 in 0 : vector<1x16x32xf32>, vector<1x16x32xf32>, vector<1x16x32xf32>, vector<1x16x32xf32> -> vector<4x16x32xf32>
    %235 = vector.shape_cast %234 : vector<4x16x32xf32> to vector<8x8x32xf32>
    %236 = arith.truncf %235 : vector<8x8x32xf32> to vector<8x8x32xbf16>
    %237 = vector.extract_strided_slice %224 {offsets = [0, 128], sizes = [16, 128], strides = [1, 1]} : vector<16x384xf32> to vector<16x128xf32>
    %238 = vector.extract_strided_slice %237 {offsets = [0, 0], sizes = [16, 32], strides = [1, 1]} : vector<16x128xf32> to vector<16x32xf32>
    %239 = vector.extract_strided_slice %237 {offsets = [0, 32], sizes = [16, 32], strides = [1, 1]} : vector<16x128xf32> to vector<16x32xf32>
    %240 = vector.extract_strided_slice %237 {offsets = [0, 64], sizes = [16, 32], strides = [1, 1]} : vector<16x128xf32> to vector<16x32xf32>
    %241 = vector.extract_strided_slice %237 {offsets = [0, 96], sizes = [16, 32], strides = [1, 1]} : vector<16x128xf32> to vector<16x32xf32>
    %242 = vector.shape_cast %238 : vector<16x32xf32> to vector<1x16x32xf32>
    %243 = vector.shape_cast %239 : vector<16x32xf32> to vector<1x16x32xf32>
    %244 = vector.shape_cast %240 : vector<16x32xf32> to vector<1x16x32xf32>
    %245 = vector.shape_cast %241 : vector<16x32xf32> to vector<1x16x32xf32>
    %246 = tpu.concatenate %242, %243, %244, %245 in 0 : vector<1x16x32xf32>, vector<1x16x32xf32>, vector<1x16x32xf32>, vector<1x16x32xf32> -> vector<4x16x32xf32>
    %247 = vector.shape_cast %246 : vector<4x16x32xf32> to vector<8x8x32xf32>
    %248 = arith.truncf %247 : vector<8x8x32xf32> to vector<8x8x32xbf16>
    %249 = vector.extract_strided_slice %224 {offsets = [0, 256], sizes = [16, 128], strides = [1, 1]} : vector<16x384xf32> to vector<16x128xf32>
    %250 = vector.extract_strided_slice %249 {offsets = [0, 0], sizes = [16, 32], strides = [1, 1]} : vector<16x128xf32> to vector<16x32xf32>
    %251 = vector.extract_strided_slice %249 {offsets = [0, 32], sizes = [16, 32], strides = [1, 1]} : vector<16x128xf32> to vector<16x32xf32>
    %252 = vector.extract_strided_slice %249 {offsets = [0, 64], sizes = [16, 32], strides = [1, 1]} : vector<16x128xf32> to vector<16x32xf32>
    %253 = vector.extract_strided_slice %249 {offsets = [0, 96], sizes = [16, 32], strides = [1, 1]} : vector<16x128xf32> to vector<16x32xf32>
    %254 = vector.shape_cast %250 : vector<16x32xf32> to vector<1x16x32xf32>
    %255 = vector.shape_cast %251 : vector<16x32xf32> to vector<1x16x32xf32>
    %256 = vector.shape_cast %252 : vector<16x32xf32> to vector<1x16x32xf32>
    %257 = vector.shape_cast %253 : vector<16x32xf32> to vector<1x16x32xf32>
    %258 = tpu.concatenate %254, %255, %256, %257 in 0 : vector<1x16x32xf32>, vector<1x16x32xf32>, vector<1x16x32xf32>, vector<1x16x32xf32> -> vector<4x16x32xf32>
    %259 = vector.shape_cast %258 : vector<4x16x32xf32> to vector<8x8x32xf32>
    %260 = arith.truncf %259 : vector<8x8x32xf32> to vector<8x8x32xbf16>
    "tpu.trace_start"() <{level = 10 : i32, message = "bqd,bkd->bqk"}> : () -> ()
    %cst_92 = arith.constant dense<0.000000e+00> : vector<8x8x8xf32>
    %261 = tpu.matmul %236, %248, %cst_92 {dimension_numbers = #tpu.dot_dimension_numbers<[2], [2], [1], [1], [0, 0, 0, 1, 1, 1], [0], [0]>} : vector<8x8x32xbf16>, vector<8x8x32xbf16>, vector<8x8x8xf32> -> vector<8x8x8xf32>
    "tpu.trace_stop"() : () -> ()
    %cst_93 = arith.constant 0.176776692 : f32
    %262 = vector.broadcast %cst_93 : f32 to vector<8x8x8xf32>
    %263 = arith.mulf %261, %262 : vector<8x8x8xf32>
    %264 = arith.addf %263, %63 : vector<8x8x8xf32>
    %cst_94 = arith.constant dense<0xFF800000> : vector<8x8xf32>
    %265 = vector.multi_reduction <maximumf>, %264, %cst_94 [2] : vector<8x8x8xf32> to vector<8x8xf32>
    %266 = vector.shape_cast %265 : vector<8x8xf32> to vector<8x8x1xf32>
    %267 = vector.broadcast %266 : vector<8x8x1xf32> to vector<8x8x8xf32>
    %268 = arith.subf %264, %267 : vector<8x8x8xf32>
    %269 = math.exp %268 : vector<8x8x8xf32>
    %cst_95 = arith.constant dense<0.000000e+00> : vector<8x8xf32>
    %270 = vector.multi_reduction <add>, %269, %cst_95 [2] : vector<8x8x8xf32> to vector<8x8xf32>
    %271 = vector.shape_cast %270 : vector<8x8xf32> to vector<8x8x1xf32>
    %272 = tpu.reciprocal %271 {approx = true} : vector<8x8x1xf32> -> vector<8x8x1xf32>
    %273 = vector.broadcast %272 : vector<8x8x1xf32> to vector<8x8x8xf32>
    %274 = arith.mulf %269, %273 : vector<8x8x8xf32>
    %275 = arith.truncf %274 : vector<8x8x8xf32> to vector<8x8x8xbf16>
    "tpu.trace_start"() <{level = 10 : i32, message = "bqk,bkd->bqd"}> : () -> ()
    %cst_96 = arith.constant dense<0.000000e+00> : vector<8x8x32xf32>
    %276 = tpu.matmul %275, %260, %cst_96 {dimension_numbers = #tpu.dot_dimension_numbers<[2], [1], [1], [2], [0, 0, 0, 1, 1, 2], [0], [0]>} : vector<8x8x8xbf16>, vector<8x8x32xbf16>, vector<8x8x32xf32> -> vector<8x8x32xf32>
    "tpu.trace_stop"() : () -> ()
    %277 = vector.shape_cast %276 : vector<8x8x32xf32> to vector<4x16x32xf32>
    %278 = arith.truncf %277 : vector<4x16x32xf32> to vector<4x16x32xbf16>
    %c1_97 = arith.constant 1 : index
    %c0_98 = arith.constant 0 : index
    %c0_99 = arith.constant 0 : index
    %c0_100 = arith.constant 0 : index
    %279 = vector.load %arg10[%c1_97, %c0_98, %c0_99, %c0_100] : memref<2x4x32x128xbf16, #tpu.memory_space<vmem>>, vector<1x4x32x128xbf16>
    %280 = vector.shape_cast %279 : vector<1x4x32x128xbf16> to vector<4x32x128xbf16>
    "tpu.trace_start"() <{level = 10 : i32, message = "hmd,hdk->hmk"}> : () -> ()
    %cst_101 = arith.constant dense<0.000000e+00> : vector<4x16x128xf32>
    %281 = tpu.matmul %278, %280, %cst_101 {dimension_numbers = #tpu.dot_dimension_numbers<[2], [1], [1], [2], [0, 0, 0, 1, 1, 2], [0], [0]>} : vector<4x16x32xbf16>, vector<4x32x128xbf16>, vector<4x16x128xf32> -> vector<4x16x128xf32>
    "tpu.trace_stop"() : () -> ()
    %cst_102 = arith.constant dense<0.000000e+00> : vector<16x128xf32>
    %282 = vector.multi_reduction <add>, %281, %cst_102 [0] : vector<4x16x128xf32> to vector<16x128xf32>
    %c1_103 = arith.constant 1 : index
    %c0_104 = arith.constant 0 : index
    %c0_105 = arith.constant 0 : index
    %283 = vector.load %arg11[%c1_103, %c0_104, %c0_105] : memref<2x1x128xf32, #tpu.memory_space<vmem>>, vector<1x1x128xf32>
    %284 = vector.shape_cast %283 : vector<1x1x128xf32> to vector<1x128xf32>
    %285 = vector.broadcast %284 : vector<1x128xf32> to vector<16x128xf32>
    %286 = arith.addf %282, %285 : vector<16x128xf32>
    %287 = arith.addf %216, %286 : vector<16x128xf32>
    %c1_106 = arith.constant 1 : index
    %c0_107 = arith.constant 0 : index
    %c0_108 = arith.constant 0 : index
    %288 = vector.load %arg12[%c1_106, %c0_107, %c0_108] : memref<2x1x128xf32, #tpu.memory_space<vmem>>, vector<1x1x128xf32>
    %289 = vector.shape_cast %288 : vector<1x1x128xf32> to vector<1x128xf32>
    %c1_109 = arith.constant 1 : index
    %c0_110 = arith.constant 0 : index
    %c0_111 = arith.constant 0 : index
    %290 = vector.load %arg13[%c1_109, %c0_110, %c0_111] : memref<2x1x128xf32, #tpu.memory_space<vmem>>, vector<1x1x128xf32>
    %291 = vector.shape_cast %290 : vector<1x1x128xf32> to vector<1x128xf32>
    %cst_112 = arith.constant dense<0.000000e+00> : vector<16xf32>
    %292 = vector.multi_reduction <add>, %287, %cst_112 [1] : vector<16x128xf32> to vector<16xf32>
    %293 = vector.shape_cast %292 : vector<16xf32> to vector<16x1xf32>
    %cst_113 = arith.constant 1.280000e+02 : f32
    %294 = vector.broadcast %cst_113 : f32 to vector<16x1xf32>
    %295 = arith.divf %293, %294 : vector<16x1xf32>
    %296 = vector.broadcast %295 : vector<16x1xf32> to vector<16x128xf32>
    %297 = arith.subf %287, %296 : vector<16x128xf32>
    %298 = arith.mulf %297, %297 : vector<16x128xf32>
    %cst_114 = arith.constant dense<0.000000e+00> : vector<16xf32>
    %299 = vector.multi_reduction <add>, %298, %cst_114 [1] : vector<16x128xf32> to vector<16xf32>
    %300 = vector.shape_cast %299 : vector<16xf32> to vector<16x1xf32>
    %cst_115 = arith.constant 1.280000e+02 : f32
    %301 = vector.broadcast %cst_115 : f32 to vector<16x1xf32>
    %302 = arith.divf %300, %301 : vector<16x1xf32>
    %303 = vector.broadcast %295 : vector<16x1xf32> to vector<16x128xf32>
    %304 = arith.subf %287, %303 : vector<16x128xf32>
    %cst_116 = arith.constant 9.99999996E-13 : f32
    %305 = vector.broadcast %cst_116 : f32 to vector<16x1xf32>
    %306 = arith.addf %302, %305 : vector<16x1xf32>
    %307 = math.rsqrt %306 : vector<16x1xf32>
    %308 = vector.broadcast %307 : vector<16x1xf32> to vector<16x128xf32>
    %309 = arith.mulf %304, %308 : vector<16x128xf32>
    %310 = vector.broadcast %289 : vector<1x128xf32> to vector<16x128xf32>
    %311 = arith.mulf %309, %310 : vector<16x128xf32>
    %312 = vector.broadcast %291 : vector<1x128xf32> to vector<16x128xf32>
    %313 = arith.addf %311, %312 : vector<16x128xf32>
    %314 = arith.truncf %313 : vector<16x128xf32> to vector<16x128xbf16>
    %c1_117 = arith.constant 1 : index
    %c0_118 = arith.constant 0 : index
    %c0_119 = arith.constant 0 : index
    %315 = vector.load %arg14[%c1_117, %c0_118, %c0_119] : memref<2x128x256xbf16, #tpu.memory_space<vmem>>, vector<1x128x256xbf16>
    %316 = vector.shape_cast %315 : vector<1x128x256xbf16> to vector<128x256xbf16>
    %cst_120 = arith.constant dense<0.000000e+00> : vector<16x256xf32>
    %317 = tpu.matmul %314, %316, %cst_120 {dimension_numbers = #tpu.dot_dimension_numbers<[1], [0], [0], [1], [0, 0, 1, 1], [], []>} : vector<16x128xbf16>, vector<128x256xbf16>, vector<16x256xf32> -> vector<16x256xf32>
    %c1_121 = arith.constant 1 : index
    %c0_122 = arith.constant 0 : index
    %c0_123 = arith.constant 0 : index
    %318 = vector.load %arg15[%c1_121, %c0_122, %c0_123] : memref<2x1x256xf32, #tpu.memory_space<vmem>>, vector<1x1x256xf32>
    %319 = vector.shape_cast %318 : vector<1x1x256xf32> to vector<1x256xf32>
    %320 = vector.broadcast %319 : vector<1x256xf32> to vector<16x256xf32>
    %321 = arith.addf %317, %320 : vector<16x256xf32>
    %cst_124 = arith.constant 5.000000e-01 : f32
    %322 = vector.broadcast %cst_124 : f32 to vector<16x256xf32>
    %323 = arith.mulf %322, %321 : vector<16x256xf32>
    %cst_125 = arith.constant 4.471500e-02 : f32
    %324 = vector.broadcast %cst_125 : f32 to vector<16x256xf32>
    %325 = arith.mulf %324, %321 : vector<16x256xf32>
    %326 = arith.mulf %325, %321 : vector<16x256xf32>
    %327 = arith.mulf %326, %321 : vector<16x256xf32>
    %328 = arith.addf %321, %327 : vector<16x256xf32>
    %cst_126 = arith.constant 0.797884583 : f32
    %329 = vector.broadcast %cst_126 : f32 to vector<16x256xf32>
    %330 = arith.mulf %329, %328 : vector<16x256xf32>
    %331 = math.tanh %330 : vector<16x256xf32>
    %cst_127 = arith.constant 1.000000e+00 : f32
    %332 = vector.broadcast %cst_127 : f32 to vector<16x256xf32>
    %333 = arith.addf %332, %331 : vector<16x256xf32>
    %334 = arith.mulf %323, %333 : vector<16x256xf32>
    %335 = arith.truncf %334 : vector<16x256xf32> to vector<16x256xbf16>
    %c1_128 = arith.constant 1 : index
    %c0_129 = arith.constant 0 : index
    %c0_130 = arith.constant 0 : index
    %336 = vector.load %arg16[%c1_128, %c0_129, %c0_130] : memref<2x256x128xbf16, #tpu.memory_space<vmem>>, vector<1x256x128xbf16>
    %337 = vector.shape_cast %336 : vector<1x256x128xbf16> to vector<256x128xbf16>
    %cst_131 = arith.constant dense<0.000000e+00> : vector<16x128xf32>
    %338 = tpu.matmul %335, %337, %cst_131 {dimension_numbers = #tpu.dot_dimension_numbers<[1], [0], [0], [1], [0, 0, 1, 1], [], []>} : vector<16x256xbf16>, vector<256x128xbf16>, vector<16x128xf32> -> vector<16x128xf32>
    %c1_132 = arith.constant 1 : index
    %c0_133 = arith.constant 0 : index
    %c0_134 = arith.constant 0 : index
    %339 = vector.load %arg17[%c1_132, %c0_133, %c0_134] : memref<2x1x128xf32, #tpu.memory_space<vmem>>, vector<1x1x128xf32>
    %340 = vector.shape_cast %339 : vector<1x1x128xf32> to vector<1x128xf32>
    %341 = vector.broadcast %340 : vector<1x128xf32> to vector<16x128xf32>
    %342 = arith.addf %338, %341 : vector<16x128xf32>
    %343 = arith.addf %313, %342 : vector<16x128xf32>
    %c1_135 = arith.constant 1 : index
    %c0_136 = arith.constant 0 : index
    %c0_137 = arith.constant 0 : index
    %344 = vector.load %arg18[%c1_135, %c0_136, %c0_137] : memref<2x1x128xf32, #tpu.memory_space<vmem>>, vector<1x1x128xf32>
    %345 = vector.shape_cast %344 : vector<1x1x128xf32> to vector<1x128xf32>
    %c1_138 = arith.constant 1 : index
    %c0_139 = arith.constant 0 : index
    %c0_140 = arith.constant 0 : index
    %346 = vector.load %arg19[%c1_138, %c0_139, %c0_140] : memref<2x1x128xf32, #tpu.memory_space<vmem>>, vector<1x1x128xf32>
    %347 = vector.shape_cast %346 : vector<1x1x128xf32> to vector<1x128xf32>
    %cst_141 = arith.constant dense<0.000000e+00> : vector<16xf32>
    %348 = vector.multi_reduction <add>, %343, %cst_141 [1] : vector<16x128xf32> to vector<16xf32>
    %349 = vector.shape_cast %348 : vector<16xf32> to vector<16x1xf32>
    %cst_142 = arith.constant 1.280000e+02 : f32
    %350 = vector.broadcast %cst_142 : f32 to vector<16x1xf32>
    %351 = arith.divf %349, %350 : vector<16x1xf32>
    %352 = vector.broadcast %351 : vector<16x1xf32> to vector<16x128xf32>
    %353 = arith.subf %343, %352 : vector<16x128xf32>
    %354 = arith.mulf %353, %353 : vector<16x128xf32>
    %cst_143 = arith.constant dense<0.000000e+00> : vector<16xf32>
    %355 = vector.multi_reduction <add>, %354, %cst_143 [1] : vector<16x128xf32> to vector<16xf32>
    %356 = vector.shape_cast %355 : vector<16xf32> to vector<16x1xf32>
    %cst_144 = arith.constant 1.280000e+02 : f32
    %357 = vector.broadcast %cst_144 : f32 to vector<16x1xf32>
    %358 = arith.divf %356, %357 : vector<16x1xf32>
    %359 = vector.broadcast %351 : vector<16x1xf32> to vector<16x128xf32>
    %360 = arith.subf %343, %359 : vector<16x128xf32>
    %cst_145 = arith.constant 9.99999996E-13 : f32
    %361 = vector.broadcast %cst_145 : f32 to vector<16x1xf32>
    %362 = arith.addf %358, %361 : vector<16x1xf32>
    %363 = math.rsqrt %362 : vector<16x1xf32>
    %364 = vector.broadcast %363 : vector<16x1xf32> to vector<16x128xf32>
    %365 = arith.mulf %360, %364 : vector<16x128xf32>
    %366 = vector.broadcast %345 : vector<1x128xf32> to vector<16x128xf32>
    %367 = arith.mulf %365, %366 : vector<16x128xf32>
    %368 = vector.broadcast %347 : vector<1x128xf32> to vector<16x128xf32>
    %369 = arith.addf %367, %368 : vector<16x128xf32>
    %370 = vector.shape_cast %369 : vector<16x128xf32> to vector<2x8x128xf32>
    %371 = vector.extract_strided_slice %370 {offsets = [0, 0, 0], sizes = [2, 1, 128], strides = [1, 1, 1]} : vector<2x8x128xf32> to vector<2x1x128xf32>
    %372 = vector.shape_cast %371 : vector<2x1x128xf32> to vector<2x128xf32>
    %373 = arith.truncf %372 : vector<2x128xf32> to vector<2x128xbf16>
    %c0_146 = arith.constant 0 : index
    %c0_147 = arith.constant 0 : index
    %374 = vector.load %arg20[%c0_146, %c0_147] : memref<128x128xbf16, #tpu.memory_space<vmem>>, vector<128x128xbf16>
    %cst_148 = arith.constant dense<0.000000e+00> : vector<2x128xf32>
    %375 = tpu.matmul %373, %374, %cst_148 {dimension_numbers = #tpu.dot_dimension_numbers<[1], [0], [0], [1], [0, 0, 1, 1], [], []>} : vector<2x128xbf16>, vector<128x128xbf16>, vector<2x128xf32> -> vector<2x128xf32>
    %c0_149 = arith.constant 0 : index
    %c0_150 = arith.constant 0 : index
    %376 = vector.load %arg21[%c0_149, %c0_150] : memref<1x128xf32, #tpu.memory_space<vmem>>, vector<1x128xf32>
    %377 = vector.broadcast %376 : vector<1x128xf32> to vector<2x128xf32>
    %378 = arith.addf %375, %377 : vector<2x128xf32>
    %379 = vector.extract_strided_slice %378 {offsets = [0, 0], sizes = [2, 4], strides = [1, 1]} : vector<2x128xf32> to vector<2x4xf32>
    %c0_151 = arith.constant 0 : index
    %c0_152 = arith.constant 0 : index
    %380 = vector.load %arg22[%c0_151, %c0_152] : memref<2x4xf32, #tpu.memory_space<vmem>>, vector<2x4xf32>
    tpu.vector_store %arg22[%c0_151, %c0_152], %379 {strides = array<i32>} : memref<2x4xf32, #tpu.memory_space<vmem>>, vector<2x4xf32>,
    return
  }
}

</mosaic_0001>

<bundles_post_ra>
// kernel: bert_class_forward.1
= control target key start
LH: loop header
LB: loop body
LE: loop exit
PB: predicated region body
PF: predicated region fallthrough
CT: control target
= control target key end

     0   :  { %s4839_s0 = inlined_call_operand.vmem [shape: s32[16,1], index: 0, kind: input, shape index: {}]   ;;  %s4840_s1 = inlined_call_operand.vmem [shape: s32[16,1], index: 1, kind: input, shape index: {}]   ;;  %s4841_s2 = inlined_call_operand.vmem [shape: f32[2,1,8], index: 2, kind: input, shape index: {}]   ;;  %s4842_s3 = inlined_call_operand.hbm [shape: f32[128,128], index: 3, kind: input, shape index: {}]   ;;  %s4843_s4 = inlined_call_operand.vmem [shape: f32[2,128], index: 4, kind: input, shape index: {}]   ;;  %s4844_s5 = inlined_call_operand.vmem [shape: f32[16,128], index: 5, kind: input, shape index: {}]   ;;  %s4845_s6 = inlined_call_operand.vmem [shape: f32[1,128], index: 6, kind: input, shape index: {}]   ;;  %s4846_s7 = inlined_call_operand.hbm [shape: f32[1,128], index: 7, kind: input, shape index: {}]   ;;  %s4847_s8 = inlined_call_operand.hbm [shape: bf16[2,128,384], index: 8, kind: input, shape index: {}]   ;;  %s4848_s9 = inlined_call_operand.vmem [shape: f32[2,1,384], index: 9, kind: input, shape index: {}]   ;;  %s4849_s10 = inlined_call_operand.hbm [shape: bf16[2,4,32,128], index: 10, kind: input, shape index: {}]   ;;  %s4850_s11 = inlined_call_operand.vmem [shape: f32[2,1,128], index: 11, kind: input, shape index: {}]   ;;  %s4851_s12 = inlined_call_operand.vmem [shape: f32[2,1,128], index: 12, kind: input, shape index: {}]   ;;  %s4852_s13 = inlined_call_operand.vmem [shape: f32[2,1,128], index: 13, kind: input, shape index: {}]   ;;  %s4853_s14 = inlined_call_operand.hbm [shape: bf16[2,128,256], index: 14, kind: input, shape index: {}]   ;;  %s4854_s15 = inlined_call_operand.vmem [shape: f32[2,1,256], index: 15, kind: input, shape index: {}]   ;;  %s4855_s16 = inlined_call_operand.hbm [shape: bf16[2,256,128], index: 16, kind: input, shape index: {}]   ;;  %s4856_s17 = inlined_call_operand.vmem [shape: f32[2,1,128], index: 17, kind: input, shape index: {}]   ;;  %s4857_s18 = inlined_call_operand.vmem [shape: f32[2,1,128], index: 18, kind: input, shape index: {}]   ;;  %s4858_s19 = inlined_call_operand.vmem [shape: f32[2,1,128], index: 19, kind: input, shape index: {}]   ;;  %s4859_s20 = inlined_call_operand.hbm [shape: bf16[128,128], index: 20, kind: input, shape index: {}]   ;;  %s4860_s21 = inlined_call_operand.hbm [shape: f32[1,128], index: 21, kind: input, shape index: {}]   ;;  %s4861_s22 = inlined_call_operand.hbm [shape: f32[2,4], index: 22, kind: output, shape index: {}]  }
   0x1   :  { %4867 = sst [smem:[#allocation23_spill]] %s4839_s0 }
   0x2   :  { %4868 = sst [smem:[#allocation24_spill]] %s4840_s1 }
   0x3   :  { %4869 = sst [smem:[#allocation25_spill]] %s4841_s2 }
   0x4   :  { %4870 = sst [smem:[#allocation26_spill]] %s4842_s3 }
   0x5   :  { %4871 = sst [smem:[#allocation27_spill]] %s4843_s4 }
   0x6   :  { %4872 = sst [smem:[#allocation28_spill]] %s4844_s5 }
   0x7   :  { %4873 = sst [smem:[#allocation29_spill]] %s4845_s6 }
   0x8   :  { %27 = vsyncpa [#allocation3], 0 }
   0x9   :  { %28 = vsyncpa [#allocation6], 0 }
   0xa   :  { %29 = vsyncpa [#allocation9], 0 }
   0xb   :  { %30 = vsyncpa [#allocation12], 0 }
   0xc   :  { %31 = vsyncpa [#allocation15], 0  ;;  %s63_s29 = sshll.u32 %s4846_s7, 4  ;;  %s64_s29 = int_to_ptr.hbm [resolvable:$true] %s63_s29 }
   0xd   :  { %32 = vsyncpa [#allocation4], 0  ;;  %s4293_s30 = smov [#allocation5]   ;;  %s88_s1 = sshll.u32 %s4849_s10, 4  ;;  %s89_s1 = int_to_ptr.hbm [resolvable:$true] %s88_s1 }
   0xe   :  { %s65_s4 = sshll.u32 %s4293_s30, 4  ;;  %s4294_s5 = smov [#allocation8]   ;;  %s66_s4 = int_to_ptr.vmem [resolvable:$true] %s65_s4 }
   0xf   :  { %68 = dma.hbm_to_vmem [thread:$0]  %s64_s29, 16, %s66_s4, [#allocation6]  }
  0x10   :  { %s90_s24 = sshll.u32 %s4294_s5, 4  ;;  %s4865_s6 = smov 64   ;;  %s91_s24 = int_to_ptr.vmem [resolvable:$true] %s90_s24 }
  0x11   :  { %s4296_s25 = smov 4   ;;  %s122_s2 = sshll.u32 %s4855_s16, 4  ;;  %s123_s2 = int_to_ptr.hbm [resolvable:$true] %s122_s2 }
  0x12   :  { %96 = dma.hbm_to_vmem [thread:$0]  %s89_s1, 2048, %s91_s24, [#allocation9], %s4865_s6, %s4865_s6, %s4296_s25  }
  0x13   :  { %s4297_s27 = smov [#allocation11]   ;;  %s4874_s29 = sld [smem:[#allocation26_spill]] }
  0x14   :  { %s124_s3 = sshll.u32 %s4297_s27, 4  ;;  %s4298_s4 = smov [#allocation2]   ;;  %s125_s3 = int_to_ptr.vmem [resolvable:$true] %s124_s3 }
  0x15   :  { %130 = dma.hbm_to_vmem [thread:$0]  %s123_s2, 4096, %s125_s3, [#allocation12], %s4865_s6, %s4865_s6, %s4296_s25  }
  0x16   :  { %s45_s0 = sshll.u32 %s4298_s4, 4  ;;  %s4299_s23 = smov 128   ;;  %s46_s0 = int_to_ptr.vmem [resolvable:$true] %s45_s0 }
  0x17   :  { %s4300_s1 = smov 8   ;;  %s73_s24 = sshll.u32 %s4847_s8, 4  ;;  %s74_s24 = int_to_ptr.hbm [resolvable:$true] %s73_s24 }
  0x18   :  { %s4301_s7 = smov [#allocation7]   ;;  %s107_s28 = sshll.u32 %s4853_s14, 4  ;;  %s108_s28 = int_to_ptr.hbm [resolvable:$true] %s107_s28 }
  0x19   :  { %s43_s30 = sshll.u32 %s4874_s29, 4  ;;  %s75_s26 = sshll.u32 %s4301_s7, 4  ;;  %s44_s30 = int_to_ptr.hbm [resolvable:$true] %s43_s30  ;;  %s76_s26 = int_to_ptr.vmem [resolvable:$true] %s75_s26 }
  0x1a   :  { %51 = dma.hbm_to_vmem [thread:$0]  %s44_s30, 2048, %s46_s0, [#allocation3], %s4299_s23, %s4299_s23, %s4300_s1  }
  0x1b   :  { %s4302_s2 = smov 192   ;;  %s4303_s3 = smov 12  }
  0x1c   :  { %81 = dma.hbm_to_vmem [thread:$0]  %s74_s24, 6144, %s76_s26, [#allocation6], %s4302_s2, %s4302_s2, %s4303_s3  }
  0x1d   :  { %s4304_s29 = smov [#allocation10]   ;;  %s141_s0 = sshll.u32 %s4859_s20, 4  ;;  %s142_s0 = int_to_ptr.hbm [resolvable:$true] %s141_s0 }
  0x1e   :  { %s109_s4 = sshll.u32 %s4304_s29, 4  ;;  %s155_s5 = sshll.u32 %s4860_s21, 4  ;;  %s110_s4 = int_to_ptr.vmem [resolvable:$true] %s109_s4  ;;  %s156_s5 = int_to_ptr.hbm [resolvable:$true] %s155_s5 }
  0x1f   :  { %115 = dma.hbm_to_vmem [thread:$0]  %s108_s28, 4096, %s110_s4, [#allocation9], %s4299_s23, %s4299_s23, %s4300_s1  }
  0x20   :  { %s4305_s7 = smov [#allocation13]   ;;  %s4875_s14 = smov 64  }
  0x21   :  { %s143_s27 = sshll.u32 %s4305_s7, 4  ;;  %s4306_s24 = smov [#allocation14]   ;;  %s144_s27 = int_to_ptr.vmem [resolvable:$true] %s143_s27 }
  0x22   :  { %149 = dma.hbm_to_vmem [thread:$0]  %s142_s0, 1024, %s144_s27, [#allocation12], %s4875_s14, %s4875_s14, %s4296_s25  }
  0x23   :  { %s157_s26 = sshll.u32 %s4306_s24, 4  ;;  %s158_s26 = int_to_ptr.vmem [resolvable:$true] %s157_s26 }
  0x24   :  { %160 = dma.hbm_to_vmem [thread:$0]  %s156_s5, 16, %s158_s26, [#allocation15]  }
  0x25   :  { %4281 = dma.done.wait [#allocation3], 2048  }
  0x26   :  { %4282 = vsyncadd [#allocation3], 4294965248 }
  0x27   :  { %4283 = dma.done.wait [#allocation6], 6160  }
  0x28   :  { %4284 = vsyncadd [#allocation6], 4294961136 }
  0x29   :  { %4285 = dma.done.wait [#allocation9], 6144  }
  0x2a   :  { %4286 = vsyncadd [#allocation9], 4294961152 }
  0x2b   :  { %4287 = dma.done.wait [#allocation12], 5120  }
  0x2c   :  { %4288 = vsyncadd [#allocation12], 4294962176 }
  0x2d   :  { %4289 = dma.done.wait [#allocation15], 16  }
  0x2e   :  { %4290 = vsyncadd [#allocation15], 4294967280  ;;  %v4307_v0 = vmov 0   ;;  %s4876_s6 = sld [smem:[#allocation23_spill]]  ;;  %v223_v2 = vld [vmem:[#allocation2 + $0x78] sm:$0xff]  ;;  %v222_v3 = vld [vmem:[#allocation2 + $0x70] sm:$0xff]  ;;  %v196_v23 = vlaneseq }
  0x2f   :  { %3866 = vset.pattern.permute.xlu0 %v4307_v0  ;;  %3867 = vset.pattern.permute.xlu1 %v4307_v0  ;;  %v221_v4 = vld [vmem:[#allocation2 + $0x68] sm:$0xff]  ;;  %v220_v5 = vld [vmem:[#allocation2 + $0x60] sm:$0xff]  ;;  %v219_v7 = vld [vmem:[#allocation2 + $0x58] sm:$0xff]  ;;  %s4877_s28 = sld [smem:[#allocation24_spill]]  ;;  %v4308_v26 = vmov 1.0   ;;  %v4309_v46 = vmov 128.0  }
  0x30   :  { %250 = vmatpush.msra.mxu0 %v223_v2  ;;  %v218_v8 = vld [vmem:[#allocation2 + $0x50] sm:$0xff]  ;;  %v217_v9 = vld [vmem:[#allocation2 + $0x48] sm:$0xff]  ;;  %v216_v10 = vld [vmem:[#allocation2 + $0x40] sm:$0xff]  ;;  %v197_v24 = vand.u32 127, %v196_v23  ;;  %s4878_s30 = sld [smem:[#allocation27_spill]]  ;;  %3963 = vrcp.f32 %v4309_v46  ;;  %vm641_vm9 = vcmask 261120  }
  0x31   :  { %v215_v11 = vld [vmem:[#allocation2 + $0x38] sm:$0xff]  ;;  %v214_v12 = vld [vmem:[#allocation2 + $0x30] sm:$0xff]  ;;  %v213_v13 = vld [vmem:[#allocation2 + $0x28] sm:$0xff]  ;;  %s4879_s16 = sld [smem:[#allocation28_spill]]  ;;  %s4310_s20 = smov 96   ;;  %vm910_vm10 = vcmask 1043456  }
  0x32   :  { %251 = vmatpush.msra.mxu0 %v222_v3  ;;  %v212_v14 = vld [vmem:[#allocation2 + $0x20] sm:$0xff]  ;;  %v211_v15 = vld [vmem:[#allocation2 + $0x18] sm:$0xff]  ;;  %v210_v16 = vld [vmem:[#allocation2 + $0x10] sm:$0xff]  ;;  %s4880_s27 = sld [smem:[#allocation29_spill]]  ;;  %s4311_s21 = smov 32   ;;  %vm810_vm11 = vcmask 64512  }
  0x33   :  { %v209_v17 = vld [vmem:[#allocation2 + $0x8] sm:$0xff]  ;;  %v208_v20 = vld [vmem:[#allocation2] sm:$0xff]  ;;  %v3732_v62 = vld [vmem:[#allocation7 + $0xb0] sm:$0xf0]  ;;  %s4881_s23 = sld [smem:[#allocation25_spill]]  ;;  %s3102_s4 = sshll.u32 %s4861_s22, 4  ;;  %s3103_s4 = int_to_ptr.hbm [resolvable:$true] %s3102_s4 }
  0x34   :  { %v194_v1 = vld [vmem:[%s4876_s6] sm:$0xff]  ;;  %v195_v6 = vld [vmem:[%s4876_s6 + $0x8] sm:$0xff]  ;;  %252 = vmatpush.msra.mxu0 %v221_v4  ;;  %v3212_v2 = vld [vmem:[#allocation7 + $0xb0] sm:$0xf] }
  0x35   :  { %199 = vperm.xlu0 %3866, %v194_v1   ;;  %v225_v18 = vld [vmem:[%s4877_s28] sm:$0xff]  ;;  %v226_v21 = vld [vmem:[%s4877_s28 + $0x8] sm:$0xff]  ;;  %v3206_v1 = vld [vmem:[#allocation7 + $0xb4] sm:$0xf0] }
  0x36   :  { %253 = vmatpush.msra.mxu0 %v220_v5  ;;  %v227_v19 = vcvt.s32.f32 %v225_v18  ;;  %v228_v22 = vcvt.s32.f32 %v226_v21  ;;  %v224_v28 = vld [vmem:[%s4878_s30] sm:$0x3]  ;;  %v3964_v47 = vpop.eup %3963  ;;  %v3204_v61 = vld [vmem:[#allocation7 + $0xa8] sm:$0xf]  ;;  %v3731_v63 = vld [vmem:[#allocation7 + $0xac] sm:$0xf] }
  0x37   :  { %v230_v29 = vrot.slane %v224_v28, 7  ;;  %v246_v34 = vperm.slane %v224_v28, 0  ;;  %v249_v38 = vld [vmem:[%s4879_s16] sm:$0xff]  ;;  %v282_v48 = vmul.f32 128.0, %v3964_v47  ;;  %vm286_vm2 = vweird.f32 %v3964_v47  ;;  %v3727_v21 = vld [vmem:[#allocation7 + $0x88] sm:$0xf0] }
  0x38   :  { %254 = vmatpush.msra.mxu0 %v219_v7  ;;  %235 = vperm.xlu1 %3867, %v227_v19   ;;  %v3205_v0 = vor.u32 %v3732_v62, %v3204_v61  ;;  %v3733_v3 = vld [vmem:[#allocation7 + $0xb8] sm:$0xf0]  ;;  %v3209_v4 = vor.u32 %v3731_v63, %v3206_v1  ;;  %v3182_v19 = vld [vmem:[#allocation7 + $0x84] sm:$0xf0]  ;;  %v3146_v46 = vld [vmem:[#allocation7 + $0x3c] sm:$0xf0] }
  0x39   :  { %v232_v30 = vsub.f32 %v224_v28, %v230_v29  ;;  %v283_v49 = vsub.f32 1.0, %v282_v48  ;;  %v3213_v5 = vor.u32 %v3733_v3, %v3212_v2  ;;  %v3729_v7 = vld [vmem:[#allocation7 + $0x98] sm:$0xf0]  ;;  %v3170_v28 = vld [vmem:[#allocation7 + $0x6c] sm:$0xf0] }
  0x3a   :  { %255 = vmatpush.msra.mxu0 %v218_v8  ;;  %515 = vmatpush.bf16.msra.mxu1 %v3205_v0  ;;  %v3728_v8 = vld [vmem:[#allocation7 + $0x94] sm:$0xf]  ;;  %v3176_v29 = vld [vmem:[#allocation7 + $0x68] sm:$0xf]  ;;  %v3718_v48 = vld [vmem:[#allocation7 + $0x40] sm:$0xf0] }
  0x3b   :  { %v243_v31 = vperm.slane %v232_v30, 1  ;;  %v284_v50 = vmul.f32 %v3964_v47, %v283_v49  ;;  %529 = vmatpush.bf16.msra.mxu2 %v3209_v4  ;;  %543 = vmatpush.bf16.msra.mxu3 %v3213_v5  ;;  %v3724_v30 = vld [vmem:[#allocation7 + $0x70] sm:$0xf0]  ;;  %v3120_v63 = vld [vmem:[#allocation7] sm:$0xf] }
  0x3c   :  { %256 = vmatpush.msra.mxu0 %v217_v9  ;;  %v3711_v0 = vld [vmem:[#allocation7 + $0x8] sm:$0xf0]  ;;  %v3710_v1 = vld [vmem:[#allocation7 + $0x4] sm:$0xf]  ;;  %v3122_v4 = vld [vmem:[#allocation7 + $0xc] sm:$0xf0] }
  0x3d   :  { %202 = vperm.xlu0 %3866, %v195_v6   ;;  %v285_v51 = vadd.f32 %v3964_v47, %v284_v50  ;;  %v3192_v6 = vld [vmem:[#allocation7 + $0x90] sm:$0xf]  ;;  %v3121_v3 = vor.u32 %v3711_v0, %v3120_v63  ;;  %v3128_v5 = vld [vmem:[#allocation7 + $0x8] sm:$0xf] }
  0x3e   :  { %257 = vmatpush.msra.mxu0 %v216_v10  ;;  %v3193_v9 = vor.u32 %v3729_v7, %v3192_v6  ;;  %v3194_v10 = vld [vmem:[#allocation7 + $0x9c] sm:$0xf0]  ;;  %v3712_v6 = vld [vmem:[#allocation7 + $0x10] sm:$0xf0] }
  0x3f   :  { %v4479_v52 = vsel %vm286_vm2, %v3964_v47, %v285_v51  ;;  %v3152_v47 = vld [vmem:[#allocation7 + $0x38] sm:$0xf] }
  0x40   :  { %258 = vmatpush.msra.mxu0 %v215_v11  ;;  %240 = vperm.xlu1 %3867, %v228_v22   ;;  %v3200_v11 = vld [vmem:[#allocation7 + $0x98] sm:$0xf]  ;;  %v3153_v50 = vor.u32 %v3718_v48, %v3152_v47 }
  0x41   :  { %516 = vmatpush.bf16.msra.mxu1 %v3193_v9  ;;  %v3132_v51 = vld [vmem:[#allocation7 + $0x18] sm:$0xf]  ;;  %v3129_v9 = vor.u32 %v3712_v6, %v3128_v5 }
  0x42   :  { %259 = vmatpush.msra.mxu0 %v214_v12  ;;  %v3730_v12 = vld [vmem:[#allocation7 + $0xa0] sm:$0xf0] }
  0x44   :  { %260 = vmatpush.msra.mxu0 %v213_v13  ;;  %v3197_v13 = vor.u32 %v3728_v8, %v3194_v10  ;;  %v3125_v8 = vor.u32 %v3710_v1, %v3122_v4 }
  0x46   :  { %261 = vmatpush.msra.mxu0 %v212_v14  ;;  %v3201_v14 = vor.u32 %v3730_v12, %v3200_v11  ;;  %530 = vmatpush.bf16.msra.mxu2 %v3197_v13 }
  0x48   :  { %262 = vmatpush.msra.mxu0 %v211_v15  ;;  %544 = vmatpush.bf16.msra.mxu3 %v3201_v14  ;;  %v3180_v15 = vld [vmem:[#allocation7 + $0x78] sm:$0xf] }
  0x4a   :  { %263 = vmatpush.msra.mxu0 %v210_v16  ;;  %v3726_v16 = vld [vmem:[#allocation7 + $0x80] sm:$0xf0] }
  0x4b   :  { %v3181_v18 = vor.u32 %v3726_v16, %v3180_v15 }
  0x4c   :  { %264 = vmatpush.msra.mxu0 %v209_v17  ;;  %v3725_v17 = vld [vmem:[#allocation7 + $0x7c] sm:$0xf] }
  0x4d   :  { %v3185_v22 = vor.u32 %v3725_v17, %v3182_v19  ;;  %517 = vmatpush.bf16.msra.mxu1 %v3181_v18 }
  0x4e   :  { %265 = vmatpush.msra.mxu0 %v208_v20  ;;  %v3188_v20 = vld [vmem:[#allocation7 + $0x80] sm:$0xf] }
  0x4f   :  { %v3189_v23 = vor.u32 %v3727_v21, %v3188_v20  ;;  %531 = vmatpush.bf16.msra.mxu2 %v3185_v22 }
  0x51   :  { %545 = vmatpush.bf16.msra.mxu3 %v3189_v23 }
  0xa7   :  { %v200_v25 = vpop.permute.xlu0 %199 }
  0xa8   :  { %vm204_vm0 = vcmp.eq.s32.totalorder %v197_v24, %v200_v25  ;;  %v3723_v25 = vld [vmem:[#allocation7 + $0x68] sm:$0xf0] }
  0xa9   :  { %3116 = vmatmul.msk.f32.vlgmr.msra.gmra.mxu0 %vm204_vm0, %v4308_v26 }
  0xaa   :  { %v236_v32 = vpop.permute.xlu1 %235 }
  0xab   :  { %v244_v33 = vmul.f32 %v243_v31, %v236_v32  ;;  %v3177_v32 = vor.u32 %v3724_v30, %v3176_v29 }
  0xad   :  { %v247_v35 = vadd.f32 %v246_v34, %v244_v33  ;;  %546 = vmatpush.bf16.msra.mxu3 %v3177_v32  ;;  %v3156_v33 = vld [vmem:[#allocation7 + $0x48] sm:$0xf]  ;;  %v3949_v32 = vld [vmem:[#allocation5] ss:$0 sm:$0xff] }
  0xaf   :  { %v203_v27 = vpop.permute.xlu0 %202 }
  0xb0   :  { %vm205_vm1 = vcmp.eq.s32.totalorder %v197_v24, %v203_v27  ;;  %v3168_v24 = vld [vmem:[#allocation7 + $0x60] sm:$0xf] }
  0xb1   :  { %3117 = vmatmul.msk.f32.gmra.mxu0 %vm205_vm1, %v4308_v26  ;;  %v3722_v26 = vld [vmem:[#allocation7 + $0x64] sm:$0xf]  ;;  %v3169_v27 = vor.u32 %v3723_v25, %v3168_v24 }
  0xb2   :  { %v241_v36 = vpop.permute.xlu1 %240 }
  0xb3   :  { %v245_v40 = vmul.f32 %v243_v31, %v241_v36  ;;  %v3173_v31 = vor.u32 %v3722_v26, %v3170_v28  ;;  %518 = vmatpush.bf16.msra.mxu1 %v3169_v27  ;;  %v3948_v27 = vld [vmem:[%s4880_s27] ss:$0 sm:$0xff] }
  0xb5   :  { %v248_v42 = vadd.f32 %v246_v34, %v245_v40  ;;  %532 = vmatpush.bf16.msra.mxu2 %v3173_v31  ;;  %v3720_v34 = vld [vmem:[#allocation7 + $0x50] sm:$0xf0] }
  0xb6   :  { %v3157_v36 = vor.u32 %v3720_v34, %v3156_v33 }
  0xb8   :  { %519 = vmatpush.bf16.msra.mxu1 %v3157_v36 }
 0x126   :  { %v267_v37 = vpop.f32.mrf.mxu0 }
 0x127   :  { %v268_v39 = vadd.f32 %v267_v37, %v247_v35  ;;  %v3719_v35 = vld [vmem:[#allocation7 + $0x4c] sm:$0xf]  ;;  %v3158_v37 = vld [vmem:[#allocation7 + $0x54] sm:$0xf0] }
 0x128   :  { %v3161_v40 = vor.u32 %v3719_v35, %v3158_v37  ;;  %v379_v37 = vld [vmem:[%s4848_s9] sm:$0x7] }
 0x129   :  { %v273_v41 = vadd.f32 %v268_v39, %v249_v38  ;;  %v3721_v39 = vld [vmem:[#allocation7 + $0x58] sm:$0xf0]  ;;  %v383_v48 = vperm.slane %v379_v37, 2 }
 0x12a   :  { %533 = vmatpush.bf16.msra.mxu2 %v3161_v40 }
 0x12b   :  { %277 = vadd.xlane.f32.xlu2 %v273_v41 }
 0x12e   :  { %v270_v43 = vpop.f32.mrf.mxu0 }
 0x12f   :  { %v271_v44 = vadd.f32 %v270_v43, %v248_v42  ;;  %v3144_v42 = vld [vmem:[#allocation7 + $0x30] sm:$0xf]  ;;  %v3717_v43 = vld [vmem:[#allocation7 + $0x38] sm:$0xf0] }
 0x131   :  { %v274_v45 = vadd.f32 %v271_v44, %v249_v38  ;;  %v3164_v38 = vld [vmem:[#allocation7 + $0x50] sm:$0xf]  ;;  %v3716_v44 = vld [vmem:[#allocation7 + $0x34] sm:$0xf] }
 0x132   :  { %v3149_v49 = vor.u32 %v3716_v44, %v3146_v46 }
 0x133   :  { %279 = vadd.xlane.f32.xlu2 %v274_v45 }
 0x134   :  { %534 = vmatpush.bf16.msra.mxu2 %v3149_v49 }
 0x19e   :  { %v278_v53 = vpop.xlane.xlu2 %277 }
 0x19f   :  { %v288_v54 = vmul.f32 %v4479_v52, %v278_v53  ;;  %v3714_v53 = vld [vmem:[#allocation7 + $0x20] sm:$0xf0] }
 0x1a1   :  { %v4482_v55 = vsub.f32 %v273_v41, %v288_v54  ;;  %v3165_v41 = vor.u32 %v3721_v39, %v3164_v38  ;;  %v3713_v54 = vld [vmem:[#allocation7 + $0x1c] sm:$0xf]  ;;  %v382_v38 = vperm.slane %v379_v37, 1 }
 0x1a3   :  { %v292_v56 = vmul.f32 %v4482_v55, %v4482_v55  ;;  %547 = vmatpush.bf16.msra.mxu3 %v3165_v41 }
 0x1a5   :  { %294 = vadd.xlane.f32.xlu0 %v292_v56  ;;  %v3133_v56 = vor.u32 %v3714_v53, %v3132_v51 }
 0x1a6   :  { %v280_v57 = vpop.xlane.xlu2 %279 }
 0x1a7   :  { %v289_v58 = vmul.f32 %v4479_v52, %v280_v57  ;;  %548 = vmatpush.bf16.msra.mxu3 %v3153_v50  ;;  %v3134_v57 = vld [vmem:[#allocation7 + $0x24] sm:$0xf0] }
 0x1a8   :  { %v3137_v61 = vor.u32 %v3713_v54, %v3134_v57 }
 0x1a9   :  { %v4487_v59 = vsub.f32 %v274_v45, %v289_v58  ;;  %v3145_v45 = vor.u32 %v3717_v43, %v3144_v42  ;;  %v3140_v58 = vld [vmem:[#allocation7 + $0x20] sm:$0xf] }
 0x1aa   :  { %535 = vmatpush.bf16.msra.mxu2 %v3137_v61 }
 0x1ab   :  { %v293_v60 = vmul.f32 %v4487_v59, %v4487_v59  ;;  %520 = vmatpush.bf16.msra.mxu1 %v3145_v45 }
 0x1ad   :  { %296 = vadd.xlane.f32.xlu1 %v293_v60  ;;  %v3715_v60 = vld [vmem:[#allocation7 + $0x28] sm:$0xf0] }
 0x1ae   :  { %v3141_v62 = vor.u32 %v3715_v60, %v3140_v58  ;;  %536 = vmatpush.bf16.msra.mxu2 %v3125_v8 }
 0x1af   :  { %521 = vmatpush.bf16.msra.mxu1 %v3133_v56 }
 0x1b0   :  { %549 = vmatpush.bf16.msra.mxu3 %v3141_v62 }
 0x1b3   :  { %522 = vmatpush.bf16.msra.mxu1 %v3121_v3 }
 0x1b4   :  { %550 = vmatpush.bf16.msra.mxu3 %v3129_v9 }
 0x218   :  { %v295_v2 = vpop.xlane.xlu0 %294 }
 0x219   :  { %v298_v7 = vmul.f32 %v295_v2, %v4479_v52 }
 0x21b   :  { %v300_v10 = vadd.f32 1e-12, %v298_v7 }
 0x21d   :  { %3965 = vrsqrt.f32 %v300_v10  ;;  %vm308_vm4 = vweird.f32 %v300_v10 }
 0x220   :  { %v297_v11 = vpop.xlane.xlu1 %296 }
 0x221   :  { %v299_v12 = vmul.f32 %v297_v11, %v4479_v52 }
 0x223   :  { %v3966_v13 = vpop.eup %3965  ;;  %v301_v14 = vadd.f32 1e-12, %v299_v12  ;;  %v334_v12 = vld [vmem:[%s4881_s23] sm:$0x1] }
 0x224   :  { %v303_v15 = vmul.f32 %v3966_v13, %v300_v10  ;;  %vm309_vm3 = vweird.f32 %v3966_v13 }
 0x225   :  { %3967 = vrsqrt.f32 %v301_v14  ;;  %vm310_vm5 = vmor %vm308_vm4, %vm309_vm3  ;;  %vm318_vm7 = vweird.f32 %v301_v14 }
 0x226   :  { %v304_v16 = vmul.f32 %v3966_v13, %v303_v15 }
 0x228   :  { %v305_v17 = vmul.f32 0.5, %v304_v16 }
 0x22a   :  { %v306_v18 = vsub.f32 1.5, %v305_v17 }
 0x22b   :  { %v3968_v19 = vpop.eup %3967 }
 0x22c   :  { %v307_v20 = vmul.f32 %v3966_v13, %v306_v18  ;;  %v313_v21 = vmul.f32 %v3968_v19, %v301_v14  ;;  %vm319_vm6 = vweird.f32 %v3968_v19 }
 0x22d   :  { %vm320_vm8 = vmor %vm318_vm7, %vm319_vm6 }
 0x22e   :  { %v314_v22 = vmul.f32 %v3968_v19, %v313_v21  ;;  %v311_v23 = vsel %vm310_vm5, %v3966_v13, %v307_v20  ;;  %v336_v20 = vsub.f32 1.0, %v334_v12 }
 0x22f   :  { %v322_v26 = vmul.f32 %v311_v23, %v4482_v55 }
 0x230   :  { %v315_v24 = vmul.f32 0.5, %v314_v22 }
 0x231   :  { %v327_v31 = vmul.f32 %v3948_v27, %v322_v26 }
 0x232   :  { %v316_v25 = vsub.f32 1.5, %v315_v24 }
 0x233   :  { %v4498_v34 = vadd.f32 %v3949_v32, %v327_v31  ;;  %v338_v31 = vmul.f32 -1e+09, %v336_v20 }
 0x234   :  { %v317_v28 = vmul.f32 %v3968_v19, %v316_v25 }
 0x236   :  { %v321_v29 = vsel %vm320_vm8, %v3968_v19, %v317_v28 }
 0x237   :  { %v323_v30 = vmul.f32 %v321_v29, %v4487_v59  ;;  %v381_v59 = vperm.slane %v379_v37, 0  ;;  %v335_v37 = vld [vmem:[%s4881_s23 + $0x1] sm:$0x1] }
 0x239   :  { %v328_v33 = vmul.f32 %v3948_v27, %v323_v30 }
 0x23b   :  { %v4500_v35 = vadd.f32 %v3949_v32, %v328_v33 }
 0x23d   :  { %v346_v55 = vpack.c.bf16 %v4500_v35, %v4498_v34 }
 0x23f   :  { %523 = vmatmul.bf16.vlgmr.msra.gmra.mxu1 %v346_v55  ;;  %537 = vmatmul.bf16.vlgmr.msra.gmra.mxu2 %v346_v55 }
 0x240   :  { %551 = vmatmul.bf16.vlgmr.msra.gmra.mxu3 %v346_v55 }
 0x2bc   :  { %v524_v36 = vpop.f32.mrf.mxu1 }
 0x2bd   :  { %v525_v43 = vadd.f32 %v524_v36, %v381_v59 }
 0x2bf   :  { %v577_v57 = vpack.c.bf16 %v525_v43, %v525_v43 }
 0x2c2   :  { %v538_v39 = vpop.f32.mrf.mxu2 }
 0x2c3   :  { %v539_v40 = vadd.f32 %v538_v39, %v382_v38  ;;  %v552_v41 = vpop.f32.mrf.mxu3  ;;  %v4537_v39 = vperm.slane %v338_v31, 0 }
 0x2c4   :  { %v526_v42 = vpop.f32.mrf.mxu1  ;;  %v553_v53 = vadd.f32 %v552_v41, %v383_v48 }
 0x2c5   :  { %v527_v44 = vadd.f32 %v526_v42, %v381_v59  ;;  %587 = vrot.lane.b32.xlu2 %v539_v40, %s4310_s20  ;;  %v605_v45 = vpack.c.bf16 %v539_v40, %v539_v40 }
 0x2c6   :  { %v633_v14 = vpack.c.bf16 %v553_v53, %v553_v53 }
 0x2c7   :  { %v646_v46 = vsel %vm641_vm9, %v605_v45, 0  ;;  %v3873_v47 = vpack.i.bf16 %v527_v44, %v525_v43  ;;  %v578_v62 = vpack.c.bf16 %v527_v44, %v527_v44 }
 0x2c8   :  { %655 = vmatpush.bf16.xpose.msrb.mxu0 %v646_v46  ;;  %v912_v26 = vsel %vm910_vm10, %v633_v14, 0 }
 0x2c9   :  { %3874 = vrot.lane.b32.xlu1 %v3873_v47, %s4311_s21 }
 0x2ca   :  { %v540_v49 = vpop.f32.mrf.mxu2 }
 0x2cb   :  { %v541_v50 = vadd.f32 %v540_v49, %v382_v38  ;;  %v554_v51 = vpop.f32.mrf.mxu3 }
 0x2cc   :  { %v555_v54 = vadd.f32 %v554_v51, %v383_v48 }
 0x2cd   :  { %559 = vrot.lane.b32.xlu2 %v525_v43, %s4310_s20  ;;  %v3868_v56 = vpack.i.bf16 %v541_v50, %v539_v40  ;;  %v606_v58 = vpack.c.bf16 %v541_v50, %v541_v50  ;;  %v337_v40 = vsub.f32 1.0, %v335_v37 }
 0x2ce   :  { %v4511_v60 = vpack.i.bf16 %v555_v54, %v553_v53  ;;  %v634_v15 = vpack.c.bf16 %v555_v54, %v555_v54 }
 0x2cf   :  { %3869 = vrot.lane.b32.xlu0 %v3868_v56, %s4311_s21  ;;  %3214 = vmatmul.msk.bf16.vlgmr.msrb.gmra.mxu0 %vm641_vm9, %v577_v57  ;;  %v665_v61 = vsel %vm641_vm9, %v606_v58, 0  ;;  %v339_v46 = vmul.f32 -1e+09, %v337_v40 }
 0x2d0   :  { %674 = vmatpush.bf16.xpose.msrb.mxu1 %v665_v61  ;;  %v931_v27 = vsel %vm910_vm10, %v634_v15, 0 }
 0x2d1   :  { %v4545_v48 = vperm.slane %v339_v46, 0 }
 0x2d5   :  { %589 = vrot.lane.b32.xlu2 %v541_v50, %s4310_s20 }
 0x2d7   :  { %3215 = vmatmul.msk.bf16.vlgmr.msrb.gmra.mxu1 %vm641_vm9, %v578_v62 }
 0x2dd   :  { %561 = vrot.lane.b32.xlu2 %v527_v44, %s4310_s20 }
 0x2e5   :  { %3879 = vrot.lane.b32.xlu2 %v3868_v56, %s4875_s14 }
 0x2ed   :  { %3884 = vrot.lane.b32.xlu2 %v3873_v47, %s4875_s14 }
 0x31f   :  { %v588_v63 = vpop.permute.xlu2 %587 }
 0x320   :  { %v607_v0 = vpack.c.bf16 %v588_v63, %v588_v63 }
 0x322   :  { %v684_v1 = vsel %vm641_vm9, %v607_v0, 0 }
 0x323   :  { %693 = vmatpush.bf16.xpose.msrb.mxu3 %v684_v1 }
 0x327   :  { %v560_v2 = vpop.permute.xlu2 %559 }
 0x328   :  { %v579_v3 = vpack.c.bf16 %v560_v2, %v560_v2 }
 0x32a   :  { %3216 = vmatmul.msk.bf16.vlgmr.msrb.gmra.mxu3 %vm641_vm9, %v579_v3 }
 0x32f   :  { %v590_v4 = vpop.permute.xlu2 %589 }
 0x330   :  { %v608_v5 = vpack.c.bf16 %v590_v4, %v590_v4 }
 0x332   :  { %v703_v6 = vsel %vm641_vm9, %v608_v5, 0 }
 0x333   :  { %712 = vmatpush.bf16.xpose.msra.mxu3 %v703_v6 }
 0x337   :  { %v562_v7 = vpop.permute.xlu2 %561 }
 0x338   :  { %v580_v8 = vpack.c.bf16 %v562_v7, %v562_v7 }
 0x33a   :  { %3217 = vmatmul.msk.bf16.vlgmr.msra.gmra.mxu3 %vm641_vm9, %v580_v8 }
 0x33b   :  { %v3875_v25 = vpop.permute.xlu1 %3874 }
 0x33c   :  { %v3877_v32 = vunpack.i.h.bf16 %v3875_v25  ;;  %v3876_v33 = vunpack.i.l.bf16 %v3875_v25 }
 0x33e   :  { %v584_v41 = vpack.c.bf16 %v3877_v32, %v3877_v32  ;;  %v583_v42 = vpack.c.bf16 %v3876_v33, %v3876_v33 }
 0x33f   :  { %v3880_v9 = vpop.permute.xlu2 %3879 }
 0x340   :  { %v3882_v10 = vunpack.i.h.bf16 %v3880_v9  ;;  %v3881_v11 = vunpack.i.l.bf16 %v3880_v9 }
 0x341   :  { %v3870_v13 = vpop.permute.xlu0 %3869 }
 0x342   :  { %v610_v16 = vpack.c.bf16 %v3882_v10, %v3882_v10  ;;  %v609_v17 = vpack.c.bf16 %v3881_v11, %v3881_v11  ;;  %v3872_v18 = vunpack.i.h.bf16 %v3870_v13  ;;  %v3871_v19 = vunpack.i.l.bf16 %v3870_v13 }
 0x344   :  { %v612_v21 = vpack.c.bf16 %v3872_v18, %v3872_v18  ;;  %v611_v22 = vpack.c.bf16 %v3871_v19, %v3871_v19  ;;  %v722_v23 = vsel %vm641_vm9, %v609_v17, 0  ;;  %v741_v24 = vsel %vm641_vm9, %v610_v16, 0 }
 0x345   :  { %731 = vmatpush.bf16.xpose.msra.mxu0 %v722_v23  ;;  %750 = vmatpush.bf16.xpose.msra.mxu1 %v741_v24 }
 0x346   :  { %v760_v28 = vsel %vm641_vm9, %v611_v22, 0  ;;  %v779_v29 = vsel %vm641_vm9, %v612_v21, 0 }
 0x347   :  { %769 = vmatpush.bf16.xpose.msrb.mxu2 %v760_v28  ;;  %788 = vmatpush.bf16.xpose.msrb.mxu3 %v779_v29  ;;  %v3885_v30 = vpop.permute.xlu2 %3884 }
 0x348   :  { %v3887_v55 = vunpack.i.h.bf16 %v3885_v30  ;;  %v3886_v36 = vunpack.i.l.bf16 %v3885_v30 }
 0x34a   :  { %v582_v38 = vpack.c.bf16 %v3887_v55, %v3887_v55  ;;  %v581_v59 = vpack.c.bf16 %v3886_v36, %v3886_v36 }
 0x34c   :  { %v657_v43 = vpop.f32.mrf.mxu0  ;;  %3218 = vmatmul.msk.bf16.vlgmr.msra.gmra.mxu0 %vm641_vm9, %v581_v59  ;;  %3219 = vmatmul.msk.bf16.vlgmr.msra.gmra.mxu1 %vm641_vm9, %v582_v38 }
 0x34d   :  { %921 = vmatpush.bf16.msrb.mxu0 %v912_v26  ;;  %940 = vmatpush.bf16.msrb.mxu1 %v931_v27  ;;  %v794_v44 = vmul.f32 0.17677669, %v657_v43 }
 0x34e   :  { %3220 = vmatmul.msk.bf16.vlgmr.msrb.gmra.mxu2 %vm641_vm9, %v583_v42  ;;  %3221 = vmatmul.msk.bf16.vlgmr.msrb.gmra.mxu3 %vm641_vm9, %v584_v41 }
 0x34f   :  { %v802_v45 = vadd.f32 %v794_v44, %v4537_v39 }
 0x351   :  { %v811_v47 = vsel %vm810_vm11, %v802_v45, -inf }
 0x352   :  { %812 = vmax.xlane.f32.xlu1 %v811_v47 }
 0x354   :  { %v659_v49 = vpop.f32.mrf.mxu0  ;;  %v676_v50 = vpop.f32.mrf.mxu1 }
 0x355   :  { %v795_v51 = vmul.f32 0.17677669, %v676_v50 }
 0x357   :  { %v803_v53 = vadd.f32 %v795_v51, %v4545_v48 }
 0x359   :  { %v814_v54 = vsel %vm810_vm11, %v803_v53, -inf }
 0x35a   :  { %815 = vmax.xlane.f32.xlu0 %v814_v54 }
 0x35c   :  { %v678_v56 = vpop.f32.mrf.mxu1 }
 0x3ad   :  { %v695_v57 = vpop.f32.mrf.mxu3 }
 0x3ae   :  { %v796_v58 = vmul.f32 0.17677669, %v695_v57 }
 0x3b0   :  { %v804_v61 = vadd.f32 %v796_v58, %v4537_v39 }
 0x3b2   :  { %v817_v62 = vsel %vm810_vm11, %v804_v61, -inf }
 0x3b3   :  { %818 = vmax.xlane.f32.xlu0 %v817_v62 }
 0x3b5   :  { %v697_v63 = vpop.f32.mrf.mxu3 }
 0x3bd   :  { %v714_v0 = vpop.f32.mrf.mxu3 }
 0x3be   :  { %v797_v1 = vmul.f32 0.17677669, %v714_v0 }
 0x3c0   :  { %v805_v2 = vadd.f32 %v797_v1, %v4545_v48 }
 0x3c2   :  { %v820_v3 = vsel %vm810_vm11, %v805_v2, -inf }
 0x3c3   :  { %821 = vmax.xlane.f32.xlu2 %v820_v3 }
 0x3c5   :  { %v716_v4 = vpop.f32.mrf.mxu3  ;;  %v813_v14 = vpop.xlane.xlu1 %812 }
 0x3c6   :  { %v835_v19 = vsub.f32 %v802_v45, %v813_v14 }
 0x3c8   :  { %v843_v23 = vmul.f32 1.442695, %v835_v19 }
 0x3c9   :  { %v733_v5 = vpop.f32.mrf.mxu0  ;;  %v752_v6 = vpop.f32.mrf.mxu1 }
 0x3ca   :  { %v798_v7 = vmul.f32 0.17677669, %v733_v5  ;;  %v799_v20 = vmul.f32 0.17677669, %v752_v6  ;;  %3969 = vpow2.f32 %v843_v23 }
 0x3cc   :  { %v806_v8 = vadd.f32 %v798_v7, %v4537_v39  ;;  %v807_v26 = vadd.f32 %v799_v20, %v4545_v48 }
 0x3cd   :  { %v816_v30 = vpop.xlane.xlu0 %815 }
 0x3ce   :  { %v823_v9 = vsel %vm810_vm11, %v806_v8, -inf  ;;  %v826_v27 = vsel %vm810_vm11, %v807_v26, -inf  ;;  %v836_v33 = vsub.f32 %v803_v53, %v816_v30 }
 0x3cf   :  { %824 = vmax.xlane.f32.xlu0 %v823_v9 }
 0x3d0   :  { %v4563_v28 = vpop.eup %3969  ;;  %v845_v36 = vmul.f32 1.442695, %v836_v33 }
 0x3d1   :  { %v735_v10 = vpop.f32.mrf.mxu0  ;;  %v754_v11 = vpop.f32.mrf.mxu1  ;;  %v859_v29 = vsel %vm810_vm11, %v4563_v28, 0.0 }
 0x3d2   :  { %v771_v12 = vpop.f32.mrf.mxu2  ;;  %v790_v13 = vpop.f32.mrf.mxu3 }
 0x3d3   :  { %v800_v15 = vmul.f32 0.17677669, %v771_v12  ;;  %v801_v16 = vmul.f32 0.17677669, %v790_v13 }
 0x3d5   :  { %v808_v17 = vadd.f32 %v800_v15, %v4537_v39  ;;  %v809_v18 = vadd.f32 %v801_v16, %v4545_v48 }
 0x3d7   :  { %v829_v21 = vsel %vm810_vm11, %v808_v17, -inf  ;;  %v832_v22 = vsel %vm810_vm11, %v809_v18, -inf }
 0x3d8   :  { %830 = vmax.xlane.f32.xlu2 %v829_v21  ;;  %833 = vmax.xlane.f32.xlu1 %v832_v22 }
 0x3da   :  { %v773_v24 = vpop.f32.mrf.mxu2  ;;  %v792_v25 = vpop.f32.mrf.mxu3 }
 0x3e0   :  { %827 = vmax.xlane.f32.xlu2 %v826_v27 }
 0x3e3   :  { %3889 = vrot.lane.b32.xlu0 %v4511_v60, %s4310_s20 }
 0x3e8   :  { %860 = vadd.xlane.f32.xlu2 %v859_v29 }
 0x426   :  { %v819_v31 = vpop.xlane.xlu0 %818 }
 0x427   :  { %v837_v32 = vsub.f32 %v804_v61, %v819_v31 }
 0x429   :  { %v847_v55 = vmul.f32 1.442695, %v837_v32 }
 0x42b   :  { %3971 = vpow2.f32 %v847_v55 }
 0x42c   :  { %3973 = vpow2.f32 %v845_v36 }
 0x431   :  { %v3972_v37 = vpop.eup %3971 }
 0x432   :  { %v865_v38 = vsel %vm810_vm11, %v3972_v37, 0.0  ;;  %v4568_v40 = vpop.eup %3973 }
 0x433   :  { %866 = vadd.xlane.f32.xlu1 %v865_v38  ;;  %v862_v43 = vsel %vm810_vm11, %v4568_v40, 0.0 }
 0x436   :  { %v822_v59 = vpop.xlane.xlu2 %821 }
 0x437   :  { %v838_v41 = vsub.f32 %v805_v2, %v822_v59 }
 0x439   :  { %v849_v42 = vmul.f32 1.442695, %v838_v41 }
 0x43b   :  { %3975 = vpow2.f32 %v849_v42  ;;  %863 = vadd.xlane.f32.xlu1 %v862_v43 }
 0x441   :  { %v4572_v44 = vpop.eup %3975 }
 0x442   :  { %v825_v45 = vpop.xlane.xlu0 %824  ;;  %v868_v46 = vsel %vm810_vm11, %v4572_v44, 0.0 }
 0x443   :  { %v839_v47 = vsub.f32 %v806_v8, %v825_v45  ;;  %869 = vadd.xlane.f32.xlu0 %v868_v46 }
 0x445   :  { %v851_v49 = vmul.f32 1.442695, %v839_v47 }
 0x447   :  { %3977 = vpow2.f32 %v851_v49 }
 0x44b   :  { %v831_v50 = vpop.xlane.xlu2 %830  ;;  %v834_v51 = vpop.xlane.xlu1 %833 }
 0x44c   :  { %v841_v53 = vsub.f32 %v808_v17, %v831_v50  ;;  %v842_v54 = vsub.f32 %v809_v18, %v834_v51 }
 0x44d   :  { %v3978_v56 = vpop.eup %3977 }
 0x44e   :  { %v855_v57 = vmul.f32 1.442695, %v841_v53  ;;  %v857_v58 = vmul.f32 1.442695, %v842_v54  ;;  %v871_v61 = vsel %vm810_vm11, %v3978_v56, 0.0 }
 0x44f   :  { %872 = vadd.xlane.f32.xlu2 %v871_v61 }
 0x450   :  { %3979 = vpow2.f32 %v855_v57 }
 0x451   :  { %3981 = vpow2.f32 %v857_v58 }
 0x453   :  { %v828_v62 = vpop.xlane.xlu2 %827 }
 0x454   :  { %v840_v63 = vsub.f32 %v807_v26, %v828_v62 }
 0x455   :  { %v3890_v0 = vpop.permute.xlu0 %3889 }
 0x456   :  { %v4577_v1 = vpop.eup %3979  ;;  %v853_v2 = vmul.f32 1.442695, %v840_v63  ;;  %v3892_v3 = vunpack.i.h.bf16 %v3890_v0  ;;  %v3891_v4 = vunpack.i.l.bf16 %v3890_v0 }
 0x457   :  { %v4579_v5 = vpop.eup %3981  ;;  %3899 = vrot.lane.b32.xlu0 %v4511_v60, %s4875_s14  ;;  %v877_v6 = vsel %vm810_vm11, %v4577_v1, 0.0 }
 0x458   :  { %3983 = vpow2.f32 %v853_v2  ;;  %v636_v7 = vpack.c.bf16 %v3892_v3, %v3892_v3  ;;  %v635_v8 = vpack.c.bf16 %v3891_v4, %v3891_v4  ;;  %v880_v9 = vsel %vm810_vm11, %v4579_v5, 0.0  ;;  %878 = vadd.xlane.f32.xlu2 %v877_v6  ;;  %v3735_v3 = vld [vmem:[#allocation8 + $0x8] sm:$0xff]  ;;  %v3734_v4 = vld [vmem:[#allocation8] sm:$0xff]  ;;  %v3736_v6 = vld [vmem:[#allocation8 + $0x10] sm:$0xff] }
 0x459   :  { %881 = vadd.xlane.f32.xlu1 %v880_v9 }
 0x45a   :  { %v950_v10 = vsel %vm910_vm10, %v635_v8, 0  ;;  %v969_v11 = vsel %vm910_vm10, %v636_v7, 0 }
 0x45b   :  { %v861_v12 = vpop.xlane.xlu2 %860  ;;  %959 = vmatpush.bf16.msra.mxu2 %v950_v10  ;;  %978 = vmatpush.bf16.msra.mxu3 %v969_v11 }
 0x45c   :  { %3985 = vrcp.f32 %v861_v12 }
 0x45e   :  { %v4589_v13 = vpop.eup %3983 }
 0x45f   :  { %v874_v14 = vsel %vm810_vm11, %v4589_v13, 0.0 }
 0x461   :  { %875 = vadd.xlane.f32.xlu1 %v874_v14 }
 0x462   :  { %v3986_v15 = vpop.eup %3985 }
 0x463   :  { %v891_v16 = vmul.f32 %v3986_v15, %v4563_v28 }
 0x465   :  { %v899_v17 = vpack.c.bf16 %v891_v16, %v891_v16  ;;  %v3741_v16 = vld [vmem:[#allocation8 + $0x38] sm:$0xff] }
 0x467   :  { %3222 = vmatmul.msk.bf16.vlgmr.msrb.gmra.mxu0 %vm810_vm11, %v899_v17 }
 0x470   :  { %3894 = vrot.lane.b32.xlu2 %v4511_v60, %s4311_s21 }
 0x4a6   :  { %v867_v18 = vpop.xlane.xlu1 %866 }
 0x4a7   :  { %3987 = vrcp.f32 %v867_v18  ;;  %v3738_v18 = vld [vmem:[#allocation8 + $0x20] sm:$0xff] }
 0x4ad   :  { %v3988_v19 = vpop.eup %3987 }
 0x4ae   :  { %v893_v20 = vmul.f32 %v3988_v19, %v3972_v37  ;;  %v864_v21 = vpop.xlane.xlu1 %863  ;;  %v3740_v19 = vld [vmem:[#allocation8 + $0x30] sm:$0xff] }
 0x4af   :  { %3989 = vrcp.f32 %v864_v21 }
 0x4b0   :  { %v901_v22 = vpack.c.bf16 %v893_v20, %v893_v20 }
 0x4b2   :  { %3224 = vmatmul.msk.bf16.vlgmr.msra.gmra.mxu2 %vm810_vm11, %v901_v22 }
 0x4b5   :  { %v3990_v23 = vpop.eup %3989 }
 0x4b6   :  { %v892_v24 = vmul.f32 %v3990_v23, %v4568_v40  ;;  %v870_v25 = vpop.xlane.xlu0 %869 }
 0x4b7   :  { %3991 = vrcp.f32 %v870_v25 }
 0x4b8   :  { %v900_v26 = vpack.c.bf16 %v892_v24, %v892_v24 }
 0x4ba   :  { %3223 = vmatmul.msk.bf16.vlgmr.msrb.gmra.mxu1 %vm810_vm11, %v900_v26 }
 0x4bd   :  { %v3992_v27 = vpop.eup %3991 }
 0x4be   :  { %v894_v60 = vmul.f32 %v3992_v27, %v4572_v44 }
 0x4c0   :  { %v902_v28 = vpack.c.bf16 %v894_v60, %v894_v60 }
 0x4c2   :  { %v873_v29 = vpop.xlane.xlu2 %872  ;;  %3225 = vmatmul.msk.bf16.vlgmr.msra.gmra.mxu3 %vm810_vm11, %v902_v28 }
 0x4c3   :  { %3993 = vrcp.f32 %v873_v29 }
 0x4c9   :  { %v3994_v30 = vpop.eup %3993  ;;  %v3900_v31 = vpop.permute.xlu0 %3899 }
 0x4ca   :  { %v3902_v32 = vunpack.i.h.bf16 %v3900_v31  ;;  %v3901_v33 = vunpack.i.l.bf16 %v3900_v31  ;;  %v895_v36 = vmul.f32 %v3994_v30, %v3978_v56 }
 0x4cb   :  { %v879_v55 = vpop.xlane.xlu2 %878 }
 0x4cc   :  { %v638_v37 = vpack.c.bf16 %v3902_v32, %v3902_v32  ;;  %v637_v38 = vpack.c.bf16 %v3901_v33, %v3901_v33  ;;  %v882_v59 = vpop.xlane.xlu1 %881  ;;  %3995 = vrcp.f32 %v879_v55  ;;  %v903_v42 = vpack.c.bf16 %v895_v36, %v895_v36 }
 0x4cd   :  { %3997 = vrcp.f32 %v882_v59 }
 0x4ce   :  { %v988_v40 = vsel %vm910_vm10, %v637_v38, 0  ;;  %v1007_v41 = vsel %vm910_vm10, %v638_v37, 0 }
 0x4cf   :  { %997 = vmatpush.bf16.msra.mxu0 %v988_v40  ;;  %1016 = vmatpush.bf16.msra.mxu1 %v1007_v41 }
 0x4d2   :  { %v3996_v43 = vpop.eup %3995  ;;  %3226 = vmatmul.msk.bf16.vlgmr.msra.gmra.mxu0 %vm810_vm11, %v903_v42 }
 0x4d3   :  { %v3998_v44 = vpop.eup %3997  ;;  %v3895_v45 = vpop.permute.xlu2 %3894  ;;  %v897_v51 = vmul.f32 %v3996_v43, %v4577_v1  ;;  %1110 = vmatpush.bf16.msrb.mxu0 %v3735_v3 }
 0x4d4   :  { %v876_v46 = vpop.xlane.xlu1 %875  ;;  %v3897_v47 = vunpack.i.h.bf16 %v3895_v45  ;;  %v3896_v49 = vunpack.i.l.bf16 %v3895_v45  ;;  %v898_v50 = vmul.f32 %v3998_v44, %v4579_v5  ;;  %v3737_v5 = vld [vmem:[#allocation8 + $0x18] sm:$0xff] }
 0x4d5   :  { %3999 = vrcp.f32 %v876_v46  ;;  %v905_v61 = vpack.c.bf16 %v897_v51, %v897_v51  ;;  %1144 = vmatpush.bf16.msrb.mxu1 %v3737_v5  ;;  %v3950_v51 = vld [vmem:[%s4850_s11] ss:$0 sm:$0xff] }
 0x4d6   :  { %v640_v53 = vpack.c.bf16 %v3897_v47, %v3897_v47  ;;  %v639_v54 = vpack.c.bf16 %v3896_v49, %v3896_v49  ;;  %v906_v58 = vpack.c.bf16 %v898_v50, %v898_v50 }
 0x4d7   :  { %1111 = vmatpush.bf16.msrb.mxu0 %v3734_v4 }
 0x4d8   :  { %v1026_v56 = vsel %vm910_vm10, %v639_v54, 0  ;;  %v1045_v57 = vsel %vm910_vm10, %v640_v53, 0 }
 0x4d9   :  { %1035 = vmatpush.bf16.msrb.mxu2 %v1026_v56  ;;  %1054 = vmatpush.bf16.msrb.mxu3 %v1045_v57 }
 0x4da   :  { %1145 = vmatpush.bf16.msrb.mxu1 %v3736_v6 }
 0x4db   :  { %v4000_v62 = vpop.eup %3999 }
 0x4dc   :  { %v896_v63 = vmul.f32 %v4000_v62, %v4589_v13  ;;  %3228 = vmatmul.msk.bf16.vlgmr.msrb.gmra.mxu2 %vm810_vm11, %v905_v61  ;;  %3229 = vmatmul.msk.bf16.vlgmr.msrb.gmra.mxu3 %vm810_vm11, %v906_v58  ;;  %v3739_v13 = vld [vmem:[#allocation8 + $0x28] sm:$0xff] }
 0x4dd   :  { %1178 = vmatpush.bf16.msra.mxu2 %v3739_v13  ;;  %1212 = vmatpush.bf16.msra.mxu3 %v3741_v16  ;;  %v3756_v13 = vld [vmem:[#allocation10 + $0x74] sm:$0xf] }
 0x4de   :  { %v904_v0 = vpack.c.bf16 %v896_v63, %v896_v63 }
 0x4e0   :  { %3227 = vmatmul.msk.bf16.vlgmr.msra.gmra.mxu1 %vm810_vm11, %v904_v0 }
 0x4e1   :  { %1179 = vmatpush.bf16.msra.mxu2 %v3738_v18  ;;  %1213 = vmatpush.bf16.msra.mxu3 %v3740_v19  ;;  %v3755_v18 = vld [vmem:[#allocation10 + $0x64] sm:$0xf0]  ;;  %v3754_v19 = vld [vmem:[#allocation10 + $0x64] sm:$0xf] }
 0x4e4   :  { %v923_v1 = vpop.f32.mrf.mxu0 }
 0x4e5   :  { %v1060_v8 = vpack.c.bf16 %v923_v1, %v923_v1 }
 0x4e7   :  { %v1086_v11 = vunpack.c.l.b16 %v1060_v8 }
 0x4ec   :  { %v925_v2 = vpop.f32.mrf.mxu0 }
 0x535   :  { %v961_v7 = vpop.f32.mrf.mxu2 }
 0x536   :  { %v1062_v20 = vpack.c.bf16 %v961_v7, %v961_v7 }
 0x537   :  { %v942_v9 = vpop.f32.mrf.mxu1 }
 0x538   :  { %v1061_v10 = vpack.c.bf16 %v942_v9, %v942_v9  ;;  %v1120_v23 = vunpack.c.l.b16 %v1062_v20 }
 0x53a   :  { %v1087_v12 = vunpack.c.l.b16 %v1061_v10 }
 0x53c   :  { %v1088_v14 = vpack.c.b16 %v1087_v12, %v1086_v11  ;;  %v3757_v12 = vld [vmem:[#allocation10 + $0x74] sm:$0xf0] }
 0x53d   :  { %v963_v15 = vpop.f32.mrf.mxu2 }
 0x53e   :  { %3238 = vmatmul.msk.bf16.vlgmr.msrb.gmra.mxu0 %vm641_vm9, %v1088_v14  ;;  %v3326_v15 = vld [vmem:[#allocation10 + $0x78] sm:$0xf0] }
 0x53f   :  { %v944_v17 = vpop.f32.mrf.mxu1  ;;  %v3329_v16 = vor.u32 %v3756_v13, %v3326_v15 }
 0x540   :  { %v3316_v17 = vld [vmem:[#allocation10 + $0x60] sm:$0xf] }
 0x541   :  { %1403 = vmatpush.bf16.msra.mxu1 %v3329_v16  ;;  %v3317_v20 = vor.u32 %v3755_v18, %v3316_v17 }
 0x545   :  { %v980_v21 = vpop.f32.mrf.mxu3 }
 0x546   :  { %v1063_v22 = vpack.c.bf16 %v980_v21, %v980_v21  ;;  %v3318_v21 = vld [vmem:[#allocation10 + $0x68] sm:$0xf0] }
 0x548   :  { %v1121_v24 = vunpack.c.l.b16 %v1063_v22  ;;  %v3321_v22 = vor.u32 %v3754_v19, %v3318_v21  ;;  %v3951_v19 = vld [vmem:[%s4851_s12] ss:$0 sm:$0xff] }
 0x54a   :  { %v1122_v25 = vpack.c.b16 %v1121_v24, %v1120_v23  ;;  %1404 = vmatpush.bf16.msra.mxu1 %v3321_v22  ;;  %v3308_v23 = vld [vmem:[#allocation10 + $0x50] sm:$0xf]  ;;  %v3753_v24 = vld [vmem:[#allocation10 + $0x54] sm:$0xf0] }
 0x54c   :  { %3247 = vmatmul.msk.bf16.vlgmr.msrb.gmra.mxu1 %vm641_vm9, %v1122_v25  ;;  %v3752_v25 = vld [vmem:[#allocation10 + $0x54] sm:$0xf] }
 0x54d   :  { %v982_v26 = vpop.f32.mrf.mxu3 }
 0x54e   :  { %v3309_v26 = vor.u32 %v3753_v24, %v3308_v23  ;;  %v3952_v24 = vld [vmem:[%s4852_s13] ss:$0 sm:$0xff] }
 0x54f   :  { %v999_v27 = vpop.f32.mrf.mxu0 }
 0x550   :  { %v1064_v28 = vpack.c.bf16 %v999_v27, %v999_v27  ;;  %v3310_v27 = vld [vmem:[#allocation10 + $0x58] sm:$0xf0] }
 0x552   :  { %v1154_v33 = vunpack.c.l.b16 %v1064_v28  ;;  %v3300_v28 = vld [vmem:[#allocation10 + $0x40] sm:$0xf] }
 0x557   :  { %v1001_v60 = vpop.f32.mrf.mxu0 }
 0x558   :  { %v3313_v60 = vor.u32 %v3752_v25, %v3310_v27 }
 0x55a   :  { %1405 = vmatpush.bf16.msra.mxu1 %v3313_v60  ;;  %v3765_v60 = vld [vmem:[#allocation11 + $0x38] sm:$0xff] }
 0x55b   :  { %1587 = vmatpush.bf16.msrb.mxu2 %v3765_v60 }
 0x55d   :  { %v1018_v29 = vpop.f32.mrf.mxu1 }
 0x55e   :  { %v1065_v30 = vpack.c.bf16 %v1018_v29, %v1018_v29  ;;  %v3751_v29 = vld [vmem:[#allocation10 + $0x44] sm:$0xf0] }
 0x55f   :  { %v1037_v31 = vpop.f32.mrf.mxu2  ;;  %v1056_v32 = vpop.f32.mrf.mxu3 }
 0x560   :  { %v1155_v55 = vunpack.c.l.b16 %v1065_v30  ;;  %v1066_v36 = vpack.c.bf16 %v1037_v31, %v1037_v31  ;;  %v1067_v37 = vpack.c.bf16 %v1056_v32, %v1056_v32  ;;  %v3750_v30 = vld [vmem:[#allocation10 + $0x44] sm:$0xf]  ;;  %v3301_v31 = vor.u32 %v3751_v29, %v3300_v28  ;;  %v3302_v32 = vld [vmem:[#allocation10 + $0x48] sm:$0xf0]  ;;  %v3773_v28 = vld [vmem:[#allocation11 + $0x78] sm:$0xff] }
 0x561   :  { %1601 = vmatpush.bf16.msrb.mxu3 %v3773_v28  ;;  %v3772_v29 = vld [vmem:[#allocation11 + $0x70] sm:$0xff] }
 0x562   :  { %v1156_v38 = vpack.c.b16 %v1155_v55, %v1154_v33  ;;  %v1188_v59 = vunpack.c.l.b16 %v1066_v36  ;;  %v1189_v40 = vunpack.c.l.b16 %v1067_v37  ;;  %v3305_v33 = vor.u32 %v3750_v30, %v3302_v32  ;;  %v3292_v55 = vld [vmem:[#allocation10 + $0x30] sm:$0xf]  ;;  %v3749_v36 = vld [vmem:[#allocation10 + $0x34] sm:$0xf0]  ;;  %v3748_v37 = vld [vmem:[#allocation10 + $0x34] sm:$0xf] }
 0x563   :  { %v3763_v30 = vld [vmem:[#allocation11 + $0x28] sm:$0xff]  ;;  %v3762_v32 = vld [vmem:[#allocation11 + $0x20] sm:$0xff] }
 0x564   :  { %v1190_v41 = vpack.c.b16 %v1189_v40, %v1188_v59  ;;  %3256 = vmatmul.msk.bf16.vlgmr.msra.gmra.mxu2 %vm641_vm9, %v1156_v38  ;;  %1406 = vmatpush.bf16.msra.mxu1 %v3305_v33  ;;  %v3293_v38 = vor.u32 %v3749_v36, %v3292_v55  ;;  %v3294_v59 = vld [vmem:[#allocation10 + $0x38] sm:$0xf0]  ;;  %v3770_v33 = vld [vmem:[#allocation11 + $0x60] sm:$0xff] }
 0x565   :  { %v1020_v42 = vpop.f32.mrf.mxu1  ;;  %v3297_v40 = vor.u32 %v3748_v37, %v3294_v59  ;;  %1602 = vmatpush.bf16.msrb.mxu3 %v3772_v29  ;;  %v3761_v55 = vld [vmem:[#allocation11 + $0x18] sm:$0xff]  ;;  %v3760_v37 = vld [vmem:[#allocation11 + $0x10] sm:$0xff]  ;;  %v3759_v59 = vld [vmem:[#allocation11 + $0x8] sm:$0xff] }
 0x566   :  { %3265 = vmatmul.msk.bf16.vlgmr.msra.gmra.mxu3 %vm641_vm9, %v1190_v41  ;;  %v3284_v41 = vld [vmem:[#allocation10 + $0x20] sm:$0xf]  ;;  %v3747_v42 = vld [vmem:[#allocation10 + $0x24] sm:$0xf0]  ;;  %v3769_v36 = vld [vmem:[#allocation11 + $0x58] sm:$0xff] }
 0x567   :  { %v1039_v43 = vpop.f32.mrf.mxu2  ;;  %v1058_v44 = vpop.f32.mrf.mxu3 }
 0x568   :  { %1407 = vmatpush.bf16.msra.mxu1 %v3297_v40  ;;  %v3746_v43 = vld [vmem:[#allocation10 + $0x24] sm:$0xf]  ;;  %v3285_v44 = vor.u32 %v3747_v42, %v3284_v41  ;;  %v3767_v40 = vld [vmem:[#allocation11 + $0x48] sm:$0xff]  ;;  %v1303_v41 = vld [vmem:[%s4854_s15] sm:$0x3] }
 0x569   :  { %v3758_v42 = vld [vmem:[#allocation11] sm:$0xff] }
 0x5bb   :  { %v1113_v46 = vpop.f32.mrf.mxu0 }
 0x5c3   :  { %v1115_v58 = vpop.f32.mrf.mxu0 }
 0x5c9   :  { %v1147_v45 = vpop.f32.mrf.mxu1 }
 0x5ca   :  { %v1220_v47 = vadd.f32 %v1147_v45, %v1113_v46  ;;  %v3286_v45 = vld [vmem:[#allocation10 + $0x28] sm:$0xf0] }
 0x5cb   :  { %v3289_v46 = vor.u32 %v3746_v43, %v3286_v45  ;;  %v3766_v43 = vld [vmem:[#allocation11 + $0x40] sm:$0xff]  ;;  %v1306_v45 = vperm.slane %v1303_v41, 1 }
 0x5cd   :  { %1408 = vmatpush.bf16.msra.mxu1 %v3289_v46 }
 0x5d1   :  { %v1149_v56 = vpop.f32.mrf.mxu1 }
 0x5d2   :  { %v1223_v61 = vadd.f32 %v1149_v56, %v1115_v58  ;;  %v3743_v56 = vld [vmem:[#allocation10 + $0x4] sm:$0xf0] }
 0x5e7   :  { %v1181_v49 = vpop.f32.mrf.mxu2 }
 0x5e8   :  { %v1221_v50 = vadd.f32 %v1220_v47, %v1181_v49  ;;  %v3276_v47 = vld [vmem:[#allocation10 + $0x10] sm:$0xf]  ;;  %v3745_v49 = vld [vmem:[#allocation10 + $0x14] sm:$0xf0] }
 0x5e9   :  { %v1215_v53 = vpop.f32.mrf.mxu3 }
 0x5ea   :  { %v1222_v54 = vadd.f32 %v1221_v50, %v1215_v53  ;;  %v3744_v50 = vld [vmem:[#allocation10 + $0x14] sm:$0xf]  ;;  %v3278_v53 = vld [vmem:[#allocation10 + $0x18] sm:$0xf0] }
 0x5eb   :  { %v3281_v58 = vor.u32 %v3744_v50, %v3278_v53 }
 0x5ec   :  { %v1230_v57 = vadd.f32 %v3950_v51, %v1222_v54  ;;  %v3268_v54 = vld [vmem:[#allocation10] sm:$0xf] }
 0x5ed   :  { %1409 = vmatpush.bf16.msra.mxu1 %v3281_v58 }
 0x5ee   :  { %v1232_v62 = vadd.f32 %v1230_v57, %v4498_v34 }
 0x5ef   :  { %v1183_v63 = vpop.f32.mrf.mxu2 }
 0x5f0   :  { %v1224_v0 = vadd.f32 %v1223_v61, %v1183_v63  ;;  %1236 = vadd.xlane.f32.xlu1 %v1232_v62  ;;  %v3742_v61 = vld [vmem:[#allocation10 + $0x4] sm:$0xf] }
 0x5f1   :  { %v1217_v1 = vpop.f32.mrf.mxu3 }
 0x5f2   :  { %v1225_v2 = vadd.f32 %v1224_v0, %v1217_v1  ;;  %v3269_v0 = vor.u32 %v3743_v56, %v3268_v54 }
 0x5f4   :  { %v1231_v3 = vadd.f32 %v3950_v51, %v1225_v2  ;;  %v3277_v51 = vor.u32 %v3745_v49, %v3276_v47 }
 0x5f6   :  { %v1233_v4 = vadd.f32 %v1231_v3, %v4500_v35  ;;  %v3324_v35 = vld [vmem:[#allocation10 + $0x70] sm:$0xf] }
 0x5f7   :  { %v3325_v14 = vor.u32 %v3757_v12, %v3324_v35 }
 0x5f8   :  { %1238 = vadd.xlane.f32.xlu0 %v1233_v4 }
 0x5f9   :  { %1389 = vmatpush.bf16.msra.mxu0 %v3325_v14 }
 0x5fd   :  { %1390 = vmatpush.bf16.msra.mxu0 %v3317_v20 }
 0x601   :  { %1391 = vmatpush.bf16.msra.mxu0 %v3309_v26 }
 0x605   :  { %1392 = vmatpush.bf16.msra.mxu0 %v3301_v31  ;;  %v3771_v31 = vld [vmem:[#allocation11 + $0x68] sm:$0xff] }
 0x606   :  { %1603 = vmatpush.bf16.msrb.mxu3 %v3771_v31 }
 0x609   :  { %1393 = vmatpush.bf16.msra.mxu0 %v3293_v38  ;;  %v3768_v38 = vld [vmem:[#allocation11 + $0x50] sm:$0xff] }
 0x60a   :  { %1604 = vmatpush.bf16.msrb.mxu3 %v3770_v33 }
 0x60d   :  { %1394 = vmatpush.bf16.msra.mxu0 %v3285_v44  ;;  %v1305_v44 = vperm.slane %v1303_v41, 0 }
 0x60e   :  { %1605 = vmatpush.bf16.msrb.mxu3 %v3769_v36 }
 0x611   :  { %1395 = vmatpush.bf16.msra.mxu0 %v3277_v51 }
 0x612   :  { %1606 = vmatpush.bf16.msrb.mxu3 %v3768_v38 }
 0x615   :  { %1396 = vmatpush.bf16.msra.mxu0 %v3269_v0 }
 0x616   :  { %1607 = vmatpush.bf16.msrb.mxu3 %v3767_v40 }
 0x61a   :  { %1608 = vmatpush.bf16.msrb.mxu3 %v3766_v43 }
 0x663   :  { %v1237_v5 = vpop.xlane.xlu1 %1236 }
 0x664   :  { %v1240_v6 = vmul.f32 %v1237_v5, %v4479_v52 }
 0x666   :  { %v4623_v7 = vsub.f32 %v1232_v62, %v1240_v6  ;;  %v3270_v62 = vld [vmem:[#allocation10 + $0x8] sm:$0xf0] }
 0x667   :  { %v3273_v1 = vor.u32 %v3742_v61, %v3270_v62 }
 0x668   :  { %v1244_v8 = vmul.f32 %v4623_v7, %v4623_v7 }
 0x669   :  { %1410 = vmatpush.bf16.msra.mxu1 %v3273_v1 }
 0x66a   :  { %1246 = vadd.xlane.f32.xlu1 %v1244_v8 }
 0x66b   :  { %v1239_v9 = vpop.xlane.xlu0 %1238 }
 0x66c   :  { %v1241_v34 = vmul.f32 %v1239_v9, %v4479_v52 }
 0x66e   :  { %v4628_v10 = vsub.f32 %v1233_v4, %v1241_v34 }
 0x670   :  { %v1245_v11 = vmul.f32 %v4628_v10, %v4628_v10 }
 0x672   :  { %1248 = vadd.xlane.f32.xlu1 %v1245_v11 }
 0x6dd   :  { %v1247_v57 = vpop.xlane.xlu1 %1246 }
 0x6de   :  { %v1250_v63 = vmul.f32 %v1247_v57, %v4479_v52 }
 0x6e0   :  { %v1252_v2 = vadd.f32 1e-12, %v1250_v63 }
 0x6e2   :  { %4001 = vrsqrt.f32 %v1252_v2  ;;  %vm1260_vm13 = vweird.f32 %v1252_v2 }
 0x6e5   :  { %v1249_v3 = vpop.xlane.xlu1 %1248 }
 0x6e6   :  { %v1251_v4 = vmul.f32 %v1249_v3, %v4479_v52 }
 0x6e8   :  { %v4002_v5 = vpop.eup %4001  ;;  %v1253_v6 = vadd.f32 1e-12, %v1251_v4 }
 0x6e9   :  { %v1255_v8 = vmul.f32 %v4002_v5, %v1252_v2  ;;  %vm1261_vm12 = vweird.f32 %v4002_v5 }
 0x6ea   :  { %4003 = vrsqrt.f32 %v1253_v6  ;;  %vm1262_vm14 = vmor %vm1260_vm13, %vm1261_vm12  ;;  %vm1270_vm0 = vweird.f32 %v1253_v6 }
 0x6eb   :  { %v1256_v9 = vmul.f32 %v4002_v5, %v1255_v8 }
 0x6ed   :  { %v1257_v34 = vmul.f32 0.5, %v1256_v9 }
 0x6ef   :  { %v1258_v11 = vsub.f32 1.5, %v1257_v34 }
 0x6f0   :  { %v4004_v35 = vpop.eup %4003 }
 0x6f1   :  { %v1259_v12 = vmul.f32 %v4002_v5, %v1258_v11  ;;  %v1265_v13 = vmul.f32 %v4004_v35, %v1253_v6  ;;  %vm1271_vm15 = vweird.f32 %v4004_v35 }
 0x6f2   :  { %vm1272_vm1 = vmor %vm1270_vm0, %vm1271_vm15 }
 0x6f3   :  { %v1266_v14 = vmul.f32 %v4004_v35, %v1265_v13  ;;  %v1263_v15 = vsel %vm1262_vm14, %v4002_v5, %v1259_v12 }
 0x6f4   :  { %v1274_v18 = vmul.f32 %v1263_v15, %v4623_v7 }
 0x6f5   :  { %v1267_v16 = vmul.f32 0.5, %v1266_v14 }
 0x6f6   :  { %v1279_v23 = vmul.f32 %v3951_v19, %v1274_v18 }
 0x6f7   :  { %v1268_v17 = vsub.f32 1.5, %v1267_v16 }
 0x6f8   :  { %v4642_v26 = vadd.f32 %v3952_v24, %v1279_v23 }
 0x6f9   :  { %v1269_v20 = vmul.f32 %v4004_v35, %v1268_v17 }
 0x6fb   :  { %v1273_v21 = vsel %vm1272_vm1, %v4004_v35, %v1269_v20 }
 0x6fc   :  { %v1275_v22 = vmul.f32 %v1273_v21, %v4628_v10  ;;  %v3764_v10 = vld [vmem:[#allocation11 + $0x30] sm:$0xff] }
 0x6fd   :  { %1588 = vmatpush.bf16.msrb.mxu2 %v3764_v10 }
 0x6fe   :  { %v1280_v25 = vmul.f32 %v3951_v19, %v1275_v22 }
 0x700   :  { %v4644_v27 = vadd.f32 %v3952_v24, %v1280_v25 }
 0x701   :  { %1589 = vmatpush.bf16.msrb.mxu2 %v3763_v30 }
 0x702   :  { %v1286_v7 = vpack.c.bf16 %v4644_v27, %v4642_v26 }
 0x704   :  { %1397 = vmatmul.bf16.vlgmr.msra.gmra.mxu0 %v1286_v7  ;;  %1411 = vmatmul.bf16.vlgmr.msra.gmra.mxu1 %v1286_v7 }
 0x705   :  { %1590 = vmatpush.bf16.msrb.mxu2 %v3762_v32  ;;  %v3953_v32 = vld [vmem:[%s4856_s17] ss:$0 sm:$0xff] }
 0x709   :  { %1591 = vmatpush.bf16.msrb.mxu2 %v3761_v55 }
 0x70d   :  { %1592 = vmatpush.bf16.msrb.mxu2 %v3760_v37 }
 0x711   :  { %1593 = vmatpush.bf16.msrb.mxu2 %v3759_v59 }
 0x715   :  { %1594 = vmatpush.bf16.msrb.mxu2 %v3758_v42 }
 0x781   :  { %v1398_v46 = vpop.f32.mrf.mxu0  ;;  %v1412_v47 = vpop.f32.mrf.mxu1 }
 0x782   :  { %v1399_v49 = vadd.f32 %v1398_v46, %v1305_v44  ;;  %v1413_v50 = vadd.f32 %v1412_v47, %v1306_v45 }
 0x784   :  { %v1421_v51 = vmul.f32 0.044715, %v1399_v49  ;;  %v1422_v53 = vmul.f32 0.044715, %v1413_v50  ;;  %v1417_v21 = vmul.f32 0.5, %v1399_v49  ;;  %v1418_v24 = vmul.f32 0.5, %v1413_v50 }
 0x786   :  { %v1425_v54 = vmul.f32 %v1421_v51, %v1399_v49  ;;  %v1426_v56 = vmul.f32 %v1422_v53, %v1413_v50  ;;  %v3796_v53 = vld [vmem:[#allocation7 + $0x170] sm:$0xf0] }
 0x788   :  { %v1429_v57 = vmul.f32 %v1425_v54, %v1399_v49  ;;  %v1430_v58 = vmul.f32 %v1426_v56, %v1413_v50  ;;  %v3795_v54 = vld [vmem:[#allocation7 + $0x16c] sm:$0xf] }
 0x789   :  { %v1400_v61 = vpop.f32.mrf.mxu0  ;;  %v1414_v62 = vpop.f32.mrf.mxu1 }
 0x78a   :  { %v1433_v63 = vadd.f32 %v1429_v57, %v1399_v49  ;;  %v1401_v0 = vadd.f32 %v1400_v61, %v1305_v44  ;;  %v1415_v1 = vadd.f32 %v1414_v62, %v1306_v45  ;;  %v1434_v2 = vadd.f32 %v1430_v58, %v1413_v50  ;;  %v3483_v57 = vld [vmem:[#allocation7 + $0x174] sm:$0xf0]  ;;  %v3489_v58 = vld [vmem:[#allocation7 + $0x170] sm:$0xf]  ;;  %v3797_v61 = vld [vmem:[#allocation7 + $0x178] sm:$0xf0] }
 0x78b   :  { %v3486_v62 = vor.u32 %v3795_v54, %v3483_v57 }
 0x78c   :  { %v1423_v3 = vmul.f32 0.044715, %v1401_v0  ;;  %v1424_v4 = vmul.f32 0.044715, %v1415_v1  ;;  %v1437_v5 = vmul.f32 0.7978846, %v1433_v63  ;;  %v3490_v63 = vor.u32 %v3797_v61, %v3489_v58 }
 0x78d   :  { %v1438_v8 = vmul.f32 0.7978846, %v1434_v2  ;;  %v1419_v22 = vmul.f32 0.5, %v1401_v0  ;;  %v1420_v25 = vmul.f32 0.5, %v1415_v1  ;;  %1854 = vmatpush.bf16.msrb.mxu1 %v3486_v62  ;;  %v3792_v2 = vld [vmem:[#allocation7 + $0x154] sm:$0xf] }
 0x78e   :  { %v1427_v6 = vmul.f32 %v1423_v3, %v1401_v0  ;;  %v1428_v9 = vmul.f32 %v1424_v4, %v1415_v1  ;;  %4005 = vtanh.f32 %v1437_v5  ;;  %1868 = vmatpush.bf16.msra.mxu2 %v3490_v63  ;;  %v3471_v4 = vld [vmem:[#allocation7 + $0x15c] sm:$0xf0]  ;;  %v3477_v5 = vld [vmem:[#allocation7 + $0x158] sm:$0xf]  ;;  %v3775_v61 = vld [vmem:[#allocation7 + $0xc8] sm:$0xf0] }
 0x78f   :  { %4007 = vtanh.f32 %v1438_v8  ;;  %v3474_v8 = vor.u32 %v3792_v2, %v3471_v4  ;;  %v3397_v58 = vld [vmem:[#allocation7 + $0xc0] sm:$0xf]  ;;  %v3774_v62 = vld [vmem:[#allocation7 + $0xc4] sm:$0xf]  ;;  %v3405_v2 = vld [vmem:[#allocation7 + $0xc8] sm:$0xf] }
 0x790   :  { %v1431_v34 = vmul.f32 %v1427_v6, %v1401_v0  ;;  %v1432_v11 = vmul.f32 %v1428_v9, %v1415_v1  ;;  %v3794_v6 = vld [vmem:[#allocation7 + $0x160] sm:$0xf0] }
 0x791   :  { %v3478_v9 = vor.u32 %v3794_v6, %v3477_v5  ;;  %1855 = vmatpush.bf16.msrb.mxu1 %v3474_v8 }
 0x792   :  { %v1435_v35 = vadd.f32 %v1431_v34, %v1401_v0  ;;  %v1436_v12 = vadd.f32 %v1432_v11, %v1415_v1  ;;  %v3469_v0 = vld [vmem:[#allocation7 + $0x150] sm:$0xf]  ;;  %v3793_v1 = vld [vmem:[#allocation7 + $0x158] sm:$0xf0]  ;;  %v3457_v34 = vld [vmem:[#allocation7 + $0x138] sm:$0xf] }
 0x793   :  { %v3470_v3 = vor.u32 %v3793_v1, %v3469_v0  ;;  %1869 = vmatpush.bf16.msra.mxu2 %v3478_v9  ;;  %v3790_v11 = vld [vmem:[#allocation7 + $0x140] sm:$0xf0]  ;;  %v3398_v0 = vor.u32 %v3775_v61, %v3397_v58  ;;  %v3399_v1 = vld [vmem:[#allocation7 + $0xcc] sm:$0xf0] }
 0x794   :  { %v1439_v13 = vmul.f32 0.7978846, %v1435_v35  ;;  %v1440_v14 = vmul.f32 0.7978846, %v1436_v12  ;;  %v4006_v15 = vpop.eup %4005  ;;  %v3789_v35 = vld [vmem:[#allocation7 + $0x13c] sm:$0xf]  ;;  %v3458_v12 = vor.u32 %v3790_v11, %v3457_v34  ;;  %v3402_v4 = vor.u32 %v3774_v62, %v3399_v1 }
 0x795   :  { %v4008_v16 = vpop.eup %4007  ;;  %v1445_v17 = vadd.f32 1.0, %v4006_v15  ;;  %v3791_v15 = vld [vmem:[#allocation7 + $0x148] sm:$0xf0] }
 0x796   :  { %4009 = vtanh.f32 %v1439_v13  ;;  %v1446_v19 = vadd.f32 1.0, %v4008_v16  ;;  %v3459_v13 = vld [vmem:[#allocation7 + $0x144] sm:$0xf0] }
 0x797   :  { %4011 = vtanh.f32 %v1440_v14  ;;  %v1449_v60 = vmul.f32 %v1445_v17, %v1417_v21  ;;  %v3465_v14 = vld [vmem:[#allocation7 + $0x140] sm:$0xf]  ;;  %v3462_v16 = vor.u32 %v3789_v35, %v3459_v13 }
 0x798   :  { %v1450_v10 = vmul.f32 %v1446_v19, %v1418_v24  ;;  %v3466_v17 = vor.u32 %v3791_v15, %v3465_v14  ;;  %v3787_v19 = vld [vmem:[#allocation7 + $0x128] sm:$0xf0]  ;;  %v3788_v24 = vld [vmem:[#allocation7 + $0x130] sm:$0xf0] }
 0x799   :  { %1856 = vmatpush.bf16.msrb.mxu1 %v3462_v16 }
 0x79a   :  { %1870 = vmatpush.bf16.msra.mxu2 %v3466_v17 }
 0x79c   :  { %v4010_v18 = vpop.eup %4009 }
 0x79d   :  { %v4012_v20 = vpop.eup %4011  ;;  %v1447_v23 = vadd.f32 1.0, %v4010_v18  ;;  %v3445_v18 = vld [vmem:[#allocation7 + $0x120] sm:$0xf] }
 0x79e   :  { %v1448_v7 = vadd.f32 1.0, %v4012_v20  ;;  %v3786_v20 = vld [vmem:[#allocation7 + $0x124] sm:$0xf]  ;;  %v3446_v21 = vor.u32 %v3787_v19, %v3445_v18 }
 0x79f   :  { %v1451_v28 = vmul.f32 %v1447_v23, %v1419_v22  ;;  %v3447_v22 = vld [vmem:[#allocation7 + $0x12c] sm:$0xf0]  ;;  %v3453_v23 = vld [vmem:[#allocation7 + $0x128] sm:$0xf] }
 0x7a0   :  { %v1452_v29 = vmul.f32 %v1448_v7, %v1420_v25  ;;  %v3450_v25 = vor.u32 %v3786_v20, %v3447_v22  ;;  %v3454_v7 = vor.u32 %v3788_v24, %v3453_v23  ;;  %v3954_v23 = vld [vmem:[%s4857_s18] ss:$0 sm:$0xff] }
 0x7a1   :  { %v1453_v30 = vpack.c.bf16 %v1451_v28, %v1449_v60  ;;  %v3433_v60 = vld [vmem:[#allocation7 + $0x108] sm:$0xf]  ;;  %v3784_v28 = vld [vmem:[#allocation7 + $0x110] sm:$0xf0] }
 0x7a2   :  { %v1454_v31 = vpack.c.bf16 %v1452_v29, %v1450_v10  ;;  %1857 = vmatpush.bf16.msrb.mxu1 %v3450_v25  ;;  %1871 = vmatpush.bf16.msra.mxu2 %v3454_v7  ;;  %v3783_v10 = vld [vmem:[#allocation7 + $0x10c] sm:$0xf]  ;;  %v3434_v29 = vor.u32 %v3784_v28, %v3433_v60  ;;  %v3955_v28 = vld [vmem:[%s4858_s19] ss:$0 sm:$0xff] }
 0x7a3   :  { %1595 = vmatmul.bf16.vlgmr.msrb.gmra.mxu2 %v1453_v30  ;;  %v3435_v30 = vld [vmem:[#allocation7 + $0x114] sm:$0xf0] }
 0x7a4   :  { %1609 = vmatmul.bf16.vlgmr.msrb.gmra.mxu3 %v1454_v31  ;;  %v3441_v31 = vld [vmem:[#allocation7 + $0x110] sm:$0xf] }
 0x826   :  { %v1596_v33 = vpop.f32.mrf.mxu2 }
 0x827   :  { %v1597_v55 = vadd.f32 %v3953_v32, %v1596_v33  ;;  %v1610_v36 = vpop.f32.mrf.mxu3  ;;  %v3438_v33 = vor.u32 %v3783_v10, %v3435_v30 }
 0x829   :  { %v1611_v37 = vadd.f32 %v1610_v36, %v1597_v55  ;;  %1858 = vmatpush.bf16.msrb.mxu1 %v3438_v33  ;;  %v3421_v36 = vld [vmem:[#allocation7 + $0xf0] sm:$0xf] }
 0x82b   :  { %v1615_v38 = vadd.f32 %v1611_v37, %v4642_v26  ;;  %v3781_v37 = vld [vmem:[#allocation7 + $0xf8] sm:$0xf0] }
 0x82d   :  { %1619 = vadd.xlane.f32.xlu2 %v1615_v38 }
 0x82e   :  { %v1598_v59 = vpop.f32.mrf.mxu2 }
 0x82f   :  { %v1599_v40 = vadd.f32 %v3953_v32, %v1598_v59  ;;  %v1612_v41 = vpop.f32.mrf.mxu3  ;;  %v3785_v32 = vld [vmem:[#allocation7 + $0x118] sm:$0xf0]  ;;  %v3422_v59 = vor.u32 %v3781_v37, %v3421_v36 }
 0x830   :  { %v3442_v55 = vor.u32 %v3785_v32, %v3441_v31 }
 0x831   :  { %v1613_v42 = vadd.f32 %v1612_v41, %v1599_v40  ;;  %v3423_v40 = vld [vmem:[#allocation7 + $0xfc] sm:$0xf0]  ;;  %v3429_v41 = vld [vmem:[#allocation7 + $0xf8] sm:$0xf] }
 0x832   :  { %1872 = vmatpush.bf16.msra.mxu2 %v3442_v55 }
 0x833   :  { %v1616_v43 = vadd.f32 %v1613_v42, %v4644_v27  ;;  %v3481_v27 = vld [vmem:[#allocation7 + $0x168] sm:$0xf]  ;;  %v3782_v42 = vld [vmem:[#allocation7 + $0x100] sm:$0xf0] }
 0x834   :  { %v3482_v56 = vor.u32 %v3796_v53, %v3481_v27  ;;  %v3417_v27 = vld [vmem:[#allocation7 + $0xe0] sm:$0xf]  ;;  %v3779_v53 = vld [vmem:[#allocation7 + $0xe8] sm:$0xf0] }
 0x835   :  { %1621 = vadd.xlane.f32.xlu1 %v1616_v43  ;;  %v3418_v57 = vor.u32 %v3779_v53, %v3417_v27 }
 0x836   :  { %1840 = vmatpush.bf16.msrb.mxu0 %v3482_v56 }
 0x83a   :  { %1841 = vmatpush.bf16.msrb.mxu0 %v3470_v3  ;;  %v3776_v3 = vld [vmem:[#allocation7 + $0xd0] sm:$0xf0] }
 0x83b   :  { %v3406_v5 = vor.u32 %v3776_v3, %v3405_v2 }
 0x83e   :  { %1842 = vmatpush.bf16.msrb.mxu0 %v3458_v12 }
 0x842   :  { %1843 = vmatpush.bf16.msrb.mxu0 %v3446_v21 }
 0x846   :  { %1844 = vmatpush.bf16.msrb.mxu0 %v3434_v29 }
 0x84a   :  { %1845 = vmatpush.bf16.msrb.mxu0 %v3422_v59 }
 0x8a0   :  { %v1620_v44 = vpop.xlane.xlu2 %1619 }
 0x8a1   :  { %v1623_v45 = vmul.f32 %v1620_v44, %v4479_v52  ;;  %v3430_v44 = vor.u32 %v3782_v42, %v3429_v41 }
 0x8a3   :  { %v4657_v46 = vsub.f32 %v1615_v38, %v1623_v45  ;;  %v3780_v38 = vld [vmem:[#allocation7 + $0xf4] sm:$0xf]  ;;  %1873 = vmatpush.bf16.msra.mxu2 %v3430_v44  ;;  %v3409_v45 = vld [vmem:[#allocation7 + $0xd8] sm:$0xf] }
 0x8a5   :  { %v1627_v47 = vmul.f32 %v4657_v46, %v4657_v46 }
 0x8a7   :  { %1629 = vadd.xlane.f32.xlu1 %v1627_v47  ;;  %v3778_v47 = vld [vmem:[#allocation7 + $0xe0] sm:$0xf0]  ;;  %1874 = vmatpush.bf16.msra.mxu2 %v3418_v57 }
 0x8a8   :  { %v1622_v49 = vpop.xlane.xlu1 %1621 }
 0x8a9   :  { %v1624_v26 = vmul.f32 %v1622_v49, %v4479_v52  ;;  %v3777_v49 = vld [vmem:[#allocation7 + $0xdc] sm:$0xf] }
 0x8ab   :  { %v4662_v50 = vsub.f32 %v1616_v43, %v1624_v26  ;;  %v3426_v43 = vor.u32 %v3780_v38, %v3423_v40  ;;  %v3410_v26 = vor.u32 %v3778_v47, %v3409_v45  ;;  %1875 = vmatpush.bf16.msra.mxu2 %v3406_v5 }
 0x8ad   :  { %v1628_v51 = vmul.f32 %v4662_v50, %v4662_v50  ;;  %1859 = vmatpush.bf16.msrb.mxu1 %v3426_v43  ;;  %1846 = vmatpush.bf16.msrb.mxu0 %v3410_v26 }
 0x8af   :  { %1631 = vadd.xlane.f32.xlu1 %v1628_v51  ;;  %v3411_v51 = vld [vmem:[#allocation7 + $0xe4] sm:$0xf0] }
 0x8b0   :  { %v3414_v56 = vor.u32 %v3777_v49, %v3411_v51 }
 0x8b1   :  { %1847 = vmatpush.bf16.msrb.mxu0 %v3398_v0 }
 0x8b2   :  { %1860 = vmatpush.bf16.msrb.mxu1 %v3414_v56 }
 0x8b6   :  { %1861 = vmatpush.bf16.msrb.mxu1 %v3402_v4 }
 0x91a   :  { %v1630_v54 = vpop.xlane.xlu1 %1629 }
 0x91b   :  { %v1633_v63 = vmul.f32 %v1630_v54, %v4479_v52 }
 0x91d   :  { %v1635_v6 = vadd.f32 1e-12, %v1633_v63 }
 0x91f   :  { %4013 = vrsqrt.f32 %v1635_v6  ;;  %vm1643_vm3 = vweird.f32 %v1635_v6 }
 0x922   :  { %v1632_v8 = vpop.xlane.xlu1 %1631 }
 0x923   :  { %v1634_v9 = vmul.f32 %v1632_v8, %v4479_v52 }
 0x925   :  { %v4014_v34 = vpop.eup %4013  ;;  %v1636_v11 = vadd.f32 1e-12, %v1634_v9 }
 0x926   :  { %v1638_v35 = vmul.f32 %v4014_v34, %v1635_v6  ;;  %vm1644_vm2 = vweird.f32 %v4014_v34 }
 0x927   :  { %4015 = vrsqrt.f32 %v1636_v11  ;;  %vm1645_vm4 = vmor %vm1643_vm3, %vm1644_vm2  ;;  %vm1653_vm6 = vweird.f32 %v1636_v11 }
 0x928   :  { %v1639_v12 = vmul.f32 %v4014_v34, %v1638_v35 }
 0x92a   :  { %v1640_v13 = vmul.f32 0.5, %v1639_v12 }
 0x92c   :  { %v1641_v14 = vsub.f32 1.5, %v1640_v13 }
 0x92d   :  { %v4016_v15 = vpop.eup %4015 }
 0x92e   :  { %v1642_v16 = vmul.f32 %v4014_v34, %v1641_v14  ;;  %v1648_v17 = vmul.f32 %v4016_v15, %v1636_v11  ;;  %vm1654_vm5 = vweird.f32 %v4016_v15 }
 0x92f   :  { %vm1655_vm7 = vmor %vm1653_vm6, %vm1654_vm5  ;;  %vm3093_vm5 = vcmask 25600  }
 0x930   :  { %v1649_v18 = vmul.f32 %v4016_v15, %v1648_v17  ;;  %v1646_v19 = vsel %vm1645_vm4, %v4014_v34, %v1642_v16  ;;  %vm3028_vm4 = vcmask 1041409  }
 0x931   :  { %v1657_v22 = vmul.f32 %v1646_v19, %v4657_v46 }
 0x932   :  { %v1650_v20 = vmul.f32 0.5, %v1649_v18 }
 0x933   :  { %v1662_v60 = vmul.f32 %v3954_v23, %v1657_v22 }
 0x934   :  { %v1651_v21 = vsub.f32 1.5, %v1650_v20 }
 0x935   :  { %v4676_v29 = vadd.f32 %v3955_v28, %v1662_v60 }
 0x936   :  { %v1652_v24 = vmul.f32 %v4016_v15, %v1651_v21 }
 0x938   :  { %v1656_v25 = vsel %vm1655_vm7, %v4016_v15, %v1652_v24 }
 0x939   :  { %v1658_v7 = vmul.f32 %v1656_v25, %v4662_v50  ;;  %v3394_v50 = vld [vmem:[%s4848_s9 + $0x3] sm:$0x7] }
 0x93a   :  { %v1707_v31 = vperm.slane %v3394_v50, 1  ;;  %v1706_v37 = vperm.slane %v3394_v50, 0  ;;  %v1708_v26 = vperm.slane %v3394_v50, 2 }
 0x93b   :  { %v1663_v10 = vmul.f32 %v3954_v23, %v1658_v7 }
 0x93d   :  { %v4678_v30 = vadd.f32 %v3955_v28, %v1663_v10 }
 0x93f   :  { %v1669_v46 = vpack.c.bf16 %v4678_v30, %v4676_v29 }
 0x941   :  { %1848 = vmatmul.bf16.vlgmr.msrb.gmra.mxu0 %v1669_v46  ;;  %1862 = vmatmul.bf16.vlgmr.msrb.gmra.mxu1 %v1669_v46 }
 0x942   :  { %1876 = vmatmul.bf16.vlgmr.msra.gmra.mxu2 %v1669_v46 }
 0x9be   :  { %v1849_v32 = vpop.f32.mrf.mxu0  ;;  %v1863_v33 = vpop.f32.mrf.mxu1 }
 0x9bf   :  { %v1864_v55 = vadd.f32 %v1863_v33, %v1707_v31  ;;  %v1850_v40 = vadd.f32 %v1849_v32, %v1706_v37 }
 0x9c1   :  { %v1930_v36 = vpack.c.bf16 %v1864_v55, %v1864_v55  ;;  %v1902_v49 = vpack.c.bf16 %v1850_v40, %v1850_v40 }
 0x9c3   :  { %v1970_v38 = vsel %vm641_vm9, %v1930_v36, 0 }
 0x9c4   :  { %1979 = vmatpush.bf16.xpose.msra.mxu3 %v1970_v38 }
 0x9c5   :  { %v1877_v59 = vpop.f32.mrf.mxu2 }
 0x9c6   :  { %v1851_v41 = vpop.f32.mrf.mxu0  ;;  %v1865_v42 = vpop.f32.mrf.mxu1  ;;  %v1878_v54 = vadd.f32 %v1877_v59, %v1708_v26 }
 0x9c7   :  { %v1852_v43 = vadd.f32 %v1851_v41, %v1706_v37  ;;  %v1866_v44 = vadd.f32 %v1865_v42, %v1707_v31 }
 0x9c8   :  { %v1958_v3 = vpack.c.bf16 %v1878_v54, %v1878_v54 }
 0x9c9   :  { %v3908_v45 = vpack.i.bf16 %v1866_v44, %v1864_v55  ;;  %v3913_v47 = vpack.i.bf16 %v1852_v43, %v1850_v40  ;;  %v1931_v51 = vpack.c.bf16 %v1866_v44, %v1866_v44  ;;  %v1903_v58 = vpack.c.bf16 %v1852_v43, %v1852_v43 }
 0x9ca   :  { %v2234_v16 = vsel %vm910_vm10, %v1958_v3, 0 }
 0x9cb   :  { %3909 = vrot.lane.b32.xlu0 %v3908_v45, %s4875_s14  ;;  %3904 = vrot.lane.b32.xlu1 %v3908_v45, %s4310_s20  ;;  %v1989_v27 = vsel %vm641_vm9, %v1931_v51, 0 }
 0x9cc   :  { %3914 = vrot.lane.b32.xlu2 %v3913_v47, %s4310_s20  ;;  %3491 = vmatmul.msk.bf16.vlgmr.msra.gmra.mxu3 %vm641_vm9, %v1902_v49 }
 0x9cd   :  { %v1879_v53 = vpop.f32.mrf.mxu2  ;;  %1998 = vmatpush.bf16.xpose.msrb.mxu3 %v1989_v27 }
 0x9ce   :  { %v1880_v56 = vadd.f32 %v1879_v53, %v1708_v26 }
 0x9d0   :  { %v4691_v57 = vpack.i.bf16 %v1880_v56, %v1878_v54  ;;  %v1959_v4 = vpack.c.bf16 %v1880_v56, %v1880_v56 }
 0x9d2   :  { %v2253_v17 = vsel %vm910_vm10, %v1959_v4, 0 }
 0x9d3   :  { %3924 = vrot.lane.b32.xlu1 %v3908_v45, %s4311_s21  ;;  %3919 = vrot.lane.b32.xlu0 %v3913_v47, %s4875_s14 }
 0x9db   :  { %3929 = vrot.lane.b32.xlu0 %v3913_v47, %s4311_s21 }
 0x9dc   :  { %3492 = vmatmul.msk.bf16.vlgmr.msrb.gmra.mxu3 %vm641_vm9, %v1903_v58 }
 0xa26   :  { %v3915_v5 = vpop.permute.xlu2 %3914 }
 0xa27   :  { %v3917_v14 = vunpack.i.h.bf16 %v3915_v5  ;;  %v3916_v15 = vunpack.i.l.bf16 %v3915_v5 }
 0xa29   :  { %v1905_v24 = vpack.c.bf16 %v3917_v14, %v3917_v14  ;;  %v1904_v25 = vpack.c.bf16 %v3916_v15, %v3916_v15 }
 0xa3d   :  { %v3910_v61 = vpop.permute.xlu0 %3909  ;;  %v3905_v62 = vpop.permute.xlu1 %3904 }
 0xa3e   :  { %v3912_v63 = vunpack.i.h.bf16 %v3910_v61  ;;  %v3911_v0 = vunpack.i.l.bf16 %v3910_v61  ;;  %v3907_v1 = vunpack.i.h.bf16 %v3905_v62  ;;  %v3906_v2 = vunpack.i.l.bf16 %v3905_v62 }
 0xa40   :  { %v1935_v6 = vpack.c.bf16 %v3912_v63, %v3912_v63  ;;  %v1934_v8 = vpack.c.bf16 %v3911_v0, %v3911_v0  ;;  %v1933_v9 = vpack.c.bf16 %v3907_v1, %v3907_v1  ;;  %v1932_v34 = vpack.c.bf16 %v3906_v2, %v3906_v2 }
 0xa42   :  { %v2008_v11 = vsel %vm641_vm9, %v1932_v34, 0  ;;  %v2027_v35 = vsel %vm641_vm9, %v1933_v9, 0  ;;  %v2046_v12 = vsel %vm641_vm9, %v1934_v8, 0  ;;  %v2065_v13 = vsel %vm641_vm9, %v1935_v6, 0 }
 0xa43   :  { %2017 = vmatpush.bf16.xpose.msra.mxu0 %v2008_v11  ;;  %2036 = vmatpush.bf16.xpose.msra.mxu1 %v2027_v35 }
 0xa44   :  { %2055 = vmatpush.bf16.xpose.msrb.mxu2 %v2046_v12  ;;  %2074 = vmatpush.bf16.xpose.msra.mxu3 %v2065_v13 }
 0xa45   :  { %v3925_v18 = vpop.permute.xlu1 %3924  ;;  %v3920_v19 = vpop.permute.xlu0 %3919 }
 0xa46   :  { %v3927_v20 = vunpack.i.h.bf16 %v3925_v18  ;;  %v3926_v21 = vunpack.i.l.bf16 %v3925_v18  ;;  %v3922_v22 = vunpack.i.h.bf16 %v3920_v19  ;;  %v3921_v23 = vunpack.i.l.bf16 %v3920_v19 }
 0xa48   :  { %v1937_v7 = vpack.c.bf16 %v3927_v20, %v3927_v20  ;;  %v1936_v60 = vpack.c.bf16 %v3926_v21, %v3926_v21  ;;  %v1907_v28 = vpack.c.bf16 %v3922_v22, %v3922_v22  ;;  %v1906_v10 = vpack.c.bf16 %v3921_v23, %v3921_v23 }
 0xa4a   :  { %3493 = vmatmul.msk.bf16.vlgmr.msra.gmra.mxu0 %vm641_vm9, %v1904_v25  ;;  %3494 = vmatmul.msk.bf16.vlgmr.msra.gmra.mxu1 %vm641_vm9, %v1905_v24  ;;  %v2084_v46 = vsel %vm641_vm9, %v1936_v60, 0  ;;  %v2103_v50 = vsel %vm641_vm9, %v1937_v7, 0 }
 0xa4b   :  { %3495 = vmatmul.msk.bf16.vlgmr.msrb.gmra.mxu2 %vm641_vm9, %v1906_v10  ;;  %3496 = vmatmul.msk.bf16.vlgmr.msra.gmra.mxu3 %vm641_vm9, %v1907_v28 }
 0xa4c   :  { %2243 = vmatpush.bf16.msra.mxu2 %v2234_v16  ;;  %2262 = vmatpush.bf16.msrb.mxu3 %v2253_v17 }
 0xa4d   :  { %2093 = vmatpush.bf16.xpose.msrb.mxu0 %v2084_v46  ;;  %2112 = vmatpush.bf16.xpose.msrb.mxu1 %v2103_v50  ;;  %v3930_v33 = vpop.permute.xlu0 %3929 }
 0xa4e   :  { %v3932_v36 = vunpack.i.h.bf16 %v3930_v33  ;;  %v3931_v37 = vunpack.i.l.bf16 %v3930_v33 }
 0xa4f   :  { %v1981_v31 = vpop.f32.mrf.mxu3 }
 0xa50   :  { %v2118_v32 = vmul.f32 0.17677669, %v1981_v31  ;;  %v1909_v40 = vpack.c.bf16 %v3932_v36, %v3932_v36  ;;  %v1908_v41 = vpack.c.bf16 %v3931_v37, %v3931_v37 }
 0xa52   :  { %v2126_v55 = vadd.f32 %v2118_v32, %v4537_v39 }
 0xa54   :  { %v2134_v38 = vsel %vm810_vm11, %v2126_v55, -inf }
 0xa55   :  { %2135 = vmax.xlane.f32.xlu1 %v2134_v38 }
 0xa57   :  { %v1983_v59 = vpop.f32.mrf.mxu3 }
 0xa5a   :  { %3497 = vmatmul.msk.bf16.vlgmr.msrb.gmra.mxu0 %vm641_vm9, %v1908_v41  ;;  %3498 = vmatmul.msk.bf16.vlgmr.msrb.gmra.mxu1 %vm641_vm9, %v1909_v40 }
 0xa5f   :  { %v2000_v42 = vpop.f32.mrf.mxu3 }
 0xa60   :  { %v2119_v43 = vmul.f32 0.17677669, %v2000_v42 }
 0xa62   :  { %v2127_v44 = vadd.f32 %v2119_v43, %v4545_v48 }
 0xa64   :  { %v2137_v45 = vsel %vm810_vm11, %v2127_v44, -inf }
 0xa65   :  { %2138 = vmax.xlane.f32.xlu0 %v2137_v45 }
 0xa67   :  { %v2002_v47 = vpop.f32.mrf.mxu3 }
 0xac7   :  { %v2019_v49 = vpop.f32.mrf.mxu0  ;;  %v2038_v26 = vpop.f32.mrf.mxu1 }
 0xac8   :  { %v2120_v51 = vmul.f32 0.17677669, %v2019_v49  ;;  %v2121_v27 = vmul.f32 0.17677669, %v2038_v26  ;;  %v2136_v53 = vpop.xlane.xlu1 %2135 }
 0xac9   :  { %v2158_v54 = vsub.f32 %v2126_v55, %v2136_v53 }
 0xaca   :  { %v2128_v56 = vadd.f32 %v2120_v51, %v4537_v39  ;;  %v2129_v58 = vadd.f32 %v2121_v27, %v4545_v48 }
 0xacb   :  { %v2166_v63 = vmul.f32 1.442695, %v2158_v54 }
 0xacc   :  { %v2140_v61 = vsel %vm810_vm11, %v2128_v56, -inf  ;;  %v2143_v62 = vsel %vm810_vm11, %v2129_v58, -inf }
 0xacd   :  { %2141 = vmax.xlane.f32.xlu2 %v2140_v61  ;;  %2144 = vmax.xlane.f32.xlu1 %v2143_v62  ;;  %4017 = vpow2.f32 %v2166_v63 }
 0xace   :  { %v2057_v0 = vpop.f32.mrf.mxu2  ;;  %v2076_v1 = vpop.f32.mrf.mxu3 }
 0xacf   :  { %v2122_v2 = vmul.f32 0.17677669, %v2057_v0  ;;  %v2123_v3 = vmul.f32 0.17677669, %v2076_v1  ;;  %v2021_v4 = vpop.f32.mrf.mxu0  ;;  %v2040_v5 = vpop.f32.mrf.mxu1 }
 0xad1   :  { %v2131_v6 = vadd.f32 %v2123_v3, %v4545_v48  ;;  %v2130_v8 = vadd.f32 %v2122_v2, %v4537_v39 }
 0xad3   :  { %v2149_v9 = vsel %vm810_vm11, %v2131_v6, -inf  ;;  %v2146_v34 = vsel %vm810_vm11, %v2130_v8, -inf  ;;  %v4018_v14 = vpop.eup %4017 }
 0xad4   :  { %2150 = vmax.xlane.f32.xlu0 %v2149_v9  ;;  %v2182_v19 = vsel %vm810_vm11, %v4018_v14, 0.0 }
 0xad5   :  { %2147 = vmax.xlane.f32.xlu2 %v2146_v34 }
 0xad6   :  { %v2059_v11 = vpop.f32.mrf.mxu2  ;;  %v2078_v35 = vpop.f32.mrf.mxu3 }
 0xad7   :  { %v2095_v12 = vpop.f32.mrf.mxu0  ;;  %v2114_v13 = vpop.f32.mrf.mxu1 }
 0xad8   :  { %v2124_v15 = vmul.f32 0.17677669, %v2095_v12  ;;  %v2125_v16 = vmul.f32 0.17677669, %v2114_v13  ;;  %v2139_v24 = vpop.xlane.xlu0 %2138 }
 0xad9   :  { %v2159_v25 = vsub.f32 %v2127_v44, %v2139_v24 }
 0xada   :  { %v2133_v17 = vadd.f32 %v2125_v16, %v4545_v48  ;;  %v2132_v18 = vadd.f32 %v2124_v15, %v4537_v39 }
 0xadb   :  { %v2168_v7 = vmul.f32 1.442695, %v2159_v25 }
 0xadc   :  { %2183 = vadd.xlane.f32.xlu0 %v2182_v19  ;;  %v2155_v20 = vsel %vm810_vm11, %v2133_v17, -inf  ;;  %v2152_v21 = vsel %vm810_vm11, %v2132_v18, -inf }
 0xadd   :  { %2156 = vmax.xlane.f32.xlu2 %v2155_v20  ;;  %2153 = vmax.xlane.f32.xlu1 %v2152_v21  ;;  %4019 = vpow2.f32 %v2168_v7 }
 0xadf   :  { %v2097_v22 = vpop.f32.mrf.mxu0  ;;  %v2116_v23 = vpop.f32.mrf.mxu1 }
 0xae3   :  { %v4730_v48 = vpop.eup %4019 }
 0xae4   :  { %v2185_v39 = vsel %vm810_vm11, %v4730_v48, 0.0 }
 0xaf6   :  { %3934 = vrot.lane.b32.xlu1 %v4691_v57, %s4310_s20 }
 0xb20   :  { %2186 = vadd.xlane.f32.xlu1 %v2185_v39 }
 0xb39   :  { %3944 = vrot.lane.b32.xlu1 %v4691_v57, %s4311_s21 }
 0xb40   :  { %v2142_v60 = vpop.xlane.xlu2 %2141  ;;  %v2145_v28 = vpop.xlane.xlu1 %2144 }
 0xb41   :  { %v2160_v10 = vsub.f32 %v2128_v56, %v2142_v60  ;;  %v2161_v46 = vsub.f32 %v2129_v58, %v2145_v28 }
 0xb43   :  { %v2170_v50 = vmul.f32 1.442695, %v2160_v10  ;;  %v2172_v31 = vmul.f32 1.442695, %v2161_v46 }
 0xb45   :  { %4021 = vpow2.f32 %v2170_v50 }
 0xb46   :  { %4023 = vpow2.f32 %v2172_v31 }
 0xb47   :  { %v2151_v32 = vpop.xlane.xlu0 %2150 }
 0xb48   :  { %v2163_v33 = vsub.f32 %v2131_v6, %v2151_v32  ;;  %v2148_v55 = vpop.xlane.xlu2 %2147 }
 0xb49   :  { %v2162_v36 = vsub.f32 %v2130_v8, %v2148_v55 }
 0xb4a   :  { %v2176_v37 = vmul.f32 1.442695, %v2163_v33 }
 0xb4b   :  { %v4736_v38 = vpop.eup %4021  ;;  %v2174_v59 = vmul.f32 1.442695, %v2162_v36 }
 0xb4c   :  { %v4738_v40 = vpop.eup %4023  ;;  %4025 = vpow2.f32 %v2176_v37  ;;  %v2188_v41 = vsel %vm810_vm11, %v4736_v38, 0.0 }
 0xb4d   :  { %4027 = vpow2.f32 %v2174_v59  ;;  %2189 = vadd.xlane.f32.xlu2 %v2188_v41  ;;  %v2191_v42 = vsel %vm810_vm11, %v4738_v40, 0.0 }
 0xb4e   :  { %2192 = vadd.xlane.f32.xlu0 %v2191_v42 }
 0xb4f   :  { %v2184_v43 = vpop.xlane.xlu0 %2183 }
 0xb50   :  { %4029 = vrcp.f32 %v2184_v43  ;;  %v2154_v44 = vpop.xlane.xlu1 %2153  ;;  %v2157_v45 = vpop.xlane.xlu2 %2156 }
 0xb51   :  { %v2164_v47 = vsub.f32 %v2132_v18, %v2154_v44  ;;  %v2165_v27 = vsub.f32 %v2133_v17, %v2157_v45 }
 0xb52   :  { %v4744_v49 = vpop.eup %4025 }
 0xb53   :  { %v4746_v26 = vpop.eup %4027  ;;  %v2178_v51 = vmul.f32 1.442695, %v2164_v47  ;;  %v2197_v54 = vsel %vm810_vm11, %v4744_v49, 0.0  ;;  %v2180_v61 = vmul.f32 1.442695, %v2165_v27 }
 0xb54   :  { %v2194_v53 = vsel %vm810_vm11, %v4746_v26, 0.0 }
 0xb55   :  { %2195 = vadd.xlane.f32.xlu2 %v2194_v53  ;;  %4031 = vpow2.f32 %v2178_v51  ;;  %v3799_v53 = vld [vmem:[#allocation8 + $0x48] sm:$0xff] }
 0xb56   :  { %v4030_v56 = vpop.eup %4029  ;;  %2198 = vadd.xlane.f32.xlu0 %v2197_v54  ;;  %4033 = vpow2.f32 %v2180_v61  ;;  %v3798_v54 = vld [vmem:[#allocation8 + $0x40] sm:$0xff] }
 0xb57   :  { %v2214_v58 = vmul.f32 %v4030_v56, %v4018_v14 }
 0xb59   :  { %v2222_v62 = vpack.c.bf16 %v2214_v58, %v2214_v58 }
 0xb5b   :  { %3499 = vmatmul.msk.bf16.vlgmr.msra.gmra.mxu2 %vm810_vm11, %v2222_v62  ;;  %v4753_v63 = vpop.eup %4031 }
 0xb5c   :  { %v2200_v0 = vsel %vm810_vm11, %v4753_v63, 0.0  ;;  %v4757_v1 = vpop.eup %4033 }
 0xb5d   :  { %v2203_v2 = vsel %vm810_vm11, %v4757_v1, 0.0 }
 0xb5e   :  { %2201 = vadd.xlane.f32.xlu0 %v2200_v0 }
 0xb66   :  { %2204 = vadd.xlane.f32.xlu0 %v2203_v2  ;;  %v3801_v2 = vld [vmem:[#allocation8 + $0x58] sm:$0xff] }
 0xb68   :  { %v3935_v3 = vpop.permute.xlu1 %3934 }
 0xb69   :  { %v3937_v4 = vunpack.i.h.bf16 %v3935_v3  ;;  %v3936_v5 = vunpack.i.l.bf16 %v3935_v3 }
 0xb6b   :  { %v1961_v6 = vpack.c.bf16 %v3937_v4, %v3937_v4  ;;  %v1960_v8 = vpack.c.bf16 %v3936_v5, %v3936_v5  ;;  %v3803_v4 = vld [vmem:[#allocation8 + $0x68] sm:$0xff]  ;;  %v3802_v5 = vld [vmem:[#allocation8 + $0x60] sm:$0xff] }
 0xb6d   :  { %3939 = vrot.lane.b32.xlu2 %v4691_v57, %s4875_s14  ;;  %v2272_v9 = vsel %vm910_vm10, %v1960_v8, 0  ;;  %v2291_v34 = vsel %vm910_vm10, %v1961_v6, 0  ;;  %v3805_v6 = vld [vmem:[#allocation8 + $0x78] sm:$0xff]  ;;  %v3804_v8 = vld [vmem:[#allocation8 + $0x70] sm:$0xff] }
 0xb6e   :  { %2281 = vmatpush.bf16.msra.mxu0 %v2272_v9  ;;  %2300 = vmatpush.bf16.msra.mxu1 %v2291_v34 }
 0xb93   :  { %v2187_v11 = vpop.xlane.xlu1 %2186 }
 0xb94   :  { %4035 = vrcp.f32 %v2187_v11 }
 0xb9a   :  { %v4036_v35 = vpop.eup %4035 }
 0xb9b   :  { %v2215_v12 = vmul.f32 %v4036_v35, %v4730_v48 }
 0xb9d   :  { %v2223_v13 = vpack.c.bf16 %v2215_v12, %v2215_v12 }
 0xb9f   :  { %3500 = vmatmul.msk.bf16.vlgmr.msrb.gmra.mxu3 %vm810_vm11, %v2223_v13 }
 0xbab   :  { %v3945_v14 = vpop.permute.xlu1 %3944 }
 0xbac   :  { %v3947_v15 = vunpack.i.h.bf16 %v3945_v14  ;;  %v3946_v16 = vunpack.i.l.bf16 %v3945_v14 }
 0xbae   :  { %v1965_v17 = vpack.c.bf16 %v3947_v15, %v3947_v15  ;;  %v1964_v18 = vpack.c.bf16 %v3946_v16, %v3946_v16 }
 0xbb0   :  { %v2348_v57 = vsel %vm910_vm10, %v1964_v18, 0  ;;  %v2367_v19 = vsel %vm910_vm10, %v1965_v17, 0 }
 0xbb1   :  { %2357 = vmatpush.bf16.msrb.mxu0 %v2348_v57  ;;  %2376 = vmatpush.bf16.msrb.mxu1 %v2367_v19 }
 0xbc0   :  { %v2190_v20 = vpop.xlane.xlu2 %2189 }
 0xbc1   :  { %4037 = vrcp.f32 %v2190_v20  ;;  %v2193_v21 = vpop.xlane.xlu0 %2192 }
 0xbc2   :  { %4039 = vrcp.f32 %v2193_v21 }
 0xbc7   :  { %v4038_v22 = vpop.eup %4037 }
 0xbc8   :  { %v4040_v23 = vpop.eup %4039  ;;  %v2216_v24 = vmul.f32 %v4038_v22, %v4736_v38  ;;  %v2196_v25 = vpop.xlane.xlu2 %2195 }
 0xbc9   :  { %v2217_v7 = vmul.f32 %v4040_v23, %v4738_v40  ;;  %4041 = vrcp.f32 %v2196_v25  ;;  %v2199_v48 = vpop.xlane.xlu0 %2198 }
 0xbca   :  { %v2224_v39 = vpack.c.bf16 %v2216_v24, %v2216_v24  ;;  %4043 = vrcp.f32 %v2199_v48 }
 0xbcb   :  { %v2225_v60 = vpack.c.bf16 %v2217_v7, %v2217_v7 }
 0xbcc   :  { %3501 = vmatmul.msk.bf16.vlgmr.msra.gmra.mxu0 %vm810_vm11, %v2224_v39 }
 0xbcd   :  { %3502 = vmatmul.msk.bf16.vlgmr.msra.gmra.mxu1 %vm810_vm11, %v2225_v60  ;;  %2501 = vmatpush.bf16.msra.mxu0 %v3803_v4 }
 0xbce   :  { %2535 = vmatpush.bf16.msra.mxu1 %v3805_v6  ;;  %v3819_v6 = vld [vmem:[#allocation10 + $0xe4] sm:$0xf0] }
 0xbcf   :  { %v4042_v28 = vpop.eup %4041 }
 0xbd0   :  { %v4044_v10 = vpop.eup %4043  ;;  %v3940_v46 = vpop.permute.xlu2 %3939  ;;  %v2218_v33 = vmul.f32 %v4042_v28, %v4746_v26 }
 0xbd1   :  { %v3942_v50 = vunpack.i.h.bf16 %v3940_v46  ;;  %v3941_v31 = vunpack.i.l.bf16 %v3940_v46  ;;  %v2202_v32 = vpop.xlane.xlu0 %2201  ;;  %v2219_v55 = vmul.f32 %v4044_v10, %v4744_v49  ;;  %2502 = vmatpush.bf16.msra.mxu0 %v3802_v5  ;;  %v3597_v5 = vld [vmem:[#allocation10 + $0xe0] sm:$0xf] }
 0xbd2   :  { %4045 = vrcp.f32 %v2202_v32  ;;  %v2226_v40 = vpack.c.bf16 %v2218_v33, %v2218_v33  ;;  %2536 = vmatpush.bf16.msra.mxu1 %v3804_v8  ;;  %v3818_v8 = vld [vmem:[#allocation10 + $0xe4] sm:$0xf] }
 0xbd3   :  { %v1963_v36 = vpack.c.bf16 %v3942_v50, %v3942_v50  ;;  %v1962_v37 = vpack.c.bf16 %v3941_v31, %v3941_v31  ;;  %v2227_v41 = vpack.c.bf16 %v2219_v55, %v2219_v55 }
 0xbd5   :  { %v2310_v38 = vsel %vm910_vm10, %v1962_v37, 0  ;;  %v2329_v59 = vsel %vm910_vm10, %v1963_v36, 0  ;;  %v3956_v37 = vld [vmem:[%s4850_s11 + $0x1] ss:$0 sm:$0xff] }
 0xbd6   :  { %2319 = vmatpush.bf16.msrb.mxu2 %v2310_v38  ;;  %2338 = vmatpush.bf16.msra.mxu3 %v2329_v59 }
 0xbd8   :  { %v4046_v42 = vpop.eup %4045 }
 0xbd9   :  { %v2220_v43 = vmul.f32 %v4046_v42, %v4753_v63  ;;  %v2205_v44 = vpop.xlane.xlu0 %2204  ;;  %3503 = vmatmul.msk.bf16.vlgmr.msrb.gmra.mxu2 %vm810_vm11, %v2226_v40  ;;  %3504 = vmatmul.msk.bf16.vlgmr.msra.gmra.mxu3 %vm810_vm11, %v2227_v41 }
 0xbda   :  { %4047 = vrcp.f32 %v2205_v44  ;;  %2433 = vmatpush.bf16.msra.mxu2 %v3799_v53  ;;  %2467 = vmatpush.bf16.msrb.mxu3 %v3801_v2  ;;  %v3820_v2 = vld [vmem:[#allocation10 + $0xf4] sm:$0xf] }
 0xbdb   :  { %v2228_v45 = vpack.c.bf16 %v2220_v43, %v2220_v43 }
 0xbdd   :  { %3505 = vmatmul.msk.bf16.vlgmr.msrb.gmra.mxu0 %vm810_vm11, %v2228_v45 }
 0xbde   :  { %v2245_v47 = vpop.f32.mrf.mxu2  ;;  %2434 = vmatpush.bf16.msra.mxu2 %v3798_v54 }
 0xbdf   :  { %v2382_v56 = vpack.c.bf16 %v2245_v47, %v2245_v47 }
 0xbe0   :  { %v4048_v49 = vpop.eup %4047 }
 0xbe1   :  { %v2221_v26 = vmul.f32 %v4048_v49, %v4757_v1  ;;  %v2409_v62 = vunpack.c.l.b16 %v2382_v56  ;;  %v3800_v1 = vld [vmem:[#allocation8 + $0x50] sm:$0xff] }
 0xbe2   :  { %2468 = vmatpush.bf16.msrb.mxu3 %v3800_v1  ;;  %v3607_v1 = vld [vmem:[#allocation10 + $0xf8] sm:$0xf0] }
 0xbe3   :  { %v2229_v51 = vpack.c.bf16 %v2221_v26, %v2221_v26  ;;  %v3610_v4 = vor.u32 %v3820_v2, %v3607_v1 }
 0xbe5   :  { %3506 = vmatmul.msk.bf16.vlgmr.msrb.gmra.mxu1 %vm810_vm11, %v2229_v51 }
 0xbe6   :  { %v2247_v27 = vpop.f32.mrf.mxu2  ;;  %2731 = vmatpush.bf16.msra.mxu3 %v3610_v4 }
 0xc22   :  { %v2264_v58 = vpop.f32.mrf.mxu3 }
 0xc23   :  { %v2383_v61 = vpack.c.bf16 %v2264_v58, %v2264_v58 }
 0xc25   :  { %v2410_v63 = vunpack.c.l.b16 %v2383_v61 }
 0xc27   :  { %v2411_v0 = vpack.c.b16 %v2410_v63, %v2409_v62 }
 0xc29   :  { %3515 = vmatmul.msk.bf16.vlgmr.msra.gmra.mxu2 %vm641_vm9, %v2411_v0  ;;  %v3821_v0 = vld [vmem:[#allocation10 + $0xf4] sm:$0xf0] }
 0xc2a   :  { %v2266_v3 = vpop.f32.mrf.mxu3 }
 0xc49   :  { %v2283_v9 = vpop.f32.mrf.mxu0 }
 0xc4a   :  { %v2384_v34 = vpack.c.bf16 %v2283_v9, %v2283_v9  ;;  %v2302_v11 = vpop.f32.mrf.mxu1  ;;  %v3598_v9 = vor.u32 %v3819_v6, %v3597_v5  ;;  %v3957_v5 = vld [vmem:[%s4851_s12 + $0x1] ss:$0 sm:$0xff] }
 0xc4b   :  { %v2385_v35 = vpack.c.bf16 %v2302_v11, %v2302_v11 }
 0xc4c   :  { %v2443_v12 = vunpack.c.l.b16 %v2384_v34  ;;  %v3599_v34 = vld [vmem:[#allocation10 + $0xe8] sm:$0xf0] }
 0xc4d   :  { %v2444_v13 = vunpack.c.l.b16 %v2385_v35  ;;  %v3602_v11 = vor.u32 %v3818_v8, %v3599_v34  ;;  %v3589_v35 = vld [vmem:[#allocation10 + $0xd0] sm:$0xf] }
 0xc4f   :  { %v2445_v14 = vpack.c.b16 %v2444_v13, %v2443_v12  ;;  %2732 = vmatpush.bf16.msra.mxu3 %v3602_v11  ;;  %v3817_v12 = vld [vmem:[#allocation10 + $0xd4] sm:$0xf0]  ;;  %v3816_v13 = vld [vmem:[#allocation10 + $0xd4] sm:$0xf]  ;;  %v3958_v11 = vld [vmem:[%s4852_s13 + $0x1] ss:$0 sm:$0xff] }
 0xc51   :  { %3524 = vmatmul.msk.bf16.vlgmr.msrb.gmra.mxu3 %vm641_vm9, %v2445_v14  ;;  %v2285_v15 = vpop.f32.mrf.mxu0  ;;  %v3590_v14 = vor.u32 %v3817_v12, %v3589_v35 }
 0xc52   :  { %v2304_v16 = vpop.f32.mrf.mxu1  ;;  %v3591_v15 = vld [vmem:[#allocation10 + $0xd8] sm:$0xf0] }
 0xc53   :  { %v3594_v16 = vor.u32 %v3816_v13, %v3591_v15  ;;  %v3837_v15 = vld [vmem:[#allocation11 + $0xf8] sm:$0xff] }
 0xc54   :  { %2931 = vmatpush.bf16.msrb.mxu1 %v3837_v15 }
 0xc55   :  { %2733 = vmatpush.bf16.msra.mxu3 %v3594_v16  ;;  %v3836_v16 = vld [vmem:[#allocation11 + $0xf0] sm:$0xff] }
 0xc58   :  { %2932 = vmatpush.bf16.msrb.mxu1 %v3836_v16 }
 0xc5a   :  { %v2359_v17 = vpop.f32.mrf.mxu0 }
 0xc5b   :  { %v2388_v23 = vpack.c.bf16 %v2359_v17, %v2359_v17  ;;  %v3581_v17 = vld [vmem:[#allocation10 + $0xc0] sm:$0xf] }
 0xc5c   :  { %v2321_v18 = vpop.f32.mrf.mxu2  ;;  %v2340_v57 = vpop.f32.mrf.mxu3 }
 0xc5d   :  { %v2386_v19 = vpack.c.bf16 %v2321_v18, %v2321_v18  ;;  %v2387_v20 = vpack.c.bf16 %v2340_v57, %v2340_v57  ;;  %v2511_v28 = vunpack.c.l.b16 %v2388_v23  ;;  %v3815_v18 = vld [vmem:[#allocation10 + $0xc4] sm:$0xf0]  ;;  %v3814_v57 = vld [vmem:[#allocation10 + $0xc4] sm:$0xf]  ;;  %v3813_v23 = vld [vmem:[#allocation10 + $0xb4] sm:$0xf0] }
 0xc5f   :  { %v2477_v21 = vunpack.c.l.b16 %v2386_v19  ;;  %v2478_v22 = vunpack.c.l.b16 %v2387_v20  ;;  %v3582_v19 = vor.u32 %v3815_v18, %v3581_v17  ;;  %v3583_v20 = vld [vmem:[#allocation10 + $0xc8] sm:$0xf0] }
 0xc60   :  { %v3827_v17 = vld [vmem:[#allocation11 + $0xa8] sm:$0xff] }
 0xc61   :  { %v2479_v24 = vpack.c.b16 %v2478_v22, %v2477_v21  ;;  %v3586_v21 = vor.u32 %v3814_v57, %v3583_v20  ;;  %v3573_v22 = vld [vmem:[#allocation10 + $0xb0] sm:$0xf]  ;;  %v3835_v18 = vld [vmem:[#allocation11 + $0xe8] sm:$0xff]  ;;  %v3826_v57 = vld [vmem:[#allocation11 + $0xa0] sm:$0xff] }
 0xc62   :  { %v2361_v25 = vpop.f32.mrf.mxu0  ;;  %v2378_v7 = vpop.f32.mrf.mxu1  ;;  %2933 = vmatpush.bf16.msrb.mxu1 %v3835_v18  ;;  %v3825_v20 = vld [vmem:[#allocation11 + $0x98] sm:$0xff] }
 0xc63   :  { %v2389_v48 = vpack.c.bf16 %v2378_v7, %v2378_v7  ;;  %3533 = vmatmul.msk.bf16.vlgmr.msra.gmra.mxu0 %vm641_vm9, %v2479_v24  ;;  %2734 = vmatpush.bf16.msra.mxu3 %v3586_v21  ;;  %v3812_v24 = vld [vmem:[#allocation10 + $0xb4] sm:$0xf]  ;;  %v3574_v25 = vor.u32 %v3813_v23, %v3573_v22  ;;  %v3575_v7 = vld [vmem:[#allocation10 + $0xb8] sm:$0xf0] }
 0xc64   :  { %v2323_v39 = vpop.f32.mrf.mxu2  ;;  %v2342_v60 = vpop.f32.mrf.mxu3  ;;  %v3833_v21 = vld [vmem:[#allocation11 + $0xd8] sm:$0xff]  ;;  %v3824_v22 = vld [vmem:[#allocation11 + $0x90] sm:$0xff] }
 0xc65   :  { %v2512_v10 = vunpack.c.l.b16 %v2389_v48  ;;  %v3578_v48 = vor.u32 %v3812_v24, %v3575_v7  ;;  %v3565_v39 = vld [vmem:[#allocation10 + $0xa0] sm:$0xf]  ;;  %v3811_v60 = vld [vmem:[#allocation10 + $0xa4] sm:$0xf0]  ;;  %v3832_v23 = vld [vmem:[#allocation11 + $0xd0] sm:$0xff] }
 0xc66   :  { %v3546_v24 = vld [vmem:[%s4854_s15 + $0x2] sm:$0x3]  ;;  %v3831_v7 = vld [vmem:[#allocation11 + $0xc8] sm:$0xff] }
 0xc67   :  { %v2513_v46 = vpack.c.b16 %v2512_v10, %v2511_v28  ;;  %2735 = vmatpush.bf16.msra.mxu3 %v3578_v48  ;;  %v3810_v28 = vld [vmem:[#allocation10 + $0xa4] sm:$0xf]  ;;  %v3566_v10 = vor.u32 %v3811_v60, %v3565_v39  ;;  %v2633_v48 = vperm.slane %v3546_v24, 0  ;;  %v2634_v39 = vperm.slane %v3546_v24, 1 }
 0xc68   :  { %v3822_v60 = vld [vmem:[#allocation11 + $0x80] sm:$0xff] }
 0xc69   :  { %3542 = vmatmul.msk.bf16.vlgmr.msra.gmra.mxu1 %vm641_vm9, %v2513_v46  ;;  %v3567_v46 = vld [vmem:[#allocation10 + $0xa8] sm:$0xf0] }
 0xc6a   :  { %v2380_v50 = vpop.f32.mrf.mxu1 }
 0xc6b   :  { %v3570_v50 = vor.u32 %v3810_v28, %v3567_v46  ;;  %v3830_v28 = vld [vmem:[#allocation11 + $0xc0] sm:$0xff] }
 0xc6d   :  { %2736 = vmatpush.bf16.msra.mxu3 %v3570_v50 }
 0xcac   :  { %v2436_v32 = vpop.f32.mrf.mxu2 }
 0xcb4   :  { %v2438_v42 = vpop.f32.mrf.mxu2 }
 0xcd4   :  { %v2470_v31 = vpop.f32.mrf.mxu3 }
 0xcd5   :  { %v2543_v55 = vadd.f32 %v2470_v31, %v2436_v32  ;;  %v3557_v31 = vld [vmem:[#allocation10 + $0x90] sm:$0xf]  ;;  %v3809_v32 = vld [vmem:[#allocation10 + $0x94] sm:$0xf0] }
 0xcdc   :  { %v2472_v40 = vpop.f32.mrf.mxu3 }
 0xcdd   :  { %v2546_v44 = vadd.f32 %v2472_v40, %v2438_v42  ;;  %v3551_v42 = vld [vmem:[#allocation10 + $0x88] sm:$0xf0] }
 0xce0   :  { %v2504_v33 = vpop.f32.mrf.mxu0 }
 0xce1   :  { %v2544_v36 = vadd.f32 %v2543_v55, %v2504_v33  ;;  %v3808_v33 = vld [vmem:[#allocation10 + $0x94] sm:$0xf]  ;;  %v3558_v55 = vor.u32 %v3809_v32, %v3557_v31 }
 0xce6   :  { %v2538_v38 = vpop.f32.mrf.mxu1 }
 0xce7   :  { %v2545_v59 = vadd.f32 %v2544_v36, %v2538_v38  ;;  %v3559_v36 = vld [vmem:[#allocation10 + $0x98] sm:$0xf0]  ;;  %v3807_v38 = vld [vmem:[#allocation10 + $0x84] sm:$0xf0] }
 0xce8   :  { %v2506_v43 = vpop.f32.mrf.mxu0  ;;  %v3562_v40 = vor.u32 %v3808_v33, %v3559_v36 }
 0xce9   :  { %v2554_v41 = vadd.f32 %v3956_v37, %v2545_v59  ;;  %v2547_v47 = vadd.f32 %v2546_v44, %v2506_v43 }
 0xcea   :  { %2737 = vmatpush.bf16.msra.mxu3 %v3562_v40 }
 0xceb   :  { %v2556_v45 = vadd.f32 %v2554_v41, %v4676_v29  ;;  %v3806_v41 = vld [vmem:[#allocation10 + $0x84] sm:$0xf] }
 0xced   :  { %2562 = vadd.xlane.f32.xlu0 %v2556_v45 }
 0xcee   :  { %v2540_v49 = vpop.f32.mrf.mxu1 }
 0xcef   :  { %v2548_v26 = vadd.f32 %v2547_v47, %v2540_v49 }
 0xcf1   :  { %v2555_v51 = vadd.f32 %v3956_v37, %v2548_v26  ;;  %v3549_v37 = vld [vmem:[#allocation10 + $0x80] sm:$0xf] }
 0xcf2   :  { %v3550_v44 = vor.u32 %v3807_v38, %v3549_v37 }
 0xcf3   :  { %v2557_v27 = vadd.f32 %v2555_v51, %v4678_v30  ;;  %v3605_v30 = vld [vmem:[#allocation10 + $0xf0] sm:$0xf] }
 0xcf4   :  { %v3606_v3 = vor.u32 %v3821_v0, %v3605_v30 }
 0xcf5   :  { %2564 = vadd.xlane.f32.xlu1 %v2557_v27 }
 0xcf6   :  { %2717 = vmatpush.bf16.msrb.mxu2 %v3606_v3 }
 0xcfa   :  { %2718 = vmatpush.bf16.msrb.mxu2 %v3598_v9 }
 0xcfe   :  { %2719 = vmatpush.bf16.msrb.mxu2 %v3590_v14  ;;  %v3829_v14 = vld [vmem:[#allocation11 + $0xb8] sm:$0xff] }
 0xcff   :  { %2917 = vmatpush.bf16.msrb.mxu0 %v3829_v14 }
 0xd02   :  { %2720 = vmatpush.bf16.msrb.mxu2 %v3582_v19  ;;  %v3834_v19 = vld [vmem:[#allocation11 + $0xe0] sm:$0xff] }
 0xd03   :  { %2934 = vmatpush.bf16.msrb.mxu1 %v3834_v19 }
 0xd06   :  { %2721 = vmatpush.bf16.msrb.mxu2 %v3574_v25  ;;  %v3823_v25 = vld [vmem:[#allocation11 + $0x88] sm:$0xff] }
 0xd07   :  { %2935 = vmatpush.bf16.msrb.mxu1 %v3833_v21 }
 0xd0a   :  { %2722 = vmatpush.bf16.msrb.mxu2 %v3566_v10 }
 0xd0b   :  { %2936 = vmatpush.bf16.msrb.mxu1 %v3832_v23 }
 0xd0e   :  { %2723 = vmatpush.bf16.msrb.mxu2 %v3558_v55 }
 0xd0f   :  { %2937 = vmatpush.bf16.msrb.mxu1 %v3831_v7 }
 0xd12   :  { %2724 = vmatpush.bf16.msrb.mxu2 %v3550_v44 }
 0xd13   :  { %2938 = vmatpush.bf16.msrb.mxu1 %v3830_v28 }
 0xd60   :  { %v2563_v53 = vpop.xlane.xlu0 %2562 }
 0xd61   :  { %v2566_v54 = vmul.f32 %v2563_v53, %v4479_v52 }
 0xd63   :  { %v4793_v56 = vsub.f32 %v2556_v45, %v2566_v54  ;;  %v3554_v45 = vor.u32 %v3806_v41, %v3551_v42 }
 0xd65   :  { %v2570_v58 = vmul.f32 %v4793_v56, %v4793_v56  ;;  %2738 = vmatpush.bf16.msra.mxu3 %v3554_v45 }
 0xd67   :  { %2572 = vadd.xlane.f32.xlu2 %v2570_v58 }
 0xd68   :  { %v2565_v61 = vpop.xlane.xlu1 %2564 }
 0xd69   :  { %v2567_v29 = vmul.f32 %v2565_v61, %v4479_v52 }
 0xd6b   :  { %v4798_v62 = vsub.f32 %v2557_v27, %v2567_v29 }
 0xd6d   :  { %v2571_v63 = vmul.f32 %v4798_v62, %v4798_v62 }
 0xd6f   :  { %2574 = vadd.xlane.f32.xlu0 %v2571_v63 }
 0xdda   :  { %v2573_v59 = vpop.xlane.xlu2 %2572 }
 0xddb   :  { %v2576_v43 = vmul.f32 %v2573_v59, %v4479_v52 }
 0xddd   :  { %v2578_v47 = vadd.f32 1e-12, %v2576_v43 }
 0xddf   :  { %4049 = vrsqrt.f32 %v2578_v47  ;;  %vm2586_vm9 = vweird.f32 %v2578_v47 }
 0xde2   :  { %v2575_v49 = vpop.xlane.xlu0 %2574 }
 0xde3   :  { %v2577_v26 = vmul.f32 %v2575_v49, %v4479_v52 }
 0xde5   :  { %v4050_v51 = vpop.eup %4049  ;;  %v2579_v27 = vadd.f32 1e-12, %v2577_v26 }
 0xde6   :  { %v2581_v53 = vmul.f32 %v4050_v51, %v2578_v47  ;;  %vm2587_vm8 = vweird.f32 %v4050_v51 }
 0xde7   :  { %4051 = vrsqrt.f32 %v2579_v27  ;;  %vm2588_vm10 = vmor %vm2586_vm9, %vm2587_vm8  ;;  %vm2596_vm12 = vweird.f32 %v2579_v27 }
 0xde8   :  { %v2582_v54 = vmul.f32 %v4050_v51, %v2581_v53 }
 0xdea   :  { %v2583_v58 = vmul.f32 0.5, %v2582_v54 }
 0xdec   :  { %v2584_v61 = vsub.f32 1.5, %v2583_v58 }
 0xded   :  { %v4052_v29 = vpop.eup %4051 }
 0xdee   :  { %v2585_v63 = vmul.f32 %v4050_v51, %v2584_v61  ;;  %v2591_v30 = vmul.f32 %v4052_v29, %v2579_v27  ;;  %vm2597_vm11 = vweird.f32 %v4052_v29 }
 0xdef   :  { %vm2598_vm13 = vmor %vm2596_vm12, %vm2597_vm11 }
 0xdf0   :  { %v2592_v0 = vmul.f32 %v4052_v29, %v2591_v30  ;;  %v2589_v2 = vsel %vm2588_vm10, %v4050_v51, %v2585_v63 }
 0xdf1   :  { %v2600_v4 = vmul.f32 %v2589_v2, %v4793_v56 }
 0xdf2   :  { %v2593_v3 = vmul.f32 0.5, %v2592_v0 }
 0xdf3   :  { %v2605_v34 = vmul.f32 %v3957_v5, %v2600_v4 }
 0xdf4   :  { %v2594_v1 = vsub.f32 1.5, %v2593_v3 }
 0xdf5   :  { %v4812_v12 = vadd.f32 %v3958_v11, %v2605_v34 }
 0xdf6   :  { %v2595_v6 = vmul.f32 %v4052_v29, %v2594_v1 }
 0xdf8   :  { %v2599_v8 = vsel %vm2598_vm13, %v4052_v29, %v2595_v6 }
 0xdf9   :  { %v2601_v9 = vmul.f32 %v2599_v8, %v4798_v62  ;;  %v3828_v62 = vld [vmem:[#allocation11 + $0xb0] sm:$0xff] }
 0xdfa   :  { %2918 = vmatpush.bf16.msrb.mxu0 %v3828_v62 }
 0xdfb   :  { %v2606_v35 = vmul.f32 %v3957_v5, %v2601_v9 }
 0xdfd   :  { %v4814_v13 = vadd.f32 %v3958_v11, %v2606_v35 }
 0xdfe   :  { %2919 = vmatpush.bf16.msrb.mxu0 %v3827_v17 }
 0xdff   :  { %v2612_v56 = vpack.c.bf16 %v4814_v13, %v4812_v12 }
 0xe01   :  { %2725 = vmatmul.bf16.vlgmr.msrb.gmra.mxu2 %v2612_v56  ;;  %2739 = vmatmul.bf16.vlgmr.msra.gmra.mxu3 %v2612_v56 }
 0xe02   :  { %2920 = vmatpush.bf16.msrb.mxu0 %v3826_v57  ;;  %v3959_v57 = vld [vmem:[%s4856_s17 + $0x1] ss:$0 sm:$0xff] }
 0xe06   :  { %2921 = vmatpush.bf16.msrb.mxu0 %v3825_v20 }
 0xe0a   :  { %2922 = vmatpush.bf16.msrb.mxu0 %v3824_v22 }
 0xe0e   :  { %2923 = vmatpush.bf16.msrb.mxu0 %v3823_v25 }
 0xe12   :  { %2924 = vmatpush.bf16.msrb.mxu0 %v3822_v60 }
 0xe84   :  { %v2726_v10 = vpop.f32.mrf.mxu2  ;;  %v2740_v46 = vpop.f32.mrf.mxu3 }
 0xe85   :  { %v2727_v50 = vadd.f32 %v2726_v10, %v2633_v48  ;;  %v2741_v31 = vadd.f32 %v2740_v46, %v2634_v39 }
 0xe87   :  { %v2749_v32 = vmul.f32 0.044715, %v2727_v50  ;;  %v2750_v33 = vmul.f32 0.044715, %v2741_v31  ;;  %v2745_v5 = vmul.f32 0.5, %v2727_v50  ;;  %v2746_v9 = vmul.f32 0.5, %v2741_v31 }
 0xe89   :  { %v2753_v55 = vmul.f32 %v2749_v32, %v2727_v50  ;;  %v2754_v36 = vmul.f32 %v2750_v33, %v2741_v31  ;;  %v3845_v32 = vld [vmem:[#allocation13 + $0x38] sm:$0xff]  ;;  %v3843_v33 = vld [vmem:[#allocation13 + $0x28] sm:$0xff] }
 0xe8a   :  { %3080 = vmatpush.bf16.msra.mxu2 %v3845_v32 }
 0xe8b   :  { %v2757_v37 = vmul.f32 %v2753_v55, %v2727_v50  ;;  %v2758_v38 = vmul.f32 %v2754_v36, %v2741_v31  ;;  %v3841_v55 = vld [vmem:[#allocation13 + $0x18] sm:$0xff] }
 0xe8c   :  { %v2728_v59 = vpop.f32.mrf.mxu2  ;;  %v2742_v40 = vpop.f32.mrf.mxu3 }
 0xe8d   :  { %v2729_v41 = vadd.f32 %v2728_v59, %v2633_v48  ;;  %v2743_v42 = vadd.f32 %v2742_v40, %v2634_v39  ;;  %v2761_v43 = vadd.f32 %v2757_v37, %v2727_v50  ;;  %v2762_v44 = vadd.f32 %v2758_v38, %v2741_v31  ;;  %v3840_v37 = vld [vmem:[#allocation13 + $0x10] sm:$0xff]  ;;  %v3839_v40 = vld [vmem:[#allocation13 + $0x8] sm:$0xff] }
 0xe8f   :  { %v2751_v45 = vmul.f32 0.044715, %v2729_v41  ;;  %v2752_v47 = vmul.f32 0.044715, %v2743_v42  ;;  %v2765_v49 = vmul.f32 0.7978846, %v2761_v43 }
 0xe90   :  { %v2766_v27 = vmul.f32 0.7978846, %v2762_v44  ;;  %v2747_v6 = vmul.f32 0.5, %v2729_v41  ;;  %v2748_v34 = vmul.f32 0.5, %v2743_v42 }
 0xe91   :  { %v2755_v26 = vmul.f32 %v2751_v45, %v2729_v41  ;;  %v2756_v51 = vmul.f32 %v2752_v47, %v2743_v42  ;;  %4053 = vtanh.f32 %v2765_v49 }
 0xe92   :  { %4055 = vtanh.f32 %v2766_v27 }
 0xe93   :  { %v2759_v53 = vmul.f32 %v2755_v26, %v2729_v41  ;;  %v2760_v54 = vmul.f32 %v2756_v51, %v2743_v42 }
 0xe95   :  { %v2763_v58 = vadd.f32 %v2759_v53, %v2729_v41  ;;  %v2764_v61 = vadd.f32 %v2760_v54, %v2743_v42  ;;  %v3838_v41 = vld [vmem:[#allocation13] sm:$0xff] }
 0xe97   :  { %v2767_v29 = vmul.f32 0.7978846, %v2763_v58  ;;  %v2768_v63 = vmul.f32 0.7978846, %v2764_v61  ;;  %v4054_v30 = vpop.eup %4053  ;;  %v3960_v58 = vld [vmem:[%s4857_s18 + $0x1] ss:$0 sm:$0xff] }
 0xe98   :  { %v4056_v0 = vpop.eup %4055  ;;  %v2773_v2 = vadd.f32 1.0, %v4054_v30  ;;  %s4312_s18 = smov [#allocation16]  }
 0xe99   :  { %4057 = vtanh.f32 %v2767_v29  ;;  %v2774_v1 = vadd.f32 1.0, %v4056_v0  ;;  %v3961_v29 = vld [vmem:[%s4858_s19 + $0x1] ss:$0 sm:$0xff]  ;;  %s3100_s19 = sshll.u32 %s4312_s18, 4  ;;  %s3101_s19 = int_to_ptr.vmem [resolvable:$true] %s3100_s19 }
 0xe9a   :  { %4059 = vtanh.f32 %v2768_v63  ;;  %v2777_v35 = vmul.f32 %v2773_v2, %v2745_v5 }
 0xe9b   :  { %v2778_v14 = vmul.f32 %v2774_v1, %v2746_v9 }
 0xe9f   :  { %v4058_v3 = vpop.eup %4057 }
 0xea0   :  { %v4060_v4 = vpop.eup %4059  ;;  %v2775_v8 = vadd.f32 1.0, %v4058_v3 }
 0xea1   :  { %v2776_v11 = vadd.f32 1.0, %v4060_v4 }
 0xea2   :  { %v2779_v56 = vmul.f32 %v2775_v8, %v2747_v6 }
 0xea3   :  { %v2780_v15 = vmul.f32 %v2776_v11, %v2748_v34 }
 0xea4   :  { %v2781_v62 = vpack.c.bf16 %v2779_v56, %v2777_v35 }
 0xea5   :  { %v2782_v16 = vpack.c.bf16 %v2780_v15, %v2778_v14 }
 0xea6   :  { %2925 = vmatmul.bf16.vlgmr.msrb.gmra.mxu0 %v2781_v62  ;;  %v3962_v62 = vld [vmem:[#allocation14] ss:$0 sm:$0xff] }
 0xea7   :  { %2939 = vmatmul.bf16.vlgmr.msrb.gmra.mxu1 %v2782_v16 }
 0xf23   :  { %v2926_v17 = vpop.f32.mrf.mxu0 }
 0xf24   :  { %v2940_v18 = vpop.f32.mrf.mxu1  ;;  %v2927_v23 = vadd.f32 %v3959_v57, %v2926_v17 }
 0xf26   :  { %v2941_v25 = vadd.f32 %v2940_v18, %v2927_v23 }
 0xf28   :  { %v2945_v7 = vadd.f32 %v2941_v25, %v4812_v12  ;;  %v3842_v12 = vld [vmem:[#allocation13 + $0x20] sm:$0xff] }
 0xf2b   :  { %v2928_v19 = vpop.f32.mrf.mxu0 }
 0xf2c   :  { %v2929_v20 = vadd.f32 %v3959_v57, %v2928_v19  ;;  %v2942_v21 = vpop.f32.mrf.mxu1 }
 0xf2e   :  { %v2943_v22 = vadd.f32 %v2942_v21, %v2929_v20 }
 0xf30   :  { %v2946_v24 = vadd.f32 %v2943_v22, %v4814_v13  ;;  %v3844_v13 = vld [vmem:[#allocation13 + $0x30] sm:$0xff] }
 0xf31   :  { %3081 = vmatpush.bf16.msra.mxu2 %v3844_v13 }
 0xf32   :  { %2953 = vadd.xlane.f32.xlu0 %v2946_v24 }
 0xf35   :  { %3082 = vmatpush.bf16.msra.mxu2 %v3843_v33 }
 0xf39   :  { %3083 = vmatpush.bf16.msra.mxu2 %v3842_v12 }
 0xf3a   :  { %2951 = vadd.xlane.f32.xlu0 %v2945_v7 }
 0xf3d   :  { %3084 = vmatpush.bf16.msra.mxu2 %v3841_v55 }
 0xf41   :  { %3085 = vmatpush.bf16.msra.mxu2 %v3840_v37 }
 0xf45   :  { %3086 = vmatpush.bf16.msra.mxu2 %v3839_v40 }
 0xf49   :  { %3087 = vmatpush.bf16.msra.mxu2 %v3838_v41 }
 0xfa5   :  { %v2954_v48 = vpop.xlane.xlu0 %2953 }
 0xfa6   :  { %v2956_v39 = vmul.f32 %v2954_v48, %v4479_v52 }
 0xfa8   :  { %v2958_v60 = vsub.f32 %v2946_v24, %v2956_v39 }
 0xfaa   :  { %v2960_v28 = vmul.f32 %v2958_v60, %v2958_v60 }
 0xfac   :  { %2963 = vadd.xlane.f32.xlu0 %v2960_v28 }
 0xfad   :  { %v2952_v10 = vpop.xlane.xlu0 %2951 }
 0xfae   :  { %v2955_v46 = vmul.f32 %v2952_v10, %v4479_v52 }
 0xfb0   :  { %v2957_v50 = vsub.f32 %v2945_v7, %v2955_v46 }
 0xfb2   :  { %v2959_v31 = vmul.f32 %v2957_v50, %v2957_v50 }
 0xfb4   :  { %2961 = vadd.xlane.f32.xlu0 %v2959_v31 }
0x101f   :  { %v2964_v36 = vpop.xlane.xlu0 %2963 }
0x1020   :  { %v2966_v38 = vmul.f32 %v2964_v36, %v4479_v52 }
0x1022   :  { %v2968_v59 = vadd.f32 1e-12, %v2966_v38 }
0x1024   :  { %4061 = vrsqrt.f32 %v2968_v59  ;;  %vm2985_vm15 = vweird.f32 %v2968_v59 }
0x1027   :  { %v2962_v42 = vpop.xlane.xlu0 %2961 }
0x1028   :  { %v2965_v43 = vmul.f32 %v2962_v42, %v4479_v52 }
0x102a   :  { %v4062_v44 = vpop.eup %4061  ;;  %v2967_v45 = vadd.f32 1e-12, %v2965_v43 }
0x102b   :  { %v2980_v47 = vmul.f32 %v4062_v44, %v2968_v59  ;;  %vm2986_vm14 = vweird.f32 %v4062_v44 }
0x102c   :  { %4063 = vrsqrt.f32 %v2967_v45  ;;  %vm2987_vm0 = vmor %vm2985_vm15, %vm2986_vm14  ;;  %vm2975_vm2 = vweird.f32 %v2967_v45 }
0x102d   :  { %v2981_v49 = vmul.f32 %v4062_v44, %v2980_v47 }
0x102f   :  { %v2982_v26 = vmul.f32 0.5, %v2981_v49 }
0x1031   :  { %v2983_v51 = vsub.f32 1.5, %v2982_v26 }
0x1032   :  { %v4064_v27 = vpop.eup %4063 }
0x1033   :  { %v2984_v53 = vmul.f32 %v4062_v44, %v2983_v51  ;;  %v2970_v54 = vmul.f32 %v4064_v27, %v2967_v45  ;;  %vm2976_vm1 = vweird.f32 %v4064_v27 }
0x1034   :  { %vm2977_vm3 = vmor %vm2975_vm2, %vm2976_vm1 }
0x1035   :  { %v2988_v61 = vsel %vm2987_vm0, %v4062_v44, %v2984_v53  ;;  %v2971_v52 = vmul.f32 %v4064_v27, %v2970_v54 }
0x1036   :  { %v2990_v63 = vmul.f32 %v2988_v61, %v2958_v60 }
0x1037   :  { %v2972_v30 = vmul.f32 0.5, %v2971_v52 }
0x1038   :  { %v2995_v0 = vmul.f32 %v3960_v58, %v2990_v63 }
0x1039   :  { %v2973_v2 = vsub.f32 1.5, %v2972_v30 }
0x103a   :  { %v3000_v3 = vadd.f32 %v3961_v29, %v2995_v0 }
0x103b   :  { %v2974_v1 = vmul.f32 %v4064_v27, %v2973_v2 }
0x103c   :  { %v3002_v5 = vpack.c.bf16 %v3000_v3, %v3000_v3 }
0x103d   :  { %v2978_v4 = vsel %vm2977_vm3, %v4064_v27, %v2974_v1 }
0x103e   :  { %v2989_v6 = vmul.f32 %v2978_v4, %v2957_v50  ;;  %v3026_v9 = vunpack.c.l.b16 %v3002_v5 }
0x1040   :  { %v2994_v8 = vmul.f32 %v3960_v58, %v2989_v6  ;;  %v3027_v35 = vrot.slane %v3026_v9, 7 }
0x1042   :  { %v2999_v34 = vadd.f32 %v3961_v29, %v2994_v8 }
0x1044   :  { %v3001_v11 = vpack.c.bf16 %v2999_v34, %v2999_v34 }
0x1046   :  { %v3025_v56 = vunpack.c.l.b16 %v3001_v11 }
0x1048   :  { %v3029_v14 = vsel %vm3028_vm4, %v3027_v35, %v3025_v56 }
0x1049   :  { %v3030_v15 = vpack.c.b16 %v3029_v14, %v3029_v14 }
0x104b   :  { %3088 = vmatmul.bf16.vlgmr.msra.gmra.mxu2 %v3030_v15 }
0x10ce   :  { %v3089_v16 = vpop.f32.mrf.mxu2 }
0x10cf   :  { %v3090_v17 = vadd.f32 %v3962_v62, %v3089_v16 }
0x10d1   :  { %3094 = vst.msk [vmem:[#allocation16] sm:$0x3] %vm3093_vm5, %v3090_v17 }
0x10d2   :  { %3105 = dma.vmem_to_hbm [thread:$0]  %s3101_s19, 32, %s3103_s4, [#allocation4]  }
0x10d6   :  { %v3091_v18 = vpop.f32.mrf.mxu2 }
0x10d7   :  { %4291 = dma.done.wait [#allocation4], 32  }
0x10d8   :  { %4292 = vsyncadd [#allocation4], 4294967264 }
0x10d9   :  { %3110 = vsyncpa [#allocation3], 1 }
0x10da   :  { %3111 = vsyncpa [#allocation6], 1 }
0x10db   :  { %3112 = vsyncpa [#allocation9], 1 }
0x10dc   :  { %3113 = vsyncpa [#allocation12], 1 }
0x10dd   :  { %3114 = vsyncpa [#allocation15], 1 }
0x10de   :  { %3115 = vsyncpa [#allocation4], 1 }

</bundles_post_ra>
